<compile_context>
chip_gen: v7x
topology: tpu7x:2x2x1
jax: 0.10.0
libtpu: 0.0.40
codegen_flags: <defaults>
</compile_context>

<pallas_src>
import functools

import jax
import jax.numpy as jnp
from jax.experimental import pallas as pl
from jax.experimental.pallas import tpu as pltpu

_EDGE_CHUNK = 128     # lane-aligned edge tile for the aggregation loop
_NEG = -1e30          # masked-max sentinel (kept finite so the additive mask is NaN-free)


# ----------------------------------------------------------------------------
# Pallas kernel: whole forward pass, padded operands resident in VMEM.
# ----------------------------------------------------------------------------
def celltrack_kernel(x_ref, a_ref,                      # node feats, normalized adjacency
                     w1_ref, b1_ref,                    # GCNConv
                     src_ref, dst_ref, dst_row_ref,     # edge index (column + row layouts)
                     we1a_ref, we1b_ref, be1_ref,       # EdgeConv nn: Linear(2h->h) split
                     we2_ref, be2_ref,                  # EdgeConv nn: Linear(h->out)
                     wc1_ref, bc1_ref, wc2t_ref, bc2_ref,  # classifier (wc2 pre-transposed)
                     out_ref,                           # [1, Np] lane-dense sigmoid output
                     acc_ref):                          # [Np, Op] running-max scratch
    f32 = jnp.float32
    neg = f32(_NEG)
    one = f32(1.0)
    zero = f32(0.0)

    # ---- GCNConv: relu(A_norm @ (X @ W1) + b1) ----
    xw = jnp.dot(x_ref[...], w1_ref[...], preferred_element_type=f32)
    h = jnp.dot(a_ref[...], xw, preferred_element_type=f32) + b1_ref[...]
    h = jnp.maximum(h, 0.0)                                           # [Np, Hp]

    # ---- EdgeConv linears reassociated to node space (review item 1) ----
    #   m1_e = x_dst @ We1a + (x_src - x_dst) @ We1b + be1
    #        = Gdst @ (P - Q) + Gsrc @ Q + be1,  P = h@We1a, Q = h@We1b
    q = jnp.dot(h, we1b_ref[...], preferred_element_type=f32)         # [Np, Hp]
    p_minus_q = jnp.dot(h, we1a_ref[...], preferred_element_type=f32) - q

    n_pad = h.shape[0]
    o_pad = we2_ref.shape[1]
    ec = _EDGE_CHUNK
    n_chunks = src_ref.shape[0] // ec

    # Hoisted out of the edge loop (no per-chunk re-broadcast).
    we2 = we2_ref[...]
    be1 = be1_ref[...]
    be2 = be2_ref[...]
    gather_iota = jax.lax.broadcasted_iota(jnp.int32, (ec, n_pad), 1)  # node id along lanes
    node_iota = jax.lax.broadcasted_iota(jnp.int32, (n_pad, ec), 0)    # node id along sublanes

    acc_ref[...] = jnp.full((n_pad, o_pad), neg, f32)

    # ---- chunked edge loop: gather, edge MLP, running max aggregation ----
    @pl.loop(0, n_chunks)
    def _(c):
        off = pl.multiple_of(c * ec, ec)
        src_c = src_ref[pl.ds(off, ec), :]                             # [ec, 1] int32 (pad=-1)
        dst_c = dst_ref[pl.ds(off, ec), :]                             # [ec, 1] int32 (pad=-1)
        oh_src = jnp.where(src_c == gather_iota, one, zero)           # [ec, Np]
        oh_dst = jnp.where(dst_c == gather_iota, one, zero)           # [ec, Np]

        m1 = (jnp.dot(oh_dst, p_minus_q, preferred_element_type=f32)
              + jnp.dot(oh_src, q, preferred_element_type=f32)
              + be1)
        m1 = jnp.maximum(m1, 0.0)
        m2 = jnp.dot(m1, we2, preferred_element_type=f32) + be2        # [ec, Op]

        # Additive mask: 0 where dst(e)==node else -1e30; padded edges (dst=-1) masked out.
        dst_lane = dst_row_ref[:, pl.ds(off, ec)]                      # [1, ec]
        bias = jnp.where(dst_lane == node_iota, zero, neg)            # [Np, ec]
        masked = m2[None, :, :] + bias[:, :, None]                    # [Np, ec, Op]
        acc_ref[...] = jnp.maximum(acc_ref[...], jnp.max(masked, axis=1))

    # Nodes with no incoming edge stay at the sentinel -> 0 (matches reference).
    acc = acc_ref[...]
    agg = jnp.where(acc > f32(-1e29), acc, 0.0)                        # [Np, Op]

    # ---- classifier: Linear -> ReLU -> Linear -> Sigmoid, lane-dense [1, Np] output ----
    c1 = jnp.maximum(
        jnp.dot(agg, wc1_ref[...], preferred_element_type=f32) + bc1_ref[...], 0.0)
    logits = jnp.einsum("oh,nh->on", wc2t_ref[...], c1,
                        preferred_element_type=f32) + bc2_ref[...]     # [1, Np]
    out_ref[...] = jax.nn.sigmoid(logits)


# ----------------------------------------------------------------------------
# Wrapper: graph preprocessing + padding (glue), single pallas_call.
# ----------------------------------------------------------------------------
def _rup(v, m):
    return (v + m - 1) // m * m


def _pad2(a, rows, cols):
    return jnp.pad(a, ((0, rows - a.shape[0]), (0, cols - a.shape[1])))


@functools.partial(jax.jit, static_argnames=("num_nodes",))
def celltrack_forward(x, edge_index, params, *, num_nodes):
    f32 = jnp.float32
    N = num_nodes
    F = x.shape[1]
    E = edge_index.shape[1]
    H = params["w1"].shape[1]
    O = params["we2"].shape[1]

    Np = _rup(N, 8)
    Fp = _rup(F, 8)
    Hp = _rup(H, 128)
    Op = _rup(O, 128)
    Ep = _rup(E, _EDGE_CHUNK)

    src = edge_index[0].astype(jnp.int32)
    dst = edge_index[1].astype(jnp.int32)

    # GCN normalized adjacency with self loops: A_hat[i, j] = 1 if edge j->i or i==j.
    a_hat = jnp.zeros((N, N), f32).at[dst, src].add(1.0) + jnp.eye(N, dtype=f32)
    deg = jnp.sum(a_hat, axis=1)
    dinv = jnp.where(deg > 0, jax.lax.rsqrt(deg), 0.0)
    a_norm = a_hat * dinv[:, None] * dinv[None, :]

    # Pad graph operands (padded nodes are isolated; padded edges use index -1).
    x_p = _pad2(x.astype(f32), Np, Fp)
    a_p = _pad2(a_norm, Np, Np)
    src_p = jnp.pad(src, (0, Ep - E), constant_values=-1)
    dst_p = jnp.pad(dst, (0, Ep - E), constant_values=-1)
    src_col = src_p[:, None]                               # [Ep, 1]  (for gather one-hots)
    dst_col = dst_p[:, None]                               # [Ep, 1]
    dst_row = dst_p[None, :]                               # [1, Ep]  (for aggregation mask)

    # Zero-pad parameters to lane/sublane-aligned shapes (exact math is preserved).
    w1_p = _pad2(params["w1"], Fp, Hp)
    b1_p = _pad2(params["b1"][None, :], 1, Hp)
    we1a_p = _pad2(params["we1"][:H], Hp, Hp)              # acts on x_dst
    we1b_p = _pad2(params["we1"][H:], Hp, Hp)              # acts on (x_src - x_dst)
    be1_p = _pad2(params["be1"][None, :], 1, Hp)
    we2_p = _pad2(params["we2"], Hp, Op)
    be2_p = _pad2(params["be2"][None, :], 1, Op)
    wc1_p = _pad2(params["wc1"], Op, Hp)
    bc1_p = _pad2(params["bc1"][None, :], 1, Hp)
    wc2t_p = _pad2(params["wc2"].T, 1, Hp)                 # pre-transposed -> [1, Hp]
    bc2_p = params["bc2"][None, :]                         # [1, 1]

    vmem = pl.BlockSpec(memory_space=pltpu.MemorySpace.VMEM)
    operands = (
        x_p, a_p,
        w1_p, b1_p,
        src_col, dst_col, dst_row,
        we1a_p, we1b_p, be1_p,
        we2_p, be2_p,
        wc1_p, bc1_p, wc2t_p, bc2_p,
    )
    out = pl.pallas_call(
        celltrack_kernel,
        out_shape=jax.ShapeDtypeStruct((1, Np), f32),
        in_specs=[vmem] * len(operands),
        out_specs=vmem,
        scratch_shapes=[pltpu.VMEM((Np, Op), f32)],
    )(*operands)
    return out[0, :N]                                      # squeeze(-1)

# TODO(synk): for N in the thousands, add a node-tiled grid (dimension_semantics=
# ("parallel",)) for the GCN/classifier stages so v7x's two TensorCores both run.


# ----------------------------------------------------------------------------
# Pure-JAX reference (same math) for correctness checking.
# ----------------------------------------------------------------------------
def celltrack_reference(x, edge_index, params, *, num_nodes):
    N = num_nodes
    src, dst = edge_index[0], edge_index[1]
    f32 = jnp.float32
    a_hat = jnp.zeros((N, N), f32).at[dst, src].add(1.0) + jnp.eye(N, dtype=f32)
    deg = jnp.sum(a_hat, axis=1)
    dinv = jnp.where(deg > 0, jax.lax.rsqrt(deg), 0.0)
    a_norm = a_hat * dinv[:, None] * dinv[None, :]

    h = jax.nn.relu(a_norm @ (x @ params["w1"]) + params["b1"])
    xi, xj = h[dst], h[src]
    cat = jnp.concatenate([xi, xj - xi], axis=-1)
    m = jax.nn.relu(cat @ params["we1"] + params["be1"]) @ params["we2"] + params["be2"]
    agg = jnp.full((N, m.shape[1]), -1e30, f32)
    agg = agg.at[dst].max(m)
    has_in = jnp.zeros((N,), f32).at[dst].add(1.0) > 0.5
    agg = jnp.where(has_in[:, None], agg, 0.0)
    c = jax.nn.relu(agg @ params["wc1"] + params["bc1"]) @ params["wc2"] + params["bc2"]
    return jax.nn.sigmoid(c)[:, 0]


# ----------------------------------------------------------------------------
def make_params(key, input_dim, hidden_dim, output_dim):
    ks = jax.random.split(key, 8)
    s = lambda k, shape, fan_in: (jax.random.normal(k, shape, jnp.float32)
                                  / jnp.sqrt(jnp.float32(fan_in)))
    return {
        # GCNConv
        "w1": s(ks[0], (input_dim, hidden_dim), input_dim),
        "b1": jnp.zeros((hidden_dim,), jnp.float32),
        # EdgeConv nn: Linear(2h, h) -> ReLU -> Linear(h, out)
        "we1": s(ks[1], (2 * hidden_dim, hidden_dim), 2 * hidden_dim),
        "be1": 0.01 * jax.random.normal(ks[2], (hidden_dim,), jnp.float32),
        "we2": s(ks[3], (hidden_dim, output_dim), hidden_dim),
        "be2": 0.01 * jax.random.normal(ks[4], (output_dim,), jnp.float32),
        # classifier: Linear(out, h) -> ReLU -> Linear(h, 1) -> Sigmoid
        "wc1": s(ks[5], (output_dim, hidden_dim), output_dim),
        "bc1": jnp.zeros((hidden_dim,), jnp.float32),
        "wc2": s(ks[6], (hidden_dim, 1), hidden_dim),
        "bc2": jnp.zeros((1,), jnp.float32),
    }


if __name__ == "__main__":
    INPUT_DIM, HIDDEN_DIM, OUTPUT_DIM = 4, 64, 32   # module defaults for hidden/out dims
    N = 16  # nodes

    key = jax.random.PRNGKey(0)
    k_x, k_p = jax.random.split(key)

    # Deterministic small graph: ring edges both directions + skip-5 edges (E = 3N).
    idx = jnp.arange(N, dtype=jnp.int32)
    src = jnp.concatenate([idx, (idx + 1) % N, idx])
    dst = jnp.concatenate([(idx + 1) % N, idx, (idx + 5) % N])
    edge_index = jnp.stack([src, dst], axis=0)          # [2, E]

    x = jax.random.normal(k_x, (N, INPUT_DIM), jnp.float32)
    params = make_params(k_p, INPUT_DIM, HIDDEN_DIM, OUTPUT_DIM)

    out = celltrack_forward(x, edge_index, params, num_nodes=N)
    out = jax.block_until_ready(out)

    ref = celltrack_reference(x, edge_index, params, num_nodes=N)
    assert out.shape == (N,)
    assert jnp.allclose(out, ref, rtol=2e-3, atol=2e-3), (out, ref)

    print("KERNEL_OK")
</pallas_src>

<mosaic_0001>
module attributes {stable_mosaic.version = 11 : i64} {
  func.func private @main(%arg0: i32) attributes {dimension_semantics = [#tpu.dimension_semantics<core_parallel>], iteration_bounds = array<i64: 2>, tpu.core_type = #tpu.core_type<sc_scalar_subcore>, window_params = []} {
    return
  }
}

module attributes {stable_mosaic.version = 11 : i64} {
  func.func private @main(%arg0: i32) attributes {dimension_semantics = [#tpu.dimension_semantics<core_parallel>], iteration_bounds = array<i64: 2>, tpu.core_type = #tpu.core_type<sc_scalar_subcore>, window_params = []} {
    return
  }
}

module attributes {stable_mosaic.version = 11 : i64} {
  func.func @celltrack_kernel(%arg0: memref<16x8xf32, #tpu.memory_space<vmem>>, %arg1: memref<16x16xf32, #tpu.memory_space<vmem>>, %arg2: memref<8x128xf32, #tpu.memory_space<vmem>>, %arg3: memref<1x128xf32, #tpu.memory_space<vmem>>, %arg4: memref<128x1xi32, #tpu.memory_space<vmem>>, %arg5: memref<128x1xi32, #tpu.memory_space<vmem>>, %arg6: memref<1x128xi32, #tpu.memory_space<vmem>>, %arg7: memref<128x128xf32, #tpu.memory_space<vmem>>, %arg8: memref<128x128xf32, #tpu.memory_space<vmem>>, %arg9: memref<1x128xf32, #tpu.memory_space<vmem>>, %arg10: memref<128x128xf32, #tpu.memory_space<vmem>>, %arg11: memref<1x128xf32, #tpu.memory_space<vmem>>, %arg12: memref<128x128xf32, #tpu.memory_space<vmem>>, %arg13: memref<1x128xf32, #tpu.memory_space<vmem>>, %arg14: memref<1x128xf32, #tpu.memory_space<vmem>>, %arg15: memref<1x1xf32, #tpu.memory_space<vmem>>, %arg16: memref<1x16xf32, #tpu.memory_space<vmem>>, %arg17: memref<16x128xf32, #tpu.memory_space<vmem>>) attributes {dimension_semantics = [], scalar_prefetch = 0 : i64, scratch_operands = 1 : i64, tpu.core_type = #tpu.core_type<tc>} {
    %c0 = arith.constant 0 : index
    %c0_0 = arith.constant 0 : index
    %0 = vector.load %arg0[%c0, %c0_0] : memref<16x8xf32, #tpu.memory_space<vmem>>, vector<16x8xf32>
    %c0_1 = arith.constant 0 : index
    %c0_2 = arith.constant 0 : index
    %1 = vector.load %arg2[%c0_1, %c0_2] : memref<8x128xf32, #tpu.memory_space<vmem>>, vector<8x128xf32>
    %cst = arith.constant dense<0.000000e+00> : vector<16x128xf32>
    %2 = tpu.matmul %0, %1, %cst {dimension_numbers = #tpu.dot_dimension_numbers<[1], [0], [0], [1], [0, 0, 1, 1], [], []>} : vector<16x8xf32>, vector<8x128xf32>, vector<16x128xf32> -> vector<16x128xf32>
    %c0_3 = arith.constant 0 : index
    %c0_4 = arith.constant 0 : index
    %3 = vector.load %arg1[%c0_3, %c0_4] : memref<16x16xf32, #tpu.memory_space<vmem>>, vector<16x16xf32>
    %cst_5 = arith.constant dense<0.000000e+00> : vector<16x128xf32>
    %4 = tpu.matmul %3, %2, %cst_5 {dimension_numbers = #tpu.dot_dimension_numbers<[1], [0], [0], [1], [0, 0, 1, 1], [], []>} : vector<16x16xf32>, vector<16x128xf32>, vector<16x128xf32> -> vector<16x128xf32>
    %c0_6 = arith.constant 0 : index
    %c0_7 = arith.constant 0 : index
    %5 = vector.load %arg3[%c0_6, %c0_7] : memref<1x128xf32, #tpu.memory_space<vmem>>, vector<1x128xf32>
    %6 = vector.broadcast %5 : vector<1x128xf32> to vector<16x128xf32>
    %7 = arith.addf %4, %6 : vector<16x128xf32>
    %cst_8 = arith.constant 0.000000e+00 : f32
    %8 = vector.broadcast %cst_8 : f32 to vector<16x128xf32>
    %9 = arith.maximumf %7, %8 : vector<16x128xf32>
    %c0_9 = arith.constant 0 : index
    %c0_10 = arith.constant 0 : index
    %10 = vector.load %arg8[%c0_9, %c0_10] : memref<128x128xf32, #tpu.memory_space<vmem>>, vector<128x128xf32>
    %cst_11 = arith.constant dense<0.000000e+00> : vector<16x128xf32>
    %11 = tpu.matmul %9, %10, %cst_11 {dimension_numbers = #tpu.dot_dimension_numbers<[1], [0], [0], [1], [0, 0, 1, 1], [], []>} : vector<16x128xf32>, vector<128x128xf32>, vector<16x128xf32> -> vector<16x128xf32>
    %c0_12 = arith.constant 0 : index
    %c0_13 = arith.constant 0 : index
    %12 = vector.load %arg7[%c0_12, %c0_13] : memref<128x128xf32, #tpu.memory_space<vmem>>, vector<128x128xf32>
    %cst_14 = arith.constant dense<0.000000e+00> : vector<16x128xf32>
    %13 = tpu.matmul %9, %12, %cst_14 {dimension_numbers = #tpu.dot_dimension_numbers<[1], [0], [0], [1], [0, 0, 1, 1], [], []>} : vector<16x128xf32>, vector<128x128xf32>, vector<16x128xf32> -> vector<16x128xf32>
    %14 = arith.subf %13, %11 : vector<16x128xf32>
    %c0_15 = arith.constant 0 : index
    %c0_16 = arith.constant 0 : index
    %15 = vector.load %arg10[%c0_15, %c0_16] : memref<128x128xf32, #tpu.memory_space<vmem>>, vector<128x128xf32>
    %c0_17 = arith.constant 0 : index
    %c0_18 = arith.constant 0 : index
    %16 = vector.load %arg9[%c0_17, %c0_18] : memref<1x128xf32, #tpu.memory_space<vmem>>, vector<1x128xf32>
    %c0_19 = arith.constant 0 : index
    %c0_20 = arith.constant 0 : index
    %17 = vector.load %arg11[%c0_19, %c0_20] : memref<1x128xf32, #tpu.memory_space<vmem>>, vector<1x128xf32>
    %18 = tpu.iota {dimensions = array<i32: 1>} : vector<128x16xi32>
    %19 = tpu.iota {dimensions = array<i32: 0>} : vector<16x128xi32>
    %cst_21 = arith.constant -1.000000e+30 : f32
    %20 = vector.broadcast %cst_21 : f32 to vector<16x128xf32>
    %c0_22 = arith.constant 0 : index
    %c0_23 = arith.constant 0 : index
    %21 = vector.load %arg17[%c0_22, %c0_23] : memref<16x128xf32, #tpu.memory_space<vmem>>, vector<16x128xf32>
    tpu.vector_store %arg17[%c0_22, %c0_23], %20 {strides = array<i32>} : memref<16x128xf32, #tpu.memory_space<vmem>>, vector<16x128xf32>,
    %cst_24 = arith.constant 1.000000e+00 : f32
    %cst_25 = arith.constant 0.000000e+00 : f32
    %cst_26 = arith.constant -1.000000e+30 : f32
    %c0_i32 = arith.constant 0 : i32
    %c1_i32 = arith.constant 1 : i32
    %22 = arith.muli %c0_i32, %c1_i32 : i32
    %c0_i32_27 = arith.constant 0 : i32
    %23 = arith.addi %c0_i32_27, %22 : i32
    %c128_i32 = arith.constant 128 : i32
    %24 = arith.muli %23, %c128_i32 : i32
    %25 = tpu.assume_multiple %24, 128 : i32
    %26 = arith.index_cast %25 : i32 to index
    %c0_28 = arith.constant 0 : index
    %27 = vector.load %arg4[%26, %c0_28] : memref<128x1xi32, #tpu.memory_space<vmem>>, vector<128x1xi32>
    %28 = arith.index_cast %25 : i32 to index
    %c0_29 = arith.constant 0 : index
    %29 = vector.load %arg5[%28, %c0_29] : memref<128x1xi32, #tpu.memory_space<vmem>>, vector<128x1xi32>
    %30 = vector.broadcast %27 : vector<128x1xi32> to vector<128x16xi32>
    %31 = arith.cmpi eq, %30, %18 : vector<128x16xi32>
    %32 = vector.broadcast %cst_24 : f32 to vector<128x16xf32>
    %33 = vector.broadcast %cst_25 : f32 to vector<128x16xf32>
    %34 = arith.select %31, %32, %33 : vector<128x16xi1>, vector<128x16xf32>
    %35 = vector.broadcast %29 : vector<128x1xi32> to vector<128x16xi32>
    %36 = arith.cmpi eq, %35, %18 : vector<128x16xi32>
    %37 = vector.broadcast %cst_24 : f32 to vector<128x16xf32>
    %38 = vector.broadcast %cst_25 : f32 to vector<128x16xf32>
    %39 = arith.select %36, %37, %38 : vector<128x16xi1>, vector<128x16xf32>
    %cst_30 = arith.constant dense<0.000000e+00> : vector<128x128xf32>
    %40 = tpu.matmul %39, %14, %cst_30 {dimension_numbers = #tpu.dot_dimension_numbers<[1], [0], [0], [1], [0, 0, 1, 1], [], []>} : vector<128x16xf32>, vector<16x128xf32>, vector<128x128xf32> -> vector<128x128xf32>
    %cst_31 = arith.constant dense<0.000000e+00> : vector<128x128xf32>
    %41 = tpu.matmul %34, %11, %cst_31 {dimension_numbers = #tpu.dot_dimension_numbers<[1], [0], [0], [1], [0, 0, 1, 1], [], []>} : vector<128x16xf32>, vector<16x128xf32>, vector<128x128xf32> -> vector<128x128xf32>
    %42 = arith.addf %40, %41 : vector<128x128xf32>
    %43 = vector.broadcast %16 : vector<1x128xf32> to vector<128x128xf32>
    %44 = arith.addf %42, %43 : vector<128x128xf32>
    %cst_32 = arith.constant 0.000000e+00 : f32
    %45 = vector.broadcast %cst_32 : f32 to vector<128x128xf32>
    %46 = arith.maximumf %44, %45 : vector<128x128xf32>
    %cst_33 = arith.constant dense<0.000000e+00> : vector<128x128xf32>
    %47 = tpu.matmul %46, %15, %cst_33 {dimension_numbers = #tpu.dot_dimension_numbers<[1], [0], [0], [1], [0, 0, 1, 1], [], []>} : vector<128x128xf32>, vector<128x128xf32>, vector<128x128xf32> -> vector<128x128xf32>
    %48 = vector.broadcast %17 : vector<1x128xf32> to vector<128x128xf32>
    %49 = arith.addf %47, %48 : vector<128x128xf32>
    %c0_34 = arith.constant 0 : index
    %50 = arith.index_cast %25 : i32 to index
    %51 = vector.load %arg6[%c0_34, %50] : memref<1x128xi32, #tpu.memory_space<vmem>>, vector<1x128xi32>
    %52 = vector.broadcast %51 : vector<1x128xi32> to vector<16x128xi32>
    %53 = arith.cmpi eq, %52, %19 : vector<16x128xi32>
    %54 = vector.broadcast %cst_25 : f32 to vector<16x128xf32>
    %55 = vector.broadcast %cst_26 : f32 to vector<16x128xf32>
    %56 = arith.select %53, %54, %55 : vector<16x128xi1>, vector<16x128xf32>
    %57 = vector.shape_cast %49 : vector<128x128xf32> to vector<1x128x128xf32>
    %58 = vector.shape_cast %56 : vector<16x128xf32> to vector<16x128x1xf32>
    %59 = vector.broadcast %57 : vector<1x128x128xf32> to vector<16x128x128xf32>
    %60 = vector.broadcast %58 : vector<16x128x1xf32> to vector<16x128x128xf32>
    %61 = arith.addf %59, %60 : vector<16x128x128xf32>
    %c0_35 = arith.constant 0 : index
    %c0_36 = arith.constant 0 : index
    %62 = vector.load %arg17[%c0_35, %c0_36] : memref<16x128xf32, #tpu.memory_space<vmem>>, vector<16x128xf32>
    %cst_37 = arith.constant dense<0xFF800000> : vector<16x128xf32>
    %63 = vector.multi_reduction <maximumf>, %61, %cst_37 [1] : vector<16x128x128xf32> to vector<16x128xf32>
    %64 = arith.maximumf %62, %63 : vector<16x128xf32>
    %c0_38 = arith.constant 0 : index
    %c0_39 = arith.constant 0 : index
    %65 = vector.load %arg17[%c0_38, %c0_39] : memref<16x128xf32, #tpu.memory_space<vmem>>, vector<16x128xf32>
    tpu.vector_store %arg17[%c0_38, %c0_39], %64 {strides = array<i32>} : memref<16x128xf32, #tpu.memory_space<vmem>>, vector<16x128xf32>,
    %c1_i32_40 = arith.constant 1 : i32
    %c0_41 = arith.constant 0 : index
    %c0_42 = arith.constant 0 : index
    %66 = vector.load %arg17[%c0_41, %c0_42] : memref<16x128xf32, #tpu.memory_space<vmem>>, vector<16x128xf32>
    %cst_43 = arith.constant -1.000000e+29 : f32
    %67 = vector.broadcast %cst_43 : f32 to vector<16x128xf32>
    %68 = arith.cmpf ogt, %66, %67 : vector<16x128xf32>
    %cst_44 = arith.constant 0.000000e+00 : f32
    %69 = vector.broadcast %cst_44 : f32 to vector<16x128xf32>
    %70 = arith.select %68, %66, %69 : vector<16x128xi1>, vector<16x128xf32>
    %c0_45 = arith.constant 0 : index
    %c0_46 = arith.constant 0 : index
    %71 = vector.load %arg12[%c0_45, %c0_46] : memref<128x128xf32, #tpu.memory_space<vmem>>, vector<128x128xf32>
    %cst_47 = arith.constant dense<0.000000e+00> : vector<16x128xf32>
    %72 = tpu.matmul %70, %71, %cst_47 {dimension_numbers = #tpu.dot_dimension_numbers<[1], [0], [0], [1], [0, 0, 1, 1], [], []>} : vector<16x128xf32>, vector<128x128xf32>, vector<16x128xf32> -> vector<16x128xf32>
    %c0_48 = arith.constant 0 : index
    %c0_49 = arith.constant 0 : index
    %73 = vector.load %arg13[%c0_48, %c0_49] : memref<1x128xf32, #tpu.memory_space<vmem>>, vector<1x128xf32>
    %74 = vector.broadcast %73 : vector<1x128xf32> to vector<16x128xf32>
    %75 = arith.addf %72, %74 : vector<16x128xf32>
    %cst_50 = arith.constant 0.000000e+00 : f32
    %76 = vector.broadcast %cst_50 : f32 to vector<16x128xf32>
    %77 = arith.maximumf %75, %76 : vector<16x128xf32>
    %c0_51 = arith.constant 0 : index
    %c0_52 = arith.constant 0 : index
    %78 = vector.load %arg14[%c0_51, %c0_52] : memref<1x128xf32, #tpu.memory_space<vmem>>, vector<1x128xf32>
    "tpu.trace_start"() <{level = 10 : i32, message = "oh,nh->on"}> : () -> ()
    %cst_53 = arith.constant dense<0.000000e+00> : vector<1x16xf32>
    %79 = tpu.matmul %78, %77, %cst_53 {dimension_numbers = #tpu.dot_dimension_numbers<[1], [1], [0], [0], [0, 0, 1, 0], [], []>} : vector<1x128xf32>, vector<16x128xf32>, vector<1x16xf32> -> vector<1x16xf32>
    "tpu.trace_stop"() : () -> ()
    %c0_54 = arith.constant 0 : index
    %c0_55 = arith.constant 0 : index
    %80 = vector.load %arg15[%c0_54, %c0_55] : memref<1x1xf32, #tpu.memory_space<vmem>>, vector<1x1xf32>
    %81 = vector.broadcast %80 : vector<1x1xf32> to vector<1x16xf32>
    %82 = arith.addf %79, %81 : vector<1x16xf32>
    %83 = arith.negf %82 : vector<1x16xf32>
    %84 = math.exp %83 : vector<1x16xf32>
    %cst_56 = arith.constant 1.000000e+00 : f32
    %85 = vector.broadcast %cst_56 : f32 to vector<1x16xf32>
    %86 = arith.addf %85, %84 : vector<1x16xf32>
    %87 = arith.divf %85, %86 : vector<1x16xf32>
    %c0_57 = arith.constant 0 : index
    %c0_58 = arith.constant 0 : index
    %88 = vector.load %arg16[%c0_57, %c0_58] : memref<1x16xf32, #tpu.memory_space<vmem>>, vector<1x16xf32>
    tpu.vector_store %arg16[%c0_57, %c0_58], %87 {strides = array<i32>} : memref<1x16xf32, #tpu.memory_space<vmem>>, vector<1x16xf32>,
    return
  }
}

</mosaic_0001>

<bundles_post_ra>
// kernel: celltrack_forward.1
= control target key start
LH: loop header
LB: loop body
LE: loop exit
PB: predicated region body
PF: predicated region fallthrough
CT: control target
= control target key end

     0   :  { %s6103_s0 = inlined_call_operand.vmem [shape: f32[16,8], index: 0, kind: input, shape index: {}]   ;;  %s6104_s1 = inlined_call_operand.vmem [shape: f32[16,16], index: 1, kind: input, shape index: {}]   ;;  %s6105_s2 = inlined_call_operand.vmem [shape: f32[8,128], index: 2, kind: input, shape index: {}]   ;;  %s6106_s3 = inlined_call_operand.vmem [shape: f32[1,128], index: 3, kind: input, shape index: {}]   ;;  %s6107_s4 = inlined_call_operand.vmem [shape: s32[128,1], index: 4, kind: input, shape index: {}]   ;;  %s6108_s5 = inlined_call_operand.vmem [shape: s32[128,1], index: 5, kind: input, shape index: {}]   ;;  %s6109_s6 = inlined_call_operand.vmem [shape: s32[1,128], index: 6, kind: input, shape index: {}]   ;;  %s6110_s7 = inlined_call_operand.vmem [shape: f32[128,128], index: 7, kind: input, shape index: {}]   ;;  %s6111_s8 = inlined_call_operand.vmem [shape: f32[128,128], index: 8, kind: input, shape index: {}]   ;;  %s6112_s9 = inlined_call_operand.vmem [shape: f32[1,128], index: 9, kind: input, shape index: {}]   ;;  %s6113_s10 = inlined_call_operand.vmem [shape: f32[128,128], index: 10, kind: input, shape index: {}]   ;;  %s6114_s11 = inlined_call_operand.vmem [shape: f32[1,128], index: 11, kind: input, shape index: {}]   ;;  %s6115_s12 = inlined_call_operand.vmem [shape: f32[128,128], index: 12, kind: input, shape index: {}]   ;;  %s6116_s13 = inlined_call_operand.vmem [shape: f32[1,128], index: 13, kind: input, shape index: {}]   ;;  %s6117_s14 = inlined_call_operand.vmem [shape: f32[1,128], index: 14, kind: input, shape index: {}]   ;;  %s6118_s15 = inlined_call_operand.<no memory space> [shape: f32[1,1], index: 15, kind: input, shape index: {}]   ;;  %s6119_s16 = inlined_call_operand.hbm [shape: f32[1,16], index: 16, kind: output, shape index: {}]  }
   0x1   :  { %6141 = sst [smem:[#allocation224_spill]] %s6103_s0  ;;  %v21_v0 = vstv %s6118_s15 }
   0x2   :  { %22 = vst [vmem:[#allocation3] sm:$0x1] %v21_v0 }
   0x3   :  { %v58_v1 = vld [vmem:[%s6105_s2] sm:$0xff]  ;;  %s6142_s29 = sld [smem:[#allocation224_spill]]  ;;  %vm59_vm0 = vcmask 64512   ;;  %v6121_v4 = vlaneseq  ;;  %v3744_v5 = vmov 0   ;;  %v444_v7 = vld [vmem:[%s6107_s4 + $0x8] sm:$0xff] }
   0x4   :  { %v443_v2 = vld [vmem:[%s6107_s4] sm:$0xff]  ;;  %3714 = vset.pattern.permute.xlu0 %v3744_v5  ;;  %3313 = vmatprep.subr.mxu0 %v58_v1 }
   0x5   :  { %476 = vperm.xlu0 %3714, %v443_v2   ;;  %3314 = vmatpush3.msra.mxu0 %v58_v1  ;;  %v3854_v8 = vshrl.u32 %v6121_v4, 7  ;;  %v3176_v9 = vld [vmem:[%s6109_s6] ss:$0 sm:$0xff] }
   0x6   :  { %3715 = vset.pattern.permute.xlu1 %v3744_v5  ;;  %v447_v10 = vld [vmem:[%s6107_s4 + $0x20] sm:$0xff] }
   0x7   :  { %vm1215_vm1 = vcmp.eq.s32.totalorder %v3176_v9, %v3854_v8  ;;  %v1623_v11 = vsub.s32 6, %v3854_v8 }
   0x9   :  { %v56_v3 = vld [vmem:[%s6142_s29] sm:$0xff]  ;;  %v57_v6 = vld [vmem:[%s6142_s29 + $0x8] sm:$0xff]  ;;  %479 = vperm.xlu0 %3714, %v444_v7  }
   0xa   :  { %3315 = vmatprep.mubr.msk.f32.mxu0 %vm59_vm0, %v56_v3 }
   0xb   :  { %3316 = vmatmul.mubr.msk.f32.vlgmr.msra.gmra.mrb[0].mxu0 %vm59_vm0, %v57_v6 }
   0xc   :  { %23 = vsyncpa [#allocation5], 0  ;;  %v3745_v12 = vmov -1e+30   ;;  %v449_v14 = vld [vmem:[%s6107_s4 + $0x30] sm:$0xff]  ;;  %v451_v16 = vld [vmem:[%s6107_s4 + $0x40] sm:$0xff] }
   0xd   :  { %488 = vperm.xlu0 %3714, %v447_v10   ;;  %v3864_v13 = vsel %vm1215_vm1, 0.0, %v3745_v12  ;;  %v453_v17 = vld [vmem:[%s6107_s4 + $0x50] sm:$0xff]  ;;  %v455_v18 = vld [vmem:[%s6107_s4 + $0x60] sm:$0xff]  ;;  %v1690_v19 = vsub.s32 7, %v3854_v8  ;;  %v440_v20 = vadd.s32 8, %v3854_v8  ;;  %v3915_v33 = vsub.s32 0, %v3854_v8 }
   0xe   :  { %v3870_v15 = vrot.slane %v3864_v13, %v1623_v11  ;;  %v457_v22 = vld [vmem:[%s6107_s4 + $0x70] sm:$0xff]  ;;  %v459_v23 = vld [vmem:[%s6108_s5] sm:$0xff]  ;;  %v1288_v36 = vsub.s32 1, %v3854_v8  ;;  %v1355_v38 = vsub.s32 2, %v3854_v8  ;;  %v1422_v42 = vsub.s32 3, %v3854_v8 }
   0xf   :  { %v3884_v21 = vrot.slane %v3864_v13, %v1690_v19  ;;  %vm1216_vm2 = vcmp.eq.s32.totalorder %v3176_v9, %v440_v20  ;;  %v461_v26 = vld [vmem:[%s6108_s5 + $0x10] sm:$0xff]  ;;  %v463_v27 = vld [vmem:[%s6108_s5 + $0x20] sm:$0xff]  ;;  %6143 = vst [vmem:[#allocation7_spill] sm:$0xff] %v3915_v33  ;;  %v3922_v35 = vrot.slane %v3864_v13, %v3915_v33  ;;  %vm150_vm3 = vcmask 130048  }
  0x10   :  { %v1218_v24 = vsel %vm1216_vm2, 0.0, %v3745_v12  ;;  %v465_v28 = vld [vmem:[%s6108_s5 + $0x30] sm:$0xff]  ;;  %v467_v29 = vld [vmem:[%s6108_s5 + $0x40] sm:$0xff]  ;;  %v3927_v37 = vrot.slane %v3864_v13, %v1288_v36  ;;  %v3932_v39 = vrot.slane %v3864_v13, %v1355_v38  ;;  %v3945_v43 = vrot.slane %v3864_v13, %v1422_v42 }
  0x11   :  { %494 = vperm.xlu0 %3714, %v449_v14   ;;  %v3892_v25 = vrot.slane %v1218_v24, %v1623_v11  ;;  %v469_v30 = vld [vmem:[%s6108_s5 + $0x50] sm:$0xff]  ;;  %v3909_v31 = vrot.slane %v1218_v24, %v1690_v19  ;;  %v471_v32 = vld [vmem:[%s6108_s5 + $0x60] sm:$0xff]  ;;  %v3936_v40 = vrot.slane %v1218_v24, %v3915_v33  ;;  %v3939_v41 = vrot.slane %v1218_v24, %v1288_v36 }
  0x12   :  { %v473_v34 = vld [vmem:[%s6108_s5 + $0x70] sm:$0xff]  ;;  %v3948_v44 = vrot.slane %v1218_v24, %v1355_v38  ;;  %v141_v45 = vld [vmem:[%s6104_s1] sm:$0xff]  ;;  %v1489_v46 = vsub.s32 4, %v3854_v8  ;;  %v3962_v48 = vrot.slane %v1218_v24, %v1422_v42  ;;  %v1556_v49 = vsub.s32 5, %v3854_v8  ;;  %v446_v42 = vld [vmem:[%s6107_s4 + $0x18] sm:$0xff] }
  0x13   :  { %3322 = vmatprep.mubr.msk.f32.mxu1 %vm150_vm3, %v141_v45  ;;  %v445_v36 = vld [vmem:[%s6107_s4 + $0x10] sm:$0xff] }
  0x14   :  { %v3958_v47 = vrot.slane %v3864_v13, %v1489_v46  ;;  %v3968_v50 = vrot.slane %v3864_v13, %v1556_v49  ;;  %v3972_v51 = vrot.slane %v1218_v24, %v1489_v46  ;;  %v3984_v55 = vrot.slane %v1218_v24, %v1556_v49  ;;  %482 = vperm.xlu1 %3715, %v445_v36   ;;  %v234_v46 = vld [vmem:[%s6111_s8] sm:$0xff]  ;;  %v235_v49 = vld [vmem:[%s6111_s8 + $0x8] sm:$0xff]  ;;  %v327_v4 = vld [vmem:[%s6110_s7 + $0x10] sm:$0xff] }
  0x15   :  { %500 = vperm.xlu0 %3714, %v451_v16  }
  0x18   :  { %485 = vperm.xlu1 %3715, %v446_v42  }
  0x19   :  { %506 = vperm.xlu0 %3714, %v453_v17   ;;  %v142_v17 = vld [vmem:[%s6104_s1 + $0x8] sm:$0xff] }
  0x1d   :  { %512 = vperm.xlu0 %3714, %v455_v18  }
  0x21   :  { %518 = vperm.xlu0 %3714, %v457_v22  }
  0x25   :  { %556 = vperm.xlu0 %3714, %v459_v23  }
  0x29   :  { %562 = vperm.xlu0 %3714, %v461_v26  }
  0x2d   :  { %568 = vperm.xlu0 %3714, %v463_v27  }
  0x31   :  { %574 = vperm.xlu0 %3714, %v465_v28  }
  0x35   :  { %580 = vperm.xlu0 %3714, %v467_v29  }
  0x39   :  { %586 = vperm.xlu0 %3714, %v469_v30  }
  0x3d   :  { %592 = vperm.xlu0 %3714, %v471_v32  }
  0x41   :  { %598 = vperm.xlu0 %3714, %v473_v34  }
  0x45   :  { %1224 = vbcast.lane.b32.xlu0 %v3922_v35, 256 }
  0x49   :  { %1291 = vbcast.lane.b32.xlu0 %v3927_v37, 256 }
  0x4d   :  { %1358 = vbcast.lane.b32.xlu0 %v3932_v39, 256 }
  0x51   :  { %1760 = vbcast.lane.b32.xlu0 %v3936_v40, 256 }
  0x55   :  { %1827 = vbcast.lane.b32.xlu0 %v3939_v41, 256 }
  0x59   :  { %1232 = vbcast.lane.b32.xlu0 %v3922_v35, 272 }
  0x5d   :  { %1425 = vbcast.lane.b32.xlu0 %v3945_v43, 256 }
  0x61   :  { %1894 = vbcast.lane.b32.xlu0 %v3948_v44, 256 }
  0x65   :  { %1366 = vbcast.lane.b32.xlu0 %v3932_v39, 272 }
  0x69   :  { %1496 = vbcast.lane.b32.xlu0 %v3958_v47, 264 }
  0x6d   :  { %1835 = vbcast.lane.b32.xlu0 %v3939_v41, 272 }
  0x71   :  { %1965 = vbcast.lane.b32.xlu0 %v3962_v48, 264 }
  0x75   :  { %1303 = vbcast.lane.b32.xlu0 %v3927_v37, 280 }
  0x79   :  { %1559 = vbcast.lane.b32.xlu0 %v3968_v50, 256 }
  0x7d   :  { %1902 = vbcast.lane.b32.xlu0 %v3948_v44, 272 }
  0x81   :  { %2032 = vbcast.lane.b32.xlu0 %v3972_v51, 264 }
  0x84   :  { %v3975_v52 = vpop.permute.xlu0 %476 }
  0x85   :  { %1500 = vbcast.lane.b32.xlu0 %v3958_v47, 272 }
  0x88   :  { %v3978_v53 = vpop.permute.xlu0 %479 }
  0x89   :  { %1630 = vbcast.lane.b32.xlu0 %v3870_v15, 264 }
  0x8c   :  { %v3981_v54 = vpop.permute.xlu0 %488 }
  0x8d   :  { %1839 = vbcast.lane.b32.xlu0 %v3939_v41, 280 }
  0x90   :  { %v3986_v56 = vpop.permute.xlu0 %494 }
  0x91   :  { %2095 = vbcast.lane.b32.xlu0 %v3984_v55, 256 }
  0x94   :  { %v3989_v57 = vpop.permute.xlu0 %500 }
  0x95   :  { %1240 = vbcast.lane.b32.xlu0 %v3922_v35, 288 }
  0x98   :  { %v3992_v58 = vpop.permute.xlu0 %506 }
  0x99   :  { %1437 = vbcast.lane.b32.xlu0 %v3945_v43, 280 }
  0x9c   :  { %v3995_v59 = vpop.permute.xlu0 %512 }
  0x9d   :  { %1693 = vbcast.lane.b32.xlu0 %v3884_v21, 256 }
  0xa0   :  { %v3998_v60 = vpop.permute.xlu0 %518 }
  0xa1   :  { %1906 = vbcast.lane.b32.xlu0 %v3948_v44, 280 }
  0xa4   :  { %v4001_v61 = vpop.permute.xlu0 %556 }
  0xa5   :  { %2162 = vbcast.lane.b32.xlu0 %v3892_v25, 256 }
  0xa8   :  { %v4004_v62 = vpop.permute.xlu0 %562 }
  0xa9   :  { %1374 = vbcast.lane.b32.xlu0 %v3932_v39, 288 }
  0xac   :  { %v4007_v63 = vpop.permute.xlu0 %568 }
  0xad   :  { %1634 = vbcast.lane.b32.xlu0 %v3870_v15, 272 }
  0xb0   :  { %v4010_v0 = vpop.permute.xlu0 %574 }
  0xb1   :  { %1843 = vbcast.lane.b32.xlu0 %v3939_v41, 288 }
  0xb4   :  { %v4013_v1 = vpop.permute.xlu0 %580 }
  0xb5   :  { %2103 = vbcast.lane.b32.xlu0 %v3984_v55, 272 }
  0xb8   :  { %v4016_v2 = vpop.permute.xlu0 %586 }
  0xb9   :  { %2233 = vbcast.lane.b32.xlu0 %v3909_v31, 264 }
  0xbc   :  { %v4019_v3 = vpop.permute.xlu0 %592 }
  0xbd   :  { %1311 = vbcast.lane.b32.xlu0 %v3927_v37, 296 }
  0xc0   :  { %v4022_v5 = vpop.permute.xlu0 %598 }
  0xc1   :  { %1571 = vbcast.lane.b32.xlu0 %v3968_v50, 280 }
  0xc4   :  { %v4025_v6 = vpop.permute.xlu0 %1224 }
  0xc5   :  { %1910 = vbcast.lane.b32.xlu0 %v3948_v44, 288 }
  0xc8   :  { %v4028_v7 = vpop.permute.xlu0 %1291 }
  0xc9   :  { %2170 = vbcast.lane.b32.xlu0 %v3892_v25, 272 }
  0xcc   :  { %v4031_v8 = vpop.permute.xlu0 %1358 }
  0xcd   :  { %6144 = vst [vmem:[#allocation8_spill] sm:$0xff] %v4031_v8  ;;  %1508 = vbcast.lane.b32.xlu0 %v3958_v47, 288 }
  0xd0   :  { %v4034_v9 = vpop.permute.xlu0 %1760 }
  0xd1   :  { %6145 = vst [vmem:[#allocation9_spill] sm:$0xff] %v4034_v9  ;;  %1780 = vbcast.lane.b32.xlu0 %v3936_v40, 296 }
  0xd4   :  { %v4037_v10 = vpop.permute.xlu0 %1827 }
  0xd5   :  { %6146 = vst [vmem:[#allocation10_spill] sm:$0xff] %v4037_v10  ;;  %1977 = vbcast.lane.b32.xlu0 %v3962_v48, 288 }
  0xd8   :  { %v4040_v11 = vpop.permute.xlu0 %1232 }
  0xd9   :  { %6147 = vst [vmem:[#allocation11_spill] sm:$0xff] %v4040_v11  ;;  %2237 = vbcast.lane.b32.xlu0 %v3909_v31, 272 }
  0xdc   :  { %v4043_v16 = vpop.permute.xlu0 %1425 }
  0xdd   :  { %6148 = vst [vmem:[#allocation12_spill] sm:$0xff] %v4043_v16  ;;  %1315 = vbcast.lane.b32.xlu0 %v3927_v37, 304 }
  0xde   :  { %v3317_v12 = vpop.f32.mrb[0].mxu0 }
  0xdf   :  { %v132_v13 = vpop.f32.mrb[1].mxu0 }
  0xe0   :  { %v3549_v14 = vpack.c.bf16 %v3317_v12, %v132_v13  ;;  %v4049_v18 = vpop.permute.xlu0 %1894  ;;  %v325_v12 = vld [vmem:[%s6110_s7] sm:$0xff]  ;;  %v3553_v13 = vpack.c.bf16 %v235_v49, %v234_v46  ;;  %v236_v46 = vld [vmem:[%s6111_s8 + $0x10] sm:$0xff]  ;;  %v237_v49 = vld [vmem:[%s6111_s8 + $0x18] sm:$0xff] }
  0xe1   :  { %6149 = vst [vmem:[#allocation13_spill] sm:$0xff] %v4049_v18  ;;  %1575 = vbcast.lane.b32.xlu0 %v3968_v50, 288 }
  0xe2   :  { %3550 = vmatprep.subr.bf16.mxu1 %v3549_v14  ;;  %3554 = vmatprep.subr.bf16.mxu0 %v3553_v13 }
  0xe3   :  { %3552 = vmatpush3.bf16.msra.mxu1 %v3549_v14  ;;  %v326_v14 = vld [vmem:[%s6110_s7 + $0x8] sm:$0xff]  ;;  %3556 = vmatpush3.bf16.msra.mxu0 %v3553_v13  ;;  %v238_v13 = vld [vmem:[%s6111_s8 + $0x20] sm:$0xff] }
  0xe4   :  { %v4053_v19 = vpop.permute.xlu0 %1366  ;;  %v3585_v36 = vpack.c.bf16 %v326_v14, %v325_v12  ;;  %v3557_v12 = vpack.c.bf16 %v237_v49, %v236_v46  ;;  %v328_v14 = vld [vmem:[%s6110_s7 + $0x18] sm:$0xff]  ;;  %v329_v46 = vld [vmem:[%s6110_s7 + $0x20] sm:$0xff]  ;;  %v330_v49 = vld [vmem:[%s6110_s7 + $0x28] sm:$0xff] }
  0xe5   :  { %6150 = vst [vmem:[#allocation14_spill] sm:$0xff] %v4053_v19  ;;  %1914 = vbcast.lane.b32.xlu0 %v3948_v44, 296  ;;  %v3589_v33 = vpack.c.bf16 %v328_v14, %v327_v4  ;;  %v452_v14 = vld [vmem:[%s6107_s4 + $0x48] sm:$0xff] }
  0xe6   :  { %3323 = vmatmul.mubr.msk.f32.vlgmr.msra.gmra.mrb[0].mxu1 %vm150_vm3, %v142_v17  ;;  %v448_v17 = vld [vmem:[%s6107_s4 + $0x28] sm:$0xff]  ;;  %3586 = vmatprep.subr.bf16.mxu1 %v3585_v36 }
  0xe7   :  { %491 = vperm.xlu1 %3715, %v448_v17   ;;  %3588 = vmatpush3.bf16.msra.mxu1 %v3585_v36  ;;  %v450_v17 = vld [vmem:[%s6107_s4 + $0x38] sm:$0xff]  ;;  %v239_v36 = vld [vmem:[%s6111_s8 + $0x28] sm:$0xff] }
  0xe8   :  { %v4056_v20 = vpop.permute.xlu0 %1496  ;;  %3558 = vmatprep.subr.bf16.mxu0 %v3557_v12  ;;  %3590 = vmatprep.subr.bf16.mxu1 %v3589_v33  ;;  %v3561_v4 = vpack.c.bf16 %v239_v36, %v238_v13  ;;  %v331_v13 = vld [vmem:[%s6110_s7 + $0x30] sm:$0xff] }
  0xe9   :  { %6151 = vst [vmem:[#allocation15_spill] sm:$0xff] %v4056_v20  ;;  %2174 = vbcast.lane.b32.xlu0 %v3892_v25, 280  ;;  %3560 = vmatpush3.bf16.msra.mxu0 %v3557_v12  ;;  %v241_v12 = vld [vmem:[%s6111_s8 + $0x38] sm:$0xff] }
  0xea   :  { %3562 = vmatprep.subr.bf16.mxu0 %v3561_v4 }
  0xeb   :  { %497 = vperm.xlu1 %3715, %v450_v17   ;;  %3592 = vmatpush3.bf16.msra.mxu1 %v3589_v33  ;;  %v3593_v17 = vpack.c.bf16 %v330_v49, %v329_v46  ;;  %v240_v33 = vld [vmem:[%s6111_s8 + $0x30] sm:$0xff]  ;;  %v332_v46 = vld [vmem:[%s6110_s7 + $0x38] sm:$0xff] }
  0xec   :  { %v4059_v22 = vpop.permute.xlu0 %1835  ;;  %v3565_v36 = vpack.c.bf16 %v241_v12, %v240_v33  ;;  %v454_v49 = vld [vmem:[%s6107_s4 + $0x58] sm:$0xff]  ;;  %v333_v33 = vld [vmem:[%s6110_s7 + $0x40] sm:$0xff] }
  0xed   :  { %6152 = vst [vmem:[#allocation16_spill] sm:$0xff] %v4059_v22  ;;  %1512 = vbcast.lane.b32.xlu0 %v3958_v47, 296  ;;  %3594 = vmatprep.subr.bf16.mxu1 %v3593_v17 }
  0xee   :  { %3564 = vmatpush3.bf16.msra.mxu0 %v3561_v4  ;;  %v242_v4 = vld [vmem:[%s6111_s8 + $0x40] sm:$0xff] }
  0xef   :  { %503 = vperm.xlu1 %3715, %v452_v14   ;;  %3596 = vmatpush3.bf16.msra.mxu1 %v3593_v17  ;;  %v3597_v14 = vpack.c.bf16 %v332_v46, %v331_v13  ;;  %v243_v17 = vld [vmem:[%s6111_s8 + $0x48] sm:$0xff] }
  0xf0   :  { %v4062_v23 = vpop.permute.xlu0 %1965  ;;  %3566 = vmatprep.subr.bf16.mxu0 %v3565_v36  ;;  %v3569_v12 = vpack.c.bf16 %v243_v17, %v242_v4  ;;  %v334_v13 = vld [vmem:[%s6110_s7 + $0x48] sm:$0xff]  ;;  %v335_v4 = vld [vmem:[%s6110_s7 + $0x50] sm:$0xff] }
  0xf1   :  { %6153 = vst [vmem:[#allocation17_spill] sm:$0xff] %v4062_v23  ;;  %1784 = vbcast.lane.b32.xlu0 %v3936_v40, 304  ;;  %3598 = vmatprep.subr.bf16.mxu1 %v3597_v14  ;;  %v456_v46 = vld [vmem:[%s6107_s4 + $0x68] sm:$0xff] }
  0xf2   :  { %3568 = vmatpush3.bf16.msra.mxu0 %v3565_v36  ;;  %v244_v36 = vld [vmem:[%s6111_s8 + $0x50] sm:$0xff] }
  0xf3   :  { %509 = vperm.xlu1 %3715, %v454_v49   ;;  %3600 = vmatpush3.bf16.msra.mxu1 %v3597_v14  ;;  %v3601_v49 = vpack.c.bf16 %v334_v13, %v333_v33  ;;  %v245_v14 = vld [vmem:[%s6111_s8 + $0x58] sm:$0xff] }
  0xf4   :  { %v4065_v24 = vpop.permute.xlu0 %1303  ;;  %3570 = vmatprep.subr.bf16.mxu0 %v3569_v12  ;;  %v3573_v17 = vpack.c.bf16 %v245_v14, %v244_v36  ;;  %v336_v33 = vld [vmem:[%s6110_s7 + $0x58] sm:$0xff]  ;;  %v337_v36 = vld [vmem:[%s6110_s7 + $0x60] sm:$0xff] }
  0xf5   :  { %6154 = vst [vmem:[#allocation18_spill] sm:$0xff] %v4065_v24  ;;  %1981 = vbcast.lane.b32.xlu0 %v3962_v48, 296  ;;  %3602 = vmatprep.subr.bf16.mxu1 %v3601_v49  ;;  %v458_v13 = vld [vmem:[%s6107_s4 + $0x78] sm:$0xff] }
  0xf6   :  { %3572 = vmatpush3.bf16.msra.mxu0 %v3569_v12  ;;  %v246_v12 = vld [vmem:[%s6111_s8 + $0x60] sm:$0xff] }
  0xf7   :  { %515 = vperm.xlu1 %3715, %v456_v46   ;;  %3604 = vmatpush3.bf16.msra.mxu1 %v3601_v49  ;;  %v3605_v46 = vpack.c.bf16 %v336_v33, %v335_v4  ;;  %v247_v49 = vld [vmem:[%s6111_s8 + $0x68] sm:$0xff] }
  0xf8   :  { %v4068_v26 = vpop.permute.xlu0 %1559  ;;  %3574 = vmatprep.subr.bf16.mxu0 %v3573_v17  ;;  %v3577_v14 = vpack.c.bf16 %v247_v49, %v246_v12  ;;  %v338_v4 = vld [vmem:[%s6110_s7 + $0x68] sm:$0xff]  ;;  %v339_v49 = vld [vmem:[%s6110_s7 + $0x70] sm:$0xff] }
  0xf9   :  { %6155 = vst [vmem:[#allocation19_spill] sm:$0xff] %v4068_v26  ;;  %2241 = vbcast.lane.b32.xlu0 %v3909_v31, 280  ;;  %3606 = vmatprep.subr.bf16.mxu1 %v3605_v46  ;;  %v460_v33 = vld [vmem:[%s6108_s5 + $0x8] sm:$0xff]  ;;  %v6123_v26 = vmov 0.0  }
  0xfa   :  { %3576 = vmatpush3.bf16.msra.mxu0 %v3573_v17  ;;  %v248_v17 = vld [vmem:[%s6111_s8 + $0x70] sm:$0xff] }
  0xfb   :  { %521 = vperm.xlu1 %3715, %v458_v13   ;;  %3608 = vmatpush3.bf16.msra.mxu1 %v3605_v46  ;;  %v3609_v13 = vpack.c.bf16 %v338_v4, %v337_v36  ;;  %v249_v46 = vld [vmem:[%s6111_s8 + $0x78] sm:$0xff] }
  0xfc   :  { %v4071_v27 = vpop.permute.xlu0 %1902  ;;  %3578 = vmatprep.subr.bf16.mxu0 %v3577_v14  ;;  %v3581_v12 = vpack.c.bf16 %v249_v46, %v248_v17  ;;  %v340_v36 = vld [vmem:[%s6110_s7 + $0x78] sm:$0xff]  ;;  %v464_v17 = vld [vmem:[%s6108_s5 + $0x28] sm:$0xff] }
  0xfd   :  { %6156 = vst [vmem:[#allocation20_spill] sm:$0xff] %v4071_v27  ;;  %1319 = vbcast.lane.b32.xlu0 %v3927_v37, 312  ;;  %3610 = vmatprep.subr.bf16.mxu1 %v3609_v13  ;;  %v3613_v4 = vpack.c.bf16 %v340_v36, %v339_v49  ;;  %v466_v46 = vld [vmem:[%s6108_s5 + $0x38] sm:$0xff] }
  0xfe   :  { %3580 = vmatpush3.bf16.msra.mxu0 %v3577_v14  ;;  %v462_v14 = vld [vmem:[%s6108_s5 + $0x18] sm:$0xff] }
  0xff   :  { %559 = vperm.xlu1 %3715, %v460_v33   ;;  %3612 = vmatpush3.bf16.msra.mxu1 %v3609_v13 }
 0x100   :  { %v4074_v28 = vpop.permute.xlu0 %2032  ;;  %3582 = vmatprep.subr.bf16.mxu0 %v3581_v12  ;;  %3614 = vmatprep.subr.bf16.mxu1 %v3613_v4 }
 0x101   :  { %6157 = vst [vmem:[#allocation21_spill] sm:$0xff] %v4074_v28  ;;  %1579 = vbcast.lane.b32.xlu0 %v3968_v50, 296 }
 0x102   :  { %3584 = vmatpush3.bf16.msra.mxu0 %v3581_v12  ;;  %v468_v12 = vld [vmem:[%s6108_s5 + $0x48] sm:$0xff] }
 0x103   :  { %565 = vperm.xlu1 %3715, %v462_v14   ;;  %3616 = vmatpush3.bf16.msra.mxu1 %v3613_v4  ;;  %v470_v4 = vld [vmem:[%s6108_s5 + $0x58] sm:$0xff] }
 0x104   :  { %v4077_v29 = vpop.permute.xlu0 %1500 }
 0x105   :  { %6158 = vst [vmem:[#allocation22_spill] sm:$0xff] %v4077_v29  ;;  %1918 = vbcast.lane.b32.xlu0 %v3948_v44, 304 }
 0x107   :  { %571 = vperm.xlu1 %3715, %v464_v17   ;;  %v472_v17 = vld [vmem:[%s6108_s5 + $0x68] sm:$0xff] }
 0x108   :  { %v4080_v30 = vpop.permute.xlu0 %1630 }
 0x109   :  { %6159 = vst [vmem:[#allocation23_spill] sm:$0xff] %v4080_v30  ;;  %2178 = vbcast.lane.b32.xlu0 %v3892_v25, 288  ;;  %v6196_v30 = vlaneseq }
 0x10b   :  { %577 = vperm.xlu1 %3715, %v466_v46  }
 0x10c   :  { %v4083_v32 = vpop.permute.xlu0 %1839 }
 0x10d   :  { %6160 = vst [vmem:[#allocation24_spill] sm:$0xff] %v4083_v32  ;;  %1516 = vbcast.lane.b32.xlu0 %v3958_v47, 304 }
 0x10f   :  { %583 = vperm.xlu1 %3715, %v468_v12   ;;  %v474_v12 = vld [vmem:[%s6108_s5 + $0x78] sm:$0xff] }
 0x110   :  { %v4086_v34 = vpop.permute.xlu0 %2095 }
 0x111   :  { %6161 = vst [vmem:[#allocation25_spill] sm:$0xff] %v4086_v34  ;;  %1788 = vbcast.lane.b32.xlu0 %v3936_v40, 312 }
 0x113   :  { %589 = vperm.xlu1 %3715, %v470_v4  }
 0x114   :  { %v4092_v38 = vpop.permute.xlu0 %1240 }
 0x115   :  { %6162 = vst [vmem:[#allocation26_spill] sm:$0xff] %v4092_v38  ;;  %1985 = vbcast.lane.b32.xlu0 %v3962_v48, 304 }
 0x117   :  { %595 = vperm.xlu1 %3715, %v472_v17  }
 0x118   :  { %v4098_v45 = vpop.permute.xlu0 %1437 }
 0x119   :  { %6163 = vst [vmem:[#allocation27_spill] sm:$0xff] %v4098_v45  ;;  %2245 = vbcast.lane.b32.xlu0 %v3909_v31, 288 }
 0x11b   :  { %601 = vperm.xlu1 %3715, %v474_v12  }
 0x11c   :  { %v4116_v42 = vpop.permute.xlu0 %1693 }
 0x11d   :  { %6164 = vst [vmem:[#allocation28_spill] sm:$0xff] %v4116_v42  ;;  %1323 = vbcast.lane.b32.xlu0 %v3927_v37, 320 }
 0x11f   :  { %1228 = vbcast.lane.b32.xlu1 %v3922_v35, 264 }
 0x120   :  { %v4134_v34 = vpop.permute.xlu0 %1906 }
 0x121   :  { %6165 = vst [vmem:[#allocation29_spill] sm:$0xff] %v4134_v34  ;;  %1583 = vbcast.lane.b32.xlu0 %v3968_v50, 304 }
 0x123   :  { %1295 = vbcast.lane.b32.xlu1 %v3927_v37, 264 }
 0x124   :  { %v4152_v28 = vpop.permute.xlu0 %2162 }
 0x125   :  { %6166 = vst [vmem:[#allocation30_spill] sm:$0xff] %v4152_v28  ;;  %1922 = vbcast.lane.b32.xlu0 %v3948_v44, 312 }
 0x127   :  { %1362 = vbcast.lane.b32.xlu1 %v3932_v39, 264 }
 0x128   :  { %v4170_v28 = vpop.permute.xlu0 %1374 }
 0x129   :  { %6167 = vst [vmem:[#allocation31_spill] sm:$0xff] %v4170_v28  ;;  %2182 = vbcast.lane.b32.xlu0 %v3892_v25, 296 }
 0x12b   :  { %1764 = vbcast.lane.b32.xlu1 %v3936_v40, 264 }
 0x12c   :  { %v4188_v23 = vpop.permute.xlu0 %1634 }
 0x12d   :  { %6168 = vst [vmem:[#allocation32_spill] sm:$0xff] %v4188_v23  ;;  %1520 = vbcast.lane.b32.xlu0 %v3958_v47, 312  ;;  %v4374_v23 = vand.u32 127, %v6196_v30 }
 0x12f   :  { %1831 = vbcast.lane.b32.xlu1 %v3939_v41, 264  ;;  %vm523_vm4 = vcmp.eq.s32.totalorder %v3975_v52, %v4374_v23  ;;  %vm524_vm5 = vcmp.eq.s32.totalorder %v3978_v53, %v4374_v23  ;;  %vm527_vm8 = vcmp.eq.s32.totalorder %v3981_v54, %v4374_v23  ;;  %vm529_vm10 = vcmp.eq.s32.totalorder %v3986_v56, %v4374_v23 }
 0x130   :  { %v4206_v34 = vpop.permute.xlu0 %1843  ;;  %v539_v20 = vsel %vm523_vm4, 1.0, %v6123_v26  ;;  %vm531_vm12 = vcmp.eq.s32.totalorder %v3989_v57, %v4374_v23  ;;  %vm533_vm14 = vcmp.eq.s32.totalorder %v3992_v58, %v4374_v23  ;;  %vm535_vm0 = vcmp.eq.s32.totalorder %v3995_v59, %v4374_v23 }
 0x131   :  { %6169 = vst [vmem:[#allocation33_spill] sm:$0xff] %v4206_v34  ;;  %1792 = vbcast.lane.b32.xlu0 %v3936_v40, 320  ;;  %vm537_vm2 = vcmp.eq.s32.totalorder %v3998_v60, %v4374_v23 }
 0x133   :  { %1299 = vbcast.lane.b32.xlu1 %v3927_v37, 272 }
 0x134   :  { %v4224_v27 = vpop.permute.xlu0 %2103 }
 0x135   :  { %6170 = vst [vmem:[#allocation34_spill] sm:$0xff] %v4224_v27  ;;  %1989 = vbcast.lane.b32.xlu0 %v3962_v48, 312 }
 0x137   :  { %1429 = vbcast.lane.b32.xlu1 %v3945_v43, 264 }
 0x138   :  { %v4239_v33 = vpop.permute.xlu0 %2233 }
 0x139   :  { %2249 = vbcast.lane.b32.xlu0 %v3909_v31, 296 }
 0x13b   :  { %1898 = vbcast.lane.b32.xlu1 %v3948_v44, 264 }
 0x13c   :  { %v4245_v13 = vpop.permute.xlu0 %1311 }
 0x13d   :  { %6171 = vst [vmem:[#allocation35_spill] sm:$0xff] %v4245_v13  ;;  %1327 = vbcast.lane.b32.xlu0 %v3927_v37, 328 }
 0x13f   :  { %1492 = vbcast.lane.b32.xlu1 %v3958_v47, 256 }
 0x140   :  { %v4254_v49 = vpop.permute.xlu0 %1571 }
 0x141   :  { %6172 = vst [vmem:[#allocation36_spill] sm:$0xff] %v4254_v49  ;;  %1587 = vbcast.lane.b32.xlu0 %v3968_v50, 312 }
 0x143   :  { %1768 = vbcast.lane.b32.xlu1 %v3936_v40, 272 }
 0x144   :  { %v4260_v36 = vpop.permute.xlu0 %1910 }
 0x145   :  { %6173 = vst [vmem:[#allocation37_spill] sm:$0xff] %v4260_v36  ;;  %1926 = vbcast.lane.b32.xlu0 %v3948_v44, 320 }
 0x147   :  { %1961 = vbcast.lane.b32.xlu1 %v3962_v48, 256 }
 0x148   :  { %v4266_v14 = vpop.permute.xlu0 %2170 }
 0x149   :  { %6174 = vst [vmem:[#allocation38_spill] sm:$0xff] %v4266_v14  ;;  %2186 = vbcast.lane.b32.xlu0 %v3892_v25, 304 }
 0x14b   :  { %1236 = vbcast.lane.b32.xlu1 %v3922_v35, 280 }
 0x14c   :  { %v4272_v46 = vpop.permute.xlu0 %1508 }
 0x14d   :  { %6175 = vst [vmem:[#allocation39_spill] sm:$0xff] %v4272_v46  ;;  %1524 = vbcast.lane.b32.xlu0 %v3958_v47, 320 }
 0x14f   :  { %1433 = vbcast.lane.b32.xlu1 %v3945_v43, 272 }
 0x150   :  { %v4278_v27 = vpop.permute.xlu0 %1780 }
 0x151   :  { %6176 = vst [vmem:[#allocation40_spill] sm:$0xff] %v4278_v27  ;;  %1796 = vbcast.lane.b32.xlu0 %v3936_v40, 328  ;;  %v4356_v27 = vpop.permute.xlu1 %482 }
 0x152   :  { %vm525_vm6 = vcmp.eq.s32.totalorder %v4356_v27, %v4374_v23 }
 0x153   :  { %1563 = vbcast.lane.b32.xlu1 %v3968_v50, 264 }
 0x154   :  { %v4281_v14 = vpop.permute.xlu0 %1977 }
 0x155   :  { %6177 = vst [vmem:[#allocation41_spill] sm:$0xff] %v4281_v14  ;;  %1993 = vbcast.lane.b32.xlu0 %v3962_v48, 320 }
 0x157   :  { %2028 = vbcast.lane.b32.xlu1 %v3972_v51, 256 }
 0x158   :  { %v4285_v4 = vpop.permute.xlu0 %2237 }
 0x159   :  { %6178 = vst [vmem:[#allocation42_spill] sm:$0xff] %v4285_v4  ;;  %2253 = vbcast.lane.b32.xlu0 %v3909_v31, 304 }
 0x15b   :  { %1370 = vbcast.lane.b32.xlu1 %v3932_v39, 280 }
 0x15c   :  { %v4289_v17 = vpop.permute.xlu0 %1315 }
 0x15d   :  { %6179 = vst [vmem:[#allocation43_spill] sm:$0xff] %v4289_v17  ;;  %1331 = vbcast.lane.b32.xlu0 %v3927_v37, 336 }
 0x15f   :  { %1626 = vbcast.lane.b32.xlu1 %v3870_v15, 256 }
 0x160   :  { %v4293_v36 = vpop.permute.xlu0 %1575 }
 0x161   :  { %6180 = vst [vmem:[#allocation44_spill] sm:$0xff] %v4293_v36  ;;  %1591 = vbcast.lane.b32.xlu0 %v3968_v50, 320 }
 0x163   :  { %1772 = vbcast.lane.b32.xlu1 %v3936_v40, 280 }
 0x164   :  { %v4297_v12 = vpop.permute.xlu0 %1914 }
 0x165   :  { %6181 = vst [vmem:[#allocation45_spill] sm:$0xff] %v4297_v12  ;;  %1930 = vbcast.lane.b32.xlu0 %v3948_v44, 328 }
 0x167   :  { %1969 = vbcast.lane.b32.xlu1 %v3962_v48, 272 }
 0x168   :  { %v4301_v14 = vpop.permute.xlu0 %2174 }
 0x169   :  { %6182 = vst [vmem:[#allocation46_spill] sm:$0xff] %v4301_v14  ;;  %2190 = vbcast.lane.b32.xlu0 %v3892_v25, 312 }
 0x16b   :  { %2099 = vbcast.lane.b32.xlu1 %v3984_v55, 264 }
 0x16c   :  { %v4305_v18 = vpop.permute.xlu0 %1512 }
 0x16d   :  { %6183 = vst [vmem:[#allocation47_spill] sm:$0xff] %v4305_v18  ;;  %1528 = vbcast.lane.b32.xlu0 %v3958_v47, 328 }
 0x16f   :  { %1307 = vbcast.lane.b32.xlu1 %v3927_v37, 288 }
 0x170   :  { %v4309_v34 = vpop.permute.xlu0 %1784 }
 0x171   :  { %6184 = vst [vmem:[#allocation48_spill] sm:$0xff] %v4309_v34  ;;  %1800 = vbcast.lane.b32.xlu0 %v3936_v40, 336 }
 0x173   :  { %1567 = vbcast.lane.b32.xlu1 %v3968_v50, 272 }
 0x174   :  { %v4313_v12 = vpop.permute.xlu0 %1981 }
 0x175   :  { %6185 = vst [vmem:[#allocation49_spill] sm:$0xff] %v4313_v12  ;;  %1997 = vbcast.lane.b32.xlu0 %v3962_v48, 328 }
 0x177   :  { %1697 = vbcast.lane.b32.xlu1 %v3884_v21, 264 }
 0x178   :  { %v4317_v14 = vpop.permute.xlu0 %2241 }
 0x179   :  { %6186 = vst [vmem:[#allocation50_spill] sm:$0xff] %v4317_v14  ;;  %2257 = vbcast.lane.b32.xlu0 %v3909_v31, 312 }
 0x17b   :  { %2036 = vbcast.lane.b32.xlu1 %v3972_v51, 272 }
 0x17c   :  { %v4323_v32 = vpop.permute.xlu0 %1319 }
 0x17d   :  { %1335 = vbcast.lane.b32.xlu0 %v3927_v37, 344  ;;  %6187 = vst [vmem:[#allocation51_spill] sm:$0xff] %v4323_v32 }
 0x17f   :  { %2166 = vbcast.lane.b32.xlu1 %v3892_v25, 264 }
 0x180   :  { %v4327_v12 = vpop.permute.xlu0 %1579 }
 0x181   :  { %1595 = vbcast.lane.b32.xlu0 %v3968_v50, 328  ;;  %6188 = vst [vmem:[#allocation52_spill] sm:$0xff] %v4327_v12  ;;  %v3139_v12 = vld [vmem:[%s6106_s3] ss:$0 sm:$0xff] }
 0x183   :  { %1504 = vbcast.lane.b32.xlu1 %v3958_v47, 280 }
 0x184   :  { %v4333_v22 = vpop.permute.xlu0 %1918 }
 0x185   :  { %1934 = vbcast.lane.b32.xlu0 %v3948_v44, 336  ;;  %6189 = vst [vmem:[#allocation53_spill] sm:$0xff] %v4333_v22 }
 0x187   :  { %1776 = vbcast.lane.b32.xlu1 %v3936_v40, 288 }
 0x188   :  { %v4337_v10 = vpop.permute.xlu0 %2178 }
 0x189   :  { %2194 = vbcast.lane.b32.xlu0 %v3892_v25, 320  ;;  %6190 = vst [vmem:[#allocation54_spill] sm:$0xff] %v4337_v10 }
 0x18b   :  { %1973 = vbcast.lane.b32.xlu1 %v3962_v48, 280 }
 0x18c   :  { %v4343_v34 = vpop.permute.xlu0 %1516 }
 0x18d   :  { %1532 = vbcast.lane.b32.xlu0 %v3958_v47, 336  ;;  %6191 = vst [vmem:[#allocation55_spill] sm:$0xff] %v4343_v34 }
 0x18f   :  { %2229 = vbcast.lane.b32.xlu1 %v3909_v31, 256 }
 0x190   :  { %v4347_v22 = vpop.permute.xlu0 %1788 }
 0x191   :  { %1804 = vbcast.lane.b32.xlu0 %v3936_v40, 344  ;;  %6192 = vst [vmem:[#allocation56_spill] sm:$0xff] %v4347_v22  ;;  %v4363_v22 = vpop.permute.xlu1 %485 }
 0x192   :  { %vm526_vm7 = vcmp.eq.s32.totalorder %v4363_v22, %v4374_v23 }
 0x193   :  { %1244 = vbcast.lane.b32.xlu1 %v3922_v35, 296 }
 0x194   :  { %v4353_v10 = vpop.permute.xlu0 %1985 }
 0x195   :  { %2001 = vbcast.lane.b32.xlu0 %v3962_v48, 336  ;;  %6193 = vst [vmem:[#allocation57_spill] sm:$0xff] %v4353_v10  ;;  %v4370_v10 = vpop.permute.xlu1 %491 }
 0x196   :  { %vm528_vm9 = vcmp.eq.s32.totalorder %v4370_v10, %v4374_v23 }
 0x197   :  { %1441 = vbcast.lane.b32.xlu1 %v3945_v43, 288 }
 0x198   :  { %v4359_v9 = vpop.permute.xlu0 %2245 }
 0x199   :  { %2261 = vbcast.lane.b32.xlu0 %v3909_v31, 320  ;;  %6194 = vst [vmem:[#allocation58_spill] sm:$0xff] %v4359_v9  ;;  %v4385_v29 = vpop.permute.xlu1 %497 }
 0x19a   :  { %vm530_vm11 = vcmp.eq.s32.totalorder %v4385_v29, %v4374_v23 }
 0x19b   :  { %1701 = vbcast.lane.b32.xlu1 %v3884_v21, 272 }
 0x19c   :  { %v4367_v42 = vpop.permute.xlu0 %1323 }
 0x19d   :  { %1339 = vbcast.lane.b32.xlu0 %v3927_v37, 352  ;;  %6195 = vst [vmem:[#allocation59_spill] sm:$0xff] %v4367_v42  ;;  %v4394_v52 = vpop.permute.xlu1 %503 }
 0x19e   :  { %vm532_vm13 = vcmp.eq.s32.totalorder %v4394_v52, %v4374_v23 }
 0x19f   :  { %2040 = vbcast.lane.b32.xlu1 %v3972_v51, 280 }
 0x1a0   :  { %v4379_v36 = vpop.permute.xlu0 %1583 }
 0x1a1   :  { %1599 = vbcast.lane.b32.xlu0 %v3968_v50, 336  ;;  %6197 = vst [vmem:[#allocation60_spill] sm:$0xff] %v4379_v36 }
 0x1a3   :  { %1378 = vbcast.lane.b32.xlu1 %v3932_v39, 296 }
 0x1a4   :  { %v4390_v42 = vpop.permute.xlu0 %1922 }
 0x1a5   :  { %1938 = vbcast.lane.b32.xlu0 %v3948_v44, 344  ;;  %6198 = vst [vmem:[#allocation61_spill] sm:$0xff] %v4390_v42 }
 0x1a7   :  { %1638 = vbcast.lane.b32.xlu1 %v3870_v15, 280 }
 0x1a9   :  { %2198 = vbcast.lane.b32.xlu0 %v3892_v25, 328 }
 0x1ab   :  { %1847 = vbcast.lane.b32.xlu1 %v3939_v41, 296 }
 0x1ad   :  { %1536 = vbcast.lane.b32.xlu0 %v3958_v47, 344 }
 0x1af   :  { %2107 = vbcast.lane.b32.xlu1 %v3984_v55, 280 }
 0x1b1   :  { %1808 = vbcast.lane.b32.xlu0 %v3936_v40, 352 }
 0x1b3   :  { %1248 = vbcast.lane.b32.xlu1 %v3922_v35, 304 }
 0x1b5   :  { %2005 = vbcast.lane.b32.xlu0 %v3962_v48, 344 }
 0x1b9   :  { %v3324_v49 = vpop.f32.mrb[0].mxu1  ;;  %2265 = vbcast.lane.b32.xlu0 %v3909_v31, 328 }
 0x1ba   :  { %v229_v34 = vadd.f32 %v3324_v49, %v3139_v12  ;;  %v223_v18 = vpop.f32.mrb[1].mxu1 }
 0x1bb   :  { %v224_v46 = vadd.f32 %v3139_v12, %v223_v18  ;;  %v4397_v18 = vpop.permute.xlu0 %2182 }
 0x1bc   :  { %v233_v36 = vmax.f32 %v229_v34, 0.0  ;;  %6199 = vst [vmem:[#allocation62_spill] sm:$0xff] %v4397_v18  ;;  %v4401_v34 = vpop.permute.xlu1 %509  ;;  %1445 = vbcast.lane.b32.xlu1 %v3945_v43, 296 }
 0x1bd   :  { %v232_v30 = vmax.f32 %v224_v46, 0.0  ;;  %1343 = vbcast.lane.b32.xlu0 %v3927_v37, 360  ;;  %vm534_vm15 = vcmp.eq.s32.totalorder %v4401_v34, %v4374_v23 }
 0x1bf   :  { %3357 = vmatprep.mubr.f32.mxu0 %v232_v30  ;;  %3392 = vmatprep.mubr.f32.mxu1 %v232_v30  ;;  %v4405_v49 = vpop.permute.xlu0 %1520 }
 0x1c0   :  { %3358 = vmatmul.mubr.f32.vlgmr.msra.gmra.mrb[2].mxu0 %v233_v36  ;;  %3393 = vmatmul.mubr.f32.vlgmr.msra.gmra.mrb[2].mxu1 %v233_v36  ;;  %6200 = vst [vmem:[#allocation63_spill] sm:$0xff] %v4405_v49 }
 0x1c1   :  { %3399 = vmatprep.mubr.msk.f32.mxu0 %vm150_vm3, %v539_v20  ;;  %1603 = vbcast.lane.b32.xlu0 %v3968_v50, 344  ;;  %v4408_v20 = vpop.permute.xlu1 %515 }
 0x1c2   :  { %1705 = vbcast.lane.b32.xlu1 %v3884_v21, 280  ;;  %vm536_vm1 = vcmp.eq.s32.totalorder %v4408_v20, %v4374_v23 }
 0x1c3   :  { %v4411_v36 = vpop.permute.xlu0 %1792 }
 0x1c4   :  { %6201 = vst [vmem:[#allocation64_spill] sm:$0xff] %v4411_v36 }
 0x1c5   :  { %1942 = vbcast.lane.b32.xlu0 %v3948_v44, 352  ;;  %v4415_v46 = vpop.permute.xlu1 %521 }
 0x1c6   :  { %2044 = vbcast.lane.b32.xlu1 %v3972_v51, 288  ;;  %vm538_vm4 = vcmp.eq.s32.totalorder %v4415_v46, %v4374_v23 }
 0x1c7   :  { %v4419_v12 = vpop.permute.xlu0 %1989 }
 0x1c8   :  { %6202 = vst [vmem:[#allocation65_spill] sm:$0xff] %v4419_v12 }
 0x1c9   :  { %2202 = vbcast.lane.b32.xlu0 %v3892_v25, 336  ;;  %v4422_v30 = vpop.permute.xlu1 %559 }
 0x1ca   :  { %1382 = vbcast.lane.b32.xlu1 %v3932_v39, 304 }
 0x1cb   :  { %v4425_v26 = vpop.permute.xlu0 %2249 }
 0x1cc   :  { %6203 = vst [vmem:[#allocation66_spill] sm:$0xff] %v4425_v26 }
 0x1cd   :  { %1540 = vbcast.lane.b32.xlu0 %v3958_v47, 352  ;;  %v4429_v18 = vpop.permute.xlu1 %565 }
 0x1ce   :  { %1642 = vbcast.lane.b32.xlu1 %v3870_v15, 288 }
 0x1cf   :  { %v4433_v42 = vpop.permute.xlu0 %1327 }
 0x1d0   :  { %6204 = vst [vmem:[#allocation67_spill] sm:$0xff] %v4433_v42 }
 0x1d1   :  { %1812 = vbcast.lane.b32.xlu0 %v3936_v40, 360  ;;  %v4436_v12 = vpop.permute.xlu1 %571 }
 0x1d2   :  { %1851 = vbcast.lane.b32.xlu1 %v3939_v41, 304 }
 0x1d3   :  { %v4439_v36 = vpop.permute.xlu0 %1587 }
 0x1d4   :  { %6205 = vst [vmem:[#allocation68_spill] sm:$0xff] %v4439_v36 }
 0x1d5   :  { %2009 = vbcast.lane.b32.xlu0 %v3962_v48, 352  ;;  %v4443_v49 = vpop.permute.xlu1 %577 }
 0x1d6   :  { %2111 = vbcast.lane.b32.xlu1 %v3984_v55, 288 }
 0x1d7   :  { %v4447_v32 = vpop.permute.xlu0 %1926 }
 0x1d8   :  { %6206 = vst [vmem:[#allocation69_spill] sm:$0xff] %v4447_v32 }
 0x1d9   :  { %2269 = vbcast.lane.b32.xlu0 %v3909_v31, 336  ;;  %v4450_v42 = vpop.permute.xlu1 %583 }
 0x1da   :  { %1252 = vbcast.lane.b32.xlu1 %v3922_v35, 312 }
 0x1db   :  { %v4453_v17 = vpop.permute.xlu0 %2186 }
 0x1dc   :  { %6207 = vst [vmem:[#allocation70_spill] sm:$0xff] %v4453_v17 }
 0x1dd   :  { %1347 = vbcast.lane.b32.xlu0 %v3927_v37, 368  ;;  %v4457_v36 = vpop.permute.xlu1 %589 }
 0x1de   :  { %1449 = vbcast.lane.b32.xlu1 %v3945_v43, 304 }
 0x1df   :  { %v4461_v28 = vpop.permute.xlu0 %1524 }
 0x1e0   :  { %6208 = vst [vmem:[#allocation71_spill] sm:$0xff] %v4461_v28 }
 0x1e1   :  { %1607 = vbcast.lane.b32.xlu0 %v3968_v50, 352  ;;  %v4464_v32 = vpop.permute.xlu1 %595 }
 0x1e2   :  { %1709 = vbcast.lane.b32.xlu1 %v3884_v21, 288 }
 0x1e3   :  { %v4467_v13 = vpop.permute.xlu0 %1796 }
 0x1e4   :  { %6209 = vst [vmem:[#allocation72_spill] sm:$0xff] %v4467_v13 }
 0x1e5   :  { %1946 = vbcast.lane.b32.xlu0 %v3948_v44, 360  ;;  %v4471_v17 = vpop.permute.xlu1 %601 }
 0x1e6   :  { %2048 = vbcast.lane.b32.xlu1 %v3972_v51, 296 }
 0x1e7   :  { %v4475_v38 = vpop.permute.xlu0 %1993 }
 0x1e8   :  { %6210 = vst [vmem:[#allocation73_spill] sm:$0xff] %v4475_v38 }
 0x1e9   :  { %2206 = vbcast.lane.b32.xlu0 %v3892_v25, 344  ;;  %v4477_v28 = vpop.permute.xlu1 %1228 }
 0x1ea   :  { %1386 = vbcast.lane.b32.xlu1 %v3932_v39, 312 }
 0x1eb   :  { %v4483_v13 = vpop.permute.xlu0 %2253 }
 0x1ec   :  { %6211 = vst [vmem:[#allocation74_spill] sm:$0xff] %v4483_v13 }
 0x1ed   :  { %1544 = vbcast.lane.b32.xlu0 %v3958_v47, 360  ;;  %v4481_v9 = vpop.permute.xlu1 %1295 }
 0x1ee   :  { %1646 = vbcast.lane.b32.xlu1 %v3870_v15, 296 }
 0x1ef   :  { %v4491_v38 = vpop.permute.xlu0 %1331 }
 0x1f0   :  { %6212 = vst [vmem:[#allocation75_spill] sm:$0xff] %v4491_v38 }
 0x1f1   :  { %1816 = vbcast.lane.b32.xlu0 %v3936_v40, 368 }
 0x1f3   :  { %v4497_v45 = vpop.permute.xlu0 %1591 }
 0x1f4   :  { %6214 = vst [vmem:[#allocation77_spill] sm:$0xff] %v4497_v45 }
 0x1f5   :  { %2013 = vbcast.lane.b32.xlu0 %v3962_v48, 360 }
 0x1f7   :  { %v4507_v38 = vpop.permute.xlu0 %1930 }
 0x1f8   :  { %6217 = vst [vmem:[#allocation80_spill] sm:$0xff] %v4507_v38 }
 0x1f9   :  { %2273 = vbcast.lane.b32.xlu0 %v3909_v31, 344 }
 0x1fd   :  { %1351 = vbcast.lane.b32.xlu0 %v3927_v37, 376  ;;  %v4487_v37 = vpop.permute.xlu1 %1362  ;;  %1855 = vbcast.lane.b32.xlu1 %v3939_v41, 312 }
 0x201   :  { %1611 = vbcast.lane.b32.xlu0 %v3968_v50, 360  ;;  %v4494_v26 = vpop.permute.xlu1 %1764  ;;  %2115 = vbcast.lane.b32.xlu1 %v3984_v55, 296 }
 0x202   :  { %6213 = vst [vmem:[#allocation76_spill] sm:$0xff] %v4494_v26  ;;  %v4513_v26 = vpop.permute.xlu0 %2190 }
 0x203   :  { %6219 = vst [vmem:[#allocation82_spill] sm:$0xff] %v4513_v26 }
 0x205   :  { %1950 = vbcast.lane.b32.xlu0 %v3948_v44, 368  ;;  %v4500_v13 = vpop.permute.xlu1 %1831  ;;  %1256 = vbcast.lane.b32.xlu1 %v3922_v35, 320 }
 0x206   :  { %6215 = vst [vmem:[#allocation78_spill] sm:$0xff] %v4500_v13  ;;  %v4523_v38 = vpop.permute.xlu0 %1528 }
 0x207   :  { %6222 = vst [vmem:[#allocation85_spill] sm:$0xff] %v4523_v38 }
 0x209   :  { %2210 = vbcast.lane.b32.xlu0 %v3892_v25, 352  ;;  %v4504_v14 = vpop.permute.xlu1 %1299  ;;  %1453 = vbcast.lane.b32.xlu1 %v3945_v43, 312 }
 0x20a   :  { %6216 = vst [vmem:[#allocation79_spill] sm:$0xff] %v4504_v14  ;;  %v4529_v26 = vpop.permute.xlu0 %1800 }
 0x20b   :  { %6224 = vst [vmem:[#allocation87_spill] sm:$0xff] %v4529_v26 }
 0x20d   :  { %1548 = vbcast.lane.b32.xlu0 %v3958_v47, 368 }
 0x20e   :  { %v4539_v38 = vpop.permute.xlu0 %1997 }
 0x20f   :  { %6227 = vst [vmem:[#allocation90_spill] sm:$0xff] %v4539_v38 }
 0x211   :  { %1820 = vbcast.lane.b32.xlu0 %v3936_v40, 376  ;;  %v4510_v40 = vpop.permute.xlu1 %1429  ;;  %1713 = vbcast.lane.b32.xlu1 %v3884_v21, 296 }
 0x212   :  { %6218 = vst [vmem:[#allocation81_spill] sm:$0xff] %v4510_v40  ;;  %v4545_v26 = vpop.permute.xlu0 %2257 }
 0x213   :  { %6229 = vst [vmem:[#allocation92_spill] sm:$0xff] %v4545_v26 }
 0x215   :  { %2017 = vbcast.lane.b32.xlu0 %v3962_v48, 368  ;;  %v4516_v13 = vpop.permute.xlu1 %1898  ;;  %2052 = vbcast.lane.b32.xlu1 %v3972_v51, 304 }
 0x216   :  { %6220 = vst [vmem:[#allocation83_spill] sm:$0xff] %v4516_v13  ;;  %v4555_v38 = vpop.permute.xlu0 %1335 }
 0x217   :  { %6232 = vst [vmem:[#allocation95_spill] sm:$0xff] %v4555_v38 }
 0x219   :  { %2277 = vbcast.lane.b32.xlu0 %v3909_v31, 352  ;;  %v4520_v45 = vpop.permute.xlu1 %1492  ;;  %1390 = vbcast.lane.b32.xlu1 %v3932_v39, 320 }
 0x21a   :  { %6221 = vst [vmem:[#allocation84_spill] sm:$0xff] %v4520_v45  ;;  %v3035_v45 = vld [vmem:[#allocation3] sm:$0x1]  ;;  %v4561_v26 = vpop.permute.xlu0 %1595 }
 0x21b   :  { %6234 = vst [vmem:[#allocation97_spill] sm:$0xff] %v4561_v26 }
 0x21d   :  { %1615 = vbcast.lane.b32.xlu0 %v3968_v50, 368  ;;  %v4526_v19 = vpop.permute.xlu1 %1768  ;;  %1650 = vbcast.lane.b32.xlu1 %v3870_v15, 304 }
 0x21e   :  { %6223 = vst [vmem:[#allocation86_spill] sm:$0xff] %v4526_v19 }
 0x221   :  { %1954 = vbcast.lane.b32.xlu0 %v3948_v44, 376  ;;  %v4532_v44 = vpop.permute.xlu1 %1961  ;;  %1859 = vbcast.lane.b32.xlu1 %v3939_v41, 320 }
 0x222   :  { %6225 = vst [vmem:[#allocation88_spill] sm:$0xff] %v4532_v44 }
 0x225   :  { %2214 = vbcast.lane.b32.xlu0 %v3892_v25, 360  ;;  %v4536_v13 = vpop.permute.xlu1 %1236  ;;  %2119 = vbcast.lane.b32.xlu1 %v3984_v55, 304 }
 0x226   :  { %6226 = vst [vmem:[#allocation89_spill] sm:$0xff] %v4536_v13 }
 0x229   :  { %1682 = vbcast.lane.b32.xlu0 %v3870_v15, 368  ;;  %v4542_v19 = vpop.permute.xlu1 %1433  ;;  %1260 = vbcast.lane.b32.xlu1 %v3922_v35, 328 }
 0x22a   :  { %6228 = vst [vmem:[#allocation91_spill] sm:$0xff] %v4542_v19 }
 0x22d   :  { %2151 = vbcast.lane.b32.xlu0 %v3984_v55, 368  ;;  %v4548_v44 = vpop.permute.xlu1 %1563  ;;  %1457 = vbcast.lane.b32.xlu1 %v3945_v43, 320 }
 0x22e   :  { %6230 = vst [vmem:[#allocation93_spill] sm:$0xff] %v4548_v44 }
 0x231   :  { %1619 = vbcast.lane.b32.xlu0 %v3968_v50, 376  ;;  %v4552_v50 = vpop.permute.xlu1 %2028  ;;  %1717 = vbcast.lane.b32.xlu1 %v3884_v21, 304 }
 0x232   :  { %6231 = vst [vmem:[#allocation94_spill] sm:$0xff] %v4552_v50 }
 0x235   :  { %2088 = vbcast.lane.b32.xlu0 %v3972_v51, 376  ;;  %v4558_v19 = vpop.permute.xlu1 %1370  ;;  %2056 = vbcast.lane.b32.xlu1 %v3972_v51, 312 }
 0x236   :  { %6233 = vst [vmem:[#allocation96_spill] sm:$0xff] %v4558_v19 }
 0x239   :  { %1686 = vbcast.lane.b32.xlu0 %v3870_v15, 376  ;;  %v4563_v44 = vpop.permute.xlu1 %1626  ;;  %1394 = vbcast.lane.b32.xlu1 %v3932_v39, 328 }
 0x23a   :  { %6235 = vst [vmem:[#allocation98_spill] sm:$0xff] %v4563_v44 }
 0x23d   :  { %2285 = vbcast.lane.b32.xlu0 %v3909_v31, 368  ;;  %v4566_v14 = vpop.permute.xlu1 %1772  ;;  %1654 = vbcast.lane.b32.xlu1 %v3870_v15, 312 }
 0x23e   :  { %6236 = vst [vmem:[#allocation99_spill] sm:$0xff] %v4566_v14 }
 0x241   :  { %2222 = vbcast.lane.b32.xlu0 %v3892_v25, 376  ;;  %v4569_v50 = vpop.permute.xlu1 %1969  ;;  %1863 = vbcast.lane.b32.xlu1 %v3939_v41, 328 }
 0x242   :  { %6237 = vst [vmem:[#allocation100_spill] sm:$0xff] %v4569_v50 }
 0x245   :  { %3038 = vperm.xlu0 %3714, %v3035_v45   ;;  %v4572_v38 = vpop.permute.xlu1 %2099  ;;  %2123 = vbcast.lane.b32.xlu1 %v3984_v55, 312 }
 0x246   :  { %6238 = vst [vmem:[#allocation101_spill] sm:$0xff] %v4572_v38 }
 0x249   :  { %v4575_v11 = vpop.permute.xlu1 %1307  ;;  %1264 = vbcast.lane.b32.xlu1 %v3922_v35, 336 }
 0x24a   :  { %6239 = vst [vmem:[#allocation102_spill] sm:$0xff] %v4575_v11 }
 0x24d   :  { %v4578_v45 = vpop.permute.xlu1 %1567  ;;  %1461 = vbcast.lane.b32.xlu1 %v3945_v43, 328 }
 0x24e   :  { %6240 = vst [vmem:[#allocation103_spill] sm:$0xff] %v4578_v45 }
 0x251   :  { %v4581_v44 = vpop.permute.xlu1 %1697  ;;  %1721 = vbcast.lane.b32.xlu1 %v3884_v21, 312 }
 0x252   :  { %6241 = vst [vmem:[#allocation104_spill] sm:$0xff] %v4581_v44  ;;  %v418_v44 = vld [vmem:[%s6113_s10] sm:$0xff] }
 0x255   :  { %v4584_v14 = vpop.permute.xlu1 %2036  ;;  %2060 = vbcast.lane.b32.xlu1 %v3972_v51, 320 }
 0x256   :  { %6242 = vst [vmem:[#allocation105_spill] sm:$0xff] %v4584_v14  ;;  %v419_v14 = vld [vmem:[%s6113_s10 + $0x8] sm:$0xff] }
 0x257   :  { %v3625_v45 = vpack.c.bf16 %v419_v14, %v418_v44  ;;  %v422_v14 = vld [vmem:[%s6113_s10 + $0x20] sm:$0xff]  ;;  %v423_v44 = vld [vmem:[%s6113_s10 + $0x28] sm:$0xff] }
 0x259   :  { %v4587_v50 = vpop.permute.xlu1 %2166  ;;  %3626 = vmatprep.subr.bf16.mxu1 %v3625_v45  ;;  %1398 = vbcast.lane.b32.xlu1 %v3932_v39, 336 }
 0x25a   :  { %6243 = vst [vmem:[#allocation106_spill] sm:$0xff] %v4587_v50  ;;  %3628 = vmatpush3.bf16.msra.mxu1 %v3625_v45  ;;  %v3633_v45 = vpack.c.bf16 %v423_v44, %v422_v14  ;;  %v426_v14 = vld [vmem:[%s6113_s10 + $0x40] sm:$0xff]  ;;  %v427_v44 = vld [vmem:[%s6113_s10 + $0x48] sm:$0xff] }
 0x25d   :  { %v4590_v38 = vpop.permute.xlu1 %1504  ;;  %1658 = vbcast.lane.b32.xlu1 %v3870_v15, 320 }
 0x25e   :  { %6244 = vst [vmem:[#allocation107_spill] sm:$0xff] %v4590_v38  ;;  %v421_v38 = vld [vmem:[%s6113_s10 + $0x18] sm:$0xff] }
 0x261   :  { %v4593_v26 = vpop.permute.xlu1 %1776  ;;  %1867 = vbcast.lane.b32.xlu1 %v3939_v41, 336 }
 0x262   :  { %6245 = vst [vmem:[#allocation108_spill] sm:$0xff] %v4593_v26  ;;  %v420_v26 = vld [vmem:[%s6113_s10 + $0x10] sm:$0xff] }
 0x263   :  { %v3629_v11 = vpack.c.bf16 %v421_v38, %v420_v26  ;;  %v424_v26 = vld [vmem:[%s6113_s10 + $0x30] sm:$0xff] }
 0x265   :  { %v4602_v50 = vpop.permute.xlu1 %1973  ;;  %3630 = vmatprep.subr.bf16.mxu1 %v3629_v11  ;;  %2127 = vbcast.lane.b32.xlu1 %v3984_v55, 320 }
 0x266   :  { %6246 = vst [vmem:[#allocation109_spill] sm:$0xff] %v4602_v50  ;;  %3632 = vmatpush3.bf16.msra.mxu1 %v3629_v11  ;;  %v425_v11 = vld [vmem:[%s6113_s10 + $0x38] sm:$0xff] }
 0x267   :  { %3634 = vmatprep.subr.bf16.mxu1 %v3633_v45  ;;  %v3637_v38 = vpack.c.bf16 %v425_v11, %v424_v26  ;;  %v428_v26 = vld [vmem:[%s6113_s10 + $0x50] sm:$0xff]  ;;  %v429_v11 = vld [vmem:[%s6113_s10 + $0x58] sm:$0xff] }
 0x269   :  { %v4611_v4 = vpop.permute.xlu1 %2229  ;;  %1268 = vbcast.lane.b32.xlu1 %v3922_v35, 344 }
 0x26a   :  { %3636 = vmatpush3.bf16.msra.mxu1 %v3633_v45  ;;  %v3641_v45 = vpack.c.bf16 %v427_v44, %v426_v14  ;;  %v430_v14 = vld [vmem:[%s6113_s10 + $0x60] sm:$0xff]  ;;  %v431_v44 = vld [vmem:[%s6113_s10 + $0x68] sm:$0xff] }
 0x26b   :  { %3638 = vmatprep.subr.bf16.mxu1 %v3637_v38 }
 0x26d   :  { %v4620_v50 = vpop.permute.xlu1 %1244  ;;  %1465 = vbcast.lane.b32.xlu1 %v3945_v43, 336 }
 0x26e   :  { %6247 = vst [vmem:[#allocation110_spill] sm:$0xff] %v4620_v50  ;;  %3640 = vmatpush3.bf16.msra.mxu1 %v3637_v38  ;;  %v3645_v38 = vpack.c.bf16 %v429_v11, %v428_v26 }
 0x26f   :  { %3642 = vmatprep.subr.bf16.mxu1 %v3641_v45 }
 0x271   :  { %v4629_v40 = vpop.permute.xlu1 %1441  ;;  %1725 = vbcast.lane.b32.xlu1 %v3884_v21, 320 }
 0x272   :  { %6248 = vst [vmem:[#allocation111_spill] sm:$0xff] %v4629_v40  ;;  %3644 = vmatpush3.bf16.msra.mxu1 %v3641_v45  ;;  %v3649_v45 = vpack.c.bf16 %v431_v44, %v430_v14  ;;  %v6253_v44 = vmov 0.0  }
 0x273   :  { %3646 = vmatprep.subr.bf16.mxu1 %v3645_v38  ;;  %v542_v53 = vsel %vm526_vm7, 1.0, %v6253_v44  ;;  %v544_v54 = vsel %vm528_vm9, 1.0, %v6253_v44  ;;  %v545_v27 = vsel %vm529_vm10, 1.0, %v6253_v44  ;;  %v546_v56 = vsel %vm530_vm11, 1.0, %v6253_v44 }
 0x274   :  { %v548_v57 = vsel %vm532_vm13, 1.0, %v6253_v44  ;;  %v550_v58 = vsel %vm534_vm15, 1.0, %v6253_v44  ;;  %v552_v59 = vsel %vm536_vm1, 1.0, %v6253_v44  ;;  %v554_v60 = vsel %vm538_vm4, 1.0, %v6253_v44 }
 0x275   :  { %v4638_v50 = vpop.permute.xlu1 %1701  ;;  %2064 = vbcast.lane.b32.xlu1 %v3972_v51, 328  ;;  %vm605_vm7 = vcmp.eq.s32.totalorder %v4004_v62, %v4374_v23  ;;  %vm607_vm9 = vcmp.eq.s32.totalorder %v4007_v63, %v4374_v23  ;;  %vm608_vm10 = vcmp.eq.s32.totalorder %v4436_v12, %v4374_v23  ;;  %vm609_vm11 = vcmp.eq.s32.totalorder %v4010_v0, %v4374_v23 }
 0x276   :  { %6249 = vst [vmem:[#allocation112_spill] sm:$0xff] %v4638_v50  ;;  %3648 = vmatpush3.bf16.msra.mxu1 %v3645_v38  ;;  %v624_v63 = vsel %vm608_vm10, 1.0, %v6253_v44  ;;  %vm611_vm13 = vcmp.eq.s32.totalorder %v4013_v1, %v4374_v23  ;;  %vm613_vm15 = vcmp.eq.s32.totalorder %v4016_v2, %v4374_v23  ;;  %vm615_vm1 = vcmp.eq.s32.totalorder %v4019_v3, %v4374_v23 }
 0x277   :  { %3650 = vmatprep.subr.bf16.mxu1 %v3649_v45  ;;  %vm617_vm4 = vcmp.eq.s32.totalorder %v4022_v5, %v4374_v23  ;;  %vm2911_vm10 = vcmask 1046534  }
 0x279   :  { %v4647_v40 = vpop.permute.xlu1 %2040  ;;  %1402 = vbcast.lane.b32.xlu1 %v3932_v39, 344 }
 0x27a   :  { %6250 = vst [vmem:[#allocation113_spill] sm:$0xff] %v4647_v40  ;;  %3652 = vmatpush3.bf16.msra.mxu1 %v3649_v45  ;;  %v540_v45 = vsel %vm524_vm5, 1.0, %v6253_v44  ;;  %vm603_vm5 = vcmp.eq.s32.totalorder %v4001_v61, %v4374_v23 }
 0x27d   :  { %v4656_v50 = vpop.permute.xlu1 %1378  ;;  %1662 = vbcast.lane.b32.xlu1 %v3870_v15, 328 }
 0x281   :  { %v4659_v26 = vpop.permute.xlu1 %1638  ;;  %1871 = vbcast.lane.b32.xlu1 %v3939_v41, 344 }
 0x282   :  { %6251 = vst [vmem:[#allocation114_spill] sm:$0xff] %v4659_v26 }
 0x285   :  { %v4662_v8 = vpop.permute.xlu1 %1847  ;;  %2131 = vbcast.lane.b32.xlu1 %v3984_v55, 328 }
 0x286   :  { %6252 = vst [vmem:[#allocation115_spill] sm:$0xff] %v4662_v8 }
 0x293   :  { %v3359_v11 = vpop.f32.mrb[2].mxu0  ;;  %v3394_v38 = vpop.f32.mrb[2].mxu1 }
 0x294   :  { %v417_v40 = vsub.f32 %v3394_v38, %v3359_v11  ;;  %v316_v19 = vpop.f32.mrb[3].mxu0  ;;  %v407_v24 = vpop.f32.mrb[3].mxu1 }
 0x295   :  { %v3617_v13 = vpack.c.bf16 %v3359_v11, %v316_v19  ;;  %v416_v16 = vsub.f32 %v407_v24, %v316_v19  ;;  %v4670_v38 = vpop.permute.xlu1 %2107  ;;  %v541_v19 = vsel %vm525_vm6, 1.0, %v6253_v44  ;;  %v543_v24 = vsel %vm527_vm8, 1.0, %v6253_v44  ;;  %1272 = vbcast.lane.b32.xlu1 %v3922_v35, 352 }
 0x296   :  { %6254 = vst [vmem:[#allocation116_spill] sm:$0xff] %v4670_v38  ;;  %v551_v11 = vsel %vm535_vm0, 1.0, %v6253_v44  ;;  %vm604_vm6 = vcmp.eq.s32.totalorder %v4422_v30, %v4374_v23  ;;  %vm606_vm8 = vcmp.eq.s32.totalorder %v4429_v18, %v4374_v23  ;;  %vm614_vm0 = vcmp.eq.s32.totalorder %v4457_v36, %v4374_v23 }
 0x297   :  { %v3621_v14 = vpack.c.bf16 %v417_v40, %v416_v16  ;;  %3618 = vmatprep.subr.bf16.mxu0 %v3617_v13  ;;  %v549_v40 = vsel %vm533_vm14, 1.0, %v6253_v44  ;;  %v620_v61 = vsel %vm604_vm6, 1.0, %v6253_v44  ;;  %v622_v62 = vsel %vm606_vm8, 1.0, %v6253_v44 }
 0x298   :  { %3620 = vmatpush3.bf16.msra.mxu0 %v3617_v13  ;;  %v547_v13 = vsel %vm531_vm12, 1.0, %v6253_v44  ;;  %vm610_vm12 = vcmp.eq.s32.totalorder %v4443_v49, %v4374_v23  ;;  %vm612_vm14 = vcmp.eq.s32.totalorder %v4450_v42, %v4374_v23  ;;  %v630_v2 = vsel %vm614_vm0, 1.0, %v6253_v44 }
 0x299   :  { %3622 = vmatprep.subr.bf16.mxu0 %v3621_v14  ;;  %v4681_v16 = vpop.permute.xlu1 %1248  ;;  %1469 = vbcast.lane.b32.xlu1 %v3945_v43, 344  ;;  %v626_v0 = vsel %vm610_vm12, 1.0, %v6253_v44  ;;  %v628_v1 = vsel %vm612_vm14, 1.0, %v6253_v44  ;;  %vm2903_vm6 = vcmask 1042434   ;;  %vm2907_vm8 = vcmask 1044484  }
 0x29a   :  { %vm3748_vm14 = vmmov 0  }
 0x29b   :  { %3400 = vmatmul.mubr.msk.f32.vlgmr.msra.gmra.mrb[4].mxu0 %vm150_vm3, %v540_v45  ;;  %v619_v45 = vsel %vm603_vm5, 1.0, %v6253_v44  ;;  %vm618_vm5 = vcmp.eq.s32.totalorder %v4471_v17, %v4374_v23 }
 0x29c   :  { %3402 = vmatprep.mubr.msk.f32.mxu0 %vm150_vm3, %v541_v19  ;;  %3624 = vmatpush3.bf16.msra.mxu0 %v3621_v14  ;;  %v553_v14 = vsel %vm537_vm2, 1.0, %v6253_v44  ;;  %v621_v19 = vsel %vm605_vm7, 1.0, %v6253_v44  ;;  %vm616_vm2 = vcmp.eq.s32.totalorder %v4464_v32, %v4374_v23  ;;  %v634_v32 = vsel %vm618_vm5, 1.0, %v6253_v44 }
 0x29d   :  { %v4692_v22 = vpop.permute.xlu1 %1445  ;;  %1729 = vbcast.lane.b32.xlu1 %v3884_v21, 328  ;;  %v632_v3 = vsel %vm616_vm2, 1.0, %v6253_v44  ;;  %vm2905_vm7 = vcmask 1043459  }
 0x29f   :  { %3403 = vmatmul.mubr.msk.f32.gmra.mrb[6].mxu0 %vm150_vm3, %v542_v53  ;;  %v623_v53 = vsel %vm607_vm9, 1.0, %v6253_v44  ;;  %vm2909_vm9 = vcmask 1045509  }
 0x2a0   :  { %3405 = vmatprep.mubr.msk.f32.mxu0 %vm150_vm3, %v543_v24  ;;  %v625_v24 = vsel %vm609_vm11, 1.0, %v6253_v44  ;;  %vm2913_vm11 = vcmask 1047559  }
 0x2a1   :  { %v4703_v10 = vpop.permute.xlu1 %1705  ;;  %2068 = vbcast.lane.b32.xlu1 %v3972_v51, 336 }
 0x2a2   :  { %6255 = vst [vmem:[#allocation117_spill] sm:$0xff] %v4703_v10 }
 0x2a3   :  { %3406 = vmatmul.mubr.msk.f32.gmra.mrb[8].mxu0 %vm150_vm3, %v544_v54  ;;  %v627_v54 = vsel %vm611_vm13, 1.0, %v6253_v44 }
 0x2a4   :  { %3408 = vmatprep.mubr.msk.f32.mxu0 %vm150_vm3, %v545_v27  ;;  %v629_v27 = vsel %vm613_vm15, 1.0, %v6253_v44  ;;  %vm3121_vm15 = vcmask 122880  }
 0x2a5   :  { %v4714_v29 = vpop.permute.xlu1 %2044  ;;  %1406 = vbcast.lane.b32.xlu1 %v3932_v39, 352 }
 0x2a6   :  { %6256 = vst [vmem:[#allocation118_spill] sm:$0xff] %v4714_v29 }
 0x2a7   :  { %3409 = vmatmul.mubr.msk.f32.gmra.mrb[10].mxu0 %vm150_vm3, %v546_v56  ;;  %v631_v56 = vsel %vm615_vm1, 1.0, %v6253_v44 }
 0x2a8   :  { %3411 = vmatprep.mubr.msk.f32.mxu0 %vm150_vm3, %v547_v13  ;;  %v633_v13 = vsel %vm617_vm4, 1.0, %v6253_v44 }
 0x2a9   :  { %v4725_v52 = vpop.permute.xlu1 %1382  ;;  %1666 = vbcast.lane.b32.xlu1 %v3870_v15, 336 }
 0x2ab   :  { %3412 = vmatmul.mubr.msk.f32.gmra.mrb[12].mxu0 %vm150_vm3, %v548_v57 }
 0x2ac   :  { %3414 = vmatprep.mubr.msk.f32.mxu0 %vm150_vm3, %v549_v40 }
 0x2ad   :  { %v4736_v34 = vpop.permute.xlu1 %1642  ;;  %1875 = vbcast.lane.b32.xlu1 %v3939_v41, 352 }
 0x2ae   :  { %6257 = vst [vmem:[#allocation119_spill] sm:$0xff] %v4736_v34 }
 0x2af   :  { %3415 = vmatmul.mubr.msk.f32.gmra.mrb[14].mxu0 %vm150_vm3, %v550_v58 }
 0x2b0   :  { %3417 = vmatprep.mubr.msk.f32.mxu0 %vm150_vm3, %v551_v11 }
 0x2b1   :  { %v4747_v20 = vpop.permute.xlu1 %1851  ;;  %2135 = vbcast.lane.b32.xlu1 %v3984_v55, 336 }
 0x2b2   :  { %6258 = vst [vmem:[#allocation120_spill] sm:$0xff] %v4747_v20 }
 0x2b3   :  { %3418 = vmatmul.mubr.msk.f32.gmra.mrb[16].mxu0 %vm150_vm3, %v552_v59 }
 0x2b4   :  { %3420 = vmatprep.mubr.msk.f32.mxu0 %vm150_vm3, %v553_v14 }
 0x2b5   :  { %v4758_v46 = vpop.permute.xlu1 %2111  ;;  %1276 = vbcast.lane.b32.xlu1 %v3922_v35, 360 }
 0x2b6   :  { %6259 = vst [vmem:[#allocation121_spill] sm:$0xff] %v4758_v46 }
 0x2b7   :  { %3421 = vmatmul.mubr.msk.f32.gmra.mrb[18].mxu0 %vm150_vm3, %v554_v60 }
 0x2b8   :  { %3427 = vmatprep.mubr.msk.f32.mxu0 %vm150_vm3, %v619_v45 }
 0x2b9   :  { %v4769_v30 = vpop.permute.xlu1 %1252  ;;  %1473 = vbcast.lane.b32.xlu1 %v3945_v43, 352 }
 0x2bb   :  { %3428 = vmatmul.mubr.msk.f32.vlgmr.msra.gmra.mrb[4].mxu0 %vm150_vm3, %v620_v61 }
 0x2bc   :  { %3430 = vmatprep.mubr.msk.f32.mxu0 %vm150_vm3, %v621_v19 }
 0x2bd   :  { %v4780_v18 = vpop.permute.xlu1 %1449  ;;  %1733 = vbcast.lane.b32.xlu1 %v3884_v21, 336 }
 0x2be   :  { %6260 = vst [vmem:[#allocation122_spill] sm:$0xff] %v4780_v18 }
 0x2bf   :  { %3431 = vmatmul.mubr.msk.f32.gmra.mrb[6].mxu0 %vm150_vm3, %v622_v62 }
 0x2c0   :  { %3433 = vmatprep.mubr.msk.f32.mxu0 %vm150_vm3, %v623_v53 }
 0x2c1   :  { %v4791_v12 = vpop.permute.xlu1 %1709  ;;  %2072 = vbcast.lane.b32.xlu1 %v3972_v51, 344 }
 0x2c2   :  { %6261 = vst [vmem:[#allocation123_spill] sm:$0xff] %v4791_v12 }
 0x2c3   :  { %3434 = vmatmul.mubr.msk.f32.gmra.mrb[8].mxu0 %vm150_vm3, %v624_v63  ;;  %v432_v63 = vld [vmem:[%s6113_s10 + $0x70] sm:$0xff] }
 0x2c4   :  { %3436 = vmatprep.mubr.msk.f32.mxu0 %vm150_vm3, %v625_v24  ;;  %v433_v24 = vld [vmem:[%s6113_s10 + $0x78] sm:$0xff] }
 0x2c5   :  { %v4802_v49 = vpop.permute.xlu1 %2048  ;;  %1410 = vbcast.lane.b32.xlu1 %v3932_v39, 360 }
 0x2c6   :  { %6262 = vst [vmem:[#allocation124_spill] sm:$0xff] %v4802_v49 }
 0x2c7   :  { %3437 = vmatmul.mubr.msk.f32.gmra.mrb[10].mxu0 %vm150_vm3, %v626_v0  ;;  %v3653_v0 = vpack.c.bf16 %v433_v24, %v432_v63  ;;  %v4935_v63 = vpop.permute.xlu0 %1934 }
 0x2c8   :  { %3439 = vmatprep.mubr.msk.f32.mxu0 %vm150_vm3, %v627_v54  ;;  %6287 = vst [vmem:[#allocation149_spill] sm:$0xff] %v4935_v63 }
 0x2c9   :  { %v4813_v42 = vpop.permute.xlu1 %1386  ;;  %1670 = vbcast.lane.b32.xlu1 %v3870_v15, 344  ;;  %3654 = vmatprep.subr.bf16.mxu1 %v3653_v0 }
 0x2ca   :  { %3656 = vmatpush3.bf16.msra.mxu1 %v3653_v0 }
 0x2cb   :  { %3440 = vmatmul.mubr.msk.f32.gmra.mrb[12].mxu0 %vm150_vm3, %v628_v1 }
 0x2cc   :  { %3442 = vmatprep.mubr.msk.f32.mxu0 %vm150_vm3, %v629_v27 }
 0x2cd   :  { %v4824_v36 = vpop.permute.xlu1 %1646  ;;  %1879 = vbcast.lane.b32.xlu1 %v3939_v41, 360 }
 0x2ce   :  { %6263 = vst [vmem:[#allocation125_spill] sm:$0xff] %v4824_v36 }
 0x2cf   :  { %3443 = vmatmul.mubr.msk.f32.gmra.mrb[14].mxu0 %vm150_vm3, %v630_v2 }
 0x2d0   :  { %3445 = vmatprep.mubr.msk.f32.mxu0 %vm150_vm3, %v631_v56 }
 0x2d1   :  { %v4833_v5 = vpop.permute.xlu1 %1855  ;;  %2139 = vbcast.lane.b32.xlu1 %v3984_v55, 344 }
 0x2d2   :  { %6264 = vst [vmem:[#allocation126_spill] sm:$0xff] %v4833_v5 }
 0x2d3   :  { %3446 = vmatmul.mubr.msk.f32.gmra.mrb[16].mxu0 %vm150_vm3, %v632_v3 }
 0x2d4   :  { %3448 = vmatprep.mubr.msk.f32.mxu0 %vm150_vm3, %v633_v13 }
 0x2d5   :  { %v4837_v57 = vpop.permute.xlu1 %2115  ;;  %1280 = vbcast.lane.b32.xlu1 %v3922_v35, 368 }
 0x2d6   :  { %6265 = vst [vmem:[#allocation127_spill] sm:$0xff] %v4837_v57 }
 0x2d7   :  { %3449 = vmatmul.mubr.msk.f32.gmra.mrb[18].mxu0 %vm150_vm3, %v634_v32  ;;  %vm2901_vm3 = vcmask 1041409  }
 0x2d9   :  { %v4840_v40 = vpop.permute.xlu1 %1256  ;;  %1477 = vbcast.lane.b32.xlu1 %v3945_v43, 360 }
 0x2dd   :  { %v4843_v23 = vpop.permute.xlu1 %1453  ;;  %1737 = vbcast.lane.b32.xlu1 %v3884_v21, 344 }
 0x2de   :  { %6266 = vst [vmem:[#allocation128_spill] sm:$0xff] %v4843_v23 }
 0x2e1   :  { %v4846_v17 = vpop.permute.xlu1 %1713  ;;  %2076 = vbcast.lane.b32.xlu1 %v3972_v51, 352 }
 0x2e2   :  { %6267 = vst [vmem:[#allocation129_spill] sm:$0xff] %v4846_v17 }
 0x2e5   :  { %v4849_v58 = vpop.permute.xlu1 %2052  ;;  %1414 = vbcast.lane.b32.xlu1 %v3932_v39, 368 }
 0x2e6   :  { %6268 = vst [vmem:[#allocation130_spill] sm:$0xff] %v4849_v58 }
 0x2e9   :  { %v4852_v11 = vpop.permute.xlu1 %1390  ;;  %1674 = vbcast.lane.b32.xlu1 %v3870_v15, 352 }
 0x2ed   :  { %v4855_v59 = vpop.permute.xlu1 %1650  ;;  %1883 = vbcast.lane.b32.xlu1 %v3939_v41, 368 }
 0x2ee   :  { %6269 = vst [vmem:[#allocation131_spill] sm:$0xff] %v4855_v59 }
 0x2f1   :  { %v4858_v14 = vpop.permute.xlu1 %1859  ;;  %2143 = vbcast.lane.b32.xlu1 %v3984_v55, 352 }
 0x2f2   :  { %6270 = vst [vmem:[#allocation132_spill] sm:$0xff] %v4858_v14 }
 0x2f5   :  { %v4861_v60 = vpop.permute.xlu1 %2119  ;;  %1284 = vbcast.lane.b32.xlu1 %v3922_v35, 376 }
 0x2f6   :  { %6271 = vst [vmem:[#allocation133_spill] sm:$0xff] %v4861_v60 }
 0x2f9   :  { %v4864_v45 = vpop.permute.xlu1 %1260  ;;  %1481 = vbcast.lane.b32.xlu1 %v3945_v43, 368 }
 0x2fd   :  { %v4867_v61 = vpop.permute.xlu1 %1457  ;;  %1741 = vbcast.lane.b32.xlu1 %v3884_v21, 352 }
 0x2fe   :  { %6272 = vst [vmem:[#allocation134_spill] sm:$0xff] %v4867_v61  ;;  %v6381_v61 = vld [vmem:[#allocation84_spill] sm:$0xff] }
 0x301   :  { %v4870_v19 = vpop.permute.xlu1 %1717  ;;  %2080 = vbcast.lane.b32.xlu1 %v3972_v51, 360 }
 0x302   :  { %6273 = vst [vmem:[#allocation135_spill] sm:$0xff] %v4870_v19 }
 0x305   :  { %v4873_v62 = vpop.permute.xlu1 %2056  ;;  %1418 = vbcast.lane.b32.xlu1 %v3932_v39, 376 }
 0x306   :  { %6274 = vst [vmem:[#allocation136_spill] sm:$0xff] %v4873_v62 }
 0x309   :  { %v4876_v53 = vpop.permute.xlu1 %1394  ;;  %1678 = vbcast.lane.b32.xlu1 %v3870_v15, 360 }
 0x30d   :  { %v4885_v54 = vpop.permute.xlu1 %1654  ;;  %1887 = vbcast.lane.b32.xlu1 %v3939_v41, 376 }
 0x30e   :  { %6275 = vst [vmem:[#allocation137_spill] sm:$0xff] %v4885_v54 }
 0x311   :  { %v4888_v1 = vpop.permute.xlu1 %1863  ;;  %2147 = vbcast.lane.b32.xlu1 %v3984_v55, 360 }
 0x312   :  { %6276 = vst [vmem:[#allocation138_spill] sm:$0xff] %v4888_v1 }
 0x315   :  { %v4891_v27 = vpop.permute.xlu1 %2123  ;;  %1485 = vbcast.lane.b32.xlu1 %v3945_v43, 376 }
 0x316   :  { %6277 = vst [vmem:[#allocation139_spill] sm:$0xff] %v4891_v27  ;;  %v4956_v27 = vld [vmem:[%s6112_s9] ss:$0 sm:$0xff] }
 0x319   :  { %v4895_v2 = vpop.permute.xlu1 %1264  ;;  %1745 = vbcast.lane.b32.xlu1 %v3884_v21, 360 }
 0x31d   :  { %v4898_v35 = vpop.permute.xlu1 %1461  ;;  %2084 = vbcast.lane.b32.xlu1 %v3972_v51, 368 }
 0x31e   :  { %6278 = vst [vmem:[#allocation140_spill] sm:$0xff] %v4898_v35 }
 0x321   :  { %v4902_v56 = vpop.permute.xlu1 %1721  ;;  %1552 = vbcast.lane.b32.xlu1 %v3958_v47, 376 }
 0x322   :  { %6279 = vst [vmem:[#allocation141_spill] sm:$0xff] %v4902_v56 }
 0x325   :  { %v4905_v3 = vpop.permute.xlu1 %2060  ;;  %2021 = vbcast.lane.b32.xlu1 %v3962_v48, 376 }
 0x326   :  { %6280 = vst [vmem:[#allocation142_spill] sm:$0xff] %v4905_v3 }
 0x329   :  { %v4909_v39 = vpop.permute.xlu1 %1398  ;;  %2281 = vbcast.lane.b32.xlu1 %v3909_v31, 360 }
 0x32d   :  { %v4912_v15 = vpop.permute.xlu1 %1658  ;;  %1749 = vbcast.lane.b32.xlu1 %v3884_v21, 368 }
 0x32e   :  { %6281 = vst [vmem:[#allocation143_spill] sm:$0xff] %v4912_v15 }
 0x331   :  { %v4916_v41 = vpop.permute.xlu1 %1867  ;;  %2218 = vbcast.lane.b32.xlu1 %v3892_v25, 368  ;;  %v4939_v25 = vpop.permute.xlu0 %2194 }
 0x332   :  { %6282 = vst [vmem:[#allocation144_spill] sm:$0xff] %v4916_v41  ;;  %6289 = vst [vmem:[#allocation151_spill] sm:$0xff] %v4939_v25 }
 0x335   :  { %v4919_v43 = vpop.permute.xlu1 %2127  ;;  %2155 = vbcast.lane.b32.xlu1 %v3984_v55, 376  ;;  %v4943_v0 = vpop.permute.xlu0 %1532 }
 0x336   :  { %6283 = vst [vmem:[#allocation145_spill] sm:$0xff] %v4919_v43  ;;  %6291 = vst [vmem:[#allocation153_spill] sm:$0xff] %v4943_v0 }
 0x339   :  { %v4923_v51 = vpop.permute.xlu1 %1268  ;;  %1753 = vbcast.lane.b32.xlu1 %v3884_v21, 376  ;;  %v4947_v44 = vpop.permute.xlu0 %1804 }
 0x33a   :  { %6293 = vst [vmem:[#allocation155_spill] sm:$0xff] %v4947_v44 }
 0x33d   :  { %v4926_v47 = vpop.permute.xlu1 %1465  ;;  %2289 = vbcast.lane.b32.xlu1 %v3909_v31, 376  ;;  %v4951_v43 = vpop.permute.xlu0 %2001 }
 0x33e   :  { %6284 = vst [vmem:[#allocation146_spill] sm:$0xff] %v4926_v47  ;;  %6294 = vst [vmem:[#allocation156_spill] sm:$0xff] %v4951_v43 }
 0x341   :  { %v4929_v48 = vpop.permute.xlu1 %1725 }
 0x342   :  { %6285 = vst [vmem:[#allocation147_spill] sm:$0xff] %v4929_v48 }
 0x345   :  { %v4931_v13 = vpop.permute.xlu1 %2064 }
 0x346   :  { %6286 = vst [vmem:[#allocation148_spill] sm:$0xff] %v4931_v13 }
 0x349   :  { %v4933_v32 = vpop.permute.xlu1 %1402 }
 0x34d   :  { %v4937_v24 = vpop.permute.xlu1 %1662 }
 0x34e   :  { %6288 = vst [vmem:[#allocation150_spill] sm:$0xff] %v4937_v24 }
 0x351   :  { %v4941_v55 = vpop.permute.xlu1 %1871 }
 0x352   :  { %6290 = vst [vmem:[#allocation152_spill] sm:$0xff] %v4941_v55 }
 0x355   :  { %v4945_v21 = vpop.permute.xlu1 %2131 }
 0x356   :  { %6292 = vst [vmem:[#allocation154_spill] sm:$0xff] %v4945_v21  ;;  %v4962_v21 = vpop.permute.xlu0 %2261 }
 0x359   :  { %v4949_v31 = vpop.permute.xlu1 %1272 }
 0x35d   :  { %v4958_v57 = vpop.permute.xlu1 %1469 }
 0x35e   :  { %6295 = vst [vmem:[#allocation157_spill] sm:$0xff] %v4958_v57  ;;  %v6379_v57 = vld [vmem:[#allocation66_spill] sm:$0xff] }
 0x361   :  { %v4966_v43 = vpop.permute.xlu1 %1729 }
 0x362   :  { %6296 = vst [vmem:[#allocation158_spill] sm:$0xff] %v4966_v43 }
 0x365   :  { %v4972_v14 = vpop.permute.xlu1 %2068 }
 0x366   :  { %6297 = vst [vmem:[#allocation159_spill] sm:$0xff] %v4972_v14 }
 0x38e   :  { %v3429_v60 = vpop.f32.mrb[4].mxu0 }
 0x38f   :  { %v1028_v25 = vadd.f32 %v3429_v60, %v4956_v27  ;;  %v942_v46 = vpop.f32.mrb[5].mxu0  ;;  %v4968_v60 = vpop.permute.xlu0 %1339 }
 0x390   :  { %v1027_v38 = vadd.f32 %v4956_v27, %v942_v46 }
 0x391   :  { %v1044_v62 = vmax.f32 %v1028_v25, 0.0 }
 0x392   :  { %v1043_v13 = vmax.f32 %v1027_v38, 0.0  ;;  %v3432_v3 = vpop.f32.mrb[6].mxu0 }
 0x393   :  { %v1030_v58 = vadd.f32 %v3432_v3, %v4956_v27  ;;  %v952_v49 = vpop.f32.mrb[7].mxu0  ;;  %v4976_v5 = vpop.permute.xlu0 %1599 }
 0x394   :  { %v1029_v29 = vadd.f32 %v4956_v27, %v952_v49  ;;  %3483 = vmatprep.mubr.f32.mxu1 %v1043_v13  ;;  %6298 = vst [vmem:[#allocation160_spill] sm:$0xff] %v4976_v5 }
 0x395   :  { %3484 = vmatmul.mubr.f32.vlgmr.msra.gmra.mrb[4].mxu1 %v1044_v62  ;;  %v1046_v41 = vmax.f32 %v1030_v58, 0.0 }
 0x396   :  { %v1045_v63 = vmax.f32 %v1029_v29, 0.0  ;;  %v3435_v55 = vpop.f32.mrb[8].mxu0 }
 0x397   :  { %v1032_v46 = vadd.f32 %v3435_v55, %v4956_v27  ;;  %v962_v1 = vpop.f32.mrb[9].mxu0  ;;  %v4982_v14 = vpop.permute.xlu0 %1938 }
 0x398   :  { %v1031_v38 = vadd.f32 %v4956_v27, %v962_v1  ;;  %3486 = vmatprep.mubr.f32.mxu1 %v1045_v63  ;;  %6299 = vst [vmem:[#allocation161_spill] sm:$0xff] %v4982_v14 }
 0x399   :  { %3487 = vmatmul.mubr.f32.gmra.mrb[6].mxu1 %v1046_v41  ;;  %v1048_v49 = vmax.f32 %v1032_v46, 0.0 }
 0x39a   :  { %v1047_v3 = vmax.f32 %v1031_v38, 0.0  ;;  %v3438_v25 = vpop.f32.mrb[10].mxu0  ;;  %v4980_v38 = vpop.permute.xlu1 %1406 }
 0x39b   :  { %v1034_v13 = vadd.f32 %v3438_v25, %v4956_v27  ;;  %v972_v62 = vpop.f32.mrb[11].mxu0  ;;  %v4990_v14 = vpop.permute.xlu0 %2198 }
 0x39c   :  { %v1033_v29 = vadd.f32 %v4956_v27, %v972_v62  ;;  %3489 = vmatprep.mubr.f32.mxu1 %v1047_v3  ;;  %6301 = vst [vmem:[#allocation163_spill] sm:$0xff] %v4990_v14 }
 0x39d   :  { %3490 = vmatmul.mubr.f32.gmra.mrb[8].mxu1 %v1048_v49  ;;  %v1050_v20 = vmax.f32 %v1034_v13, 0.0 }
 0x39e   :  { %v1049_v58 = vmax.f32 %v1033_v29, 0.0  ;;  %v3441_v55 = vpop.f32.mrb[12].mxu0  ;;  %v4986_v8 = vpop.permute.xlu1 %1666 }
 0x39f   :  { %v1036_v1 = vadd.f32 %v3441_v55, %v4956_v27  ;;  %v982_v41 = vpop.f32.mrb[13].mxu0  ;;  %6300 = vst [vmem:[#allocation162_spill] sm:$0xff] %v4986_v8 }
 0x3a0   :  { %v1035_v63 = vadd.f32 %v4956_v27, %v982_v41  ;;  %3492 = vmatprep.mubr.f32.mxu1 %v1049_v58 }
 0x3a1   :  { %3493 = vmatmul.mubr.f32.gmra.mrb[10].mxu1 %v1050_v20  ;;  %v1052_v3 = vmax.f32 %v1036_v1, 0.0 }
 0x3a2   :  { %v1051_v46 = vmax.f32 %v1035_v63, 0.0  ;;  %v3444_v25 = vpop.f32.mrb[14].mxu0 }
 0x3a3   :  { %v1038_v62 = vadd.f32 %v3444_v25, %v4956_v27  ;;  %v992_v49 = vpop.f32.mrb[15].mxu0 }
 0x3a4   :  { %v1037_v29 = vadd.f32 %v4956_v27, %v992_v49  ;;  %3495 = vmatprep.mubr.f32.mxu1 %v1051_v46 }
 0x3a5   :  { %3496 = vmatmul.mubr.f32.gmra.mrb[12].mxu1 %v1052_v3  ;;  %v1054_v58 = vmax.f32 %v1038_v62, 0.0 }
 0x3a6   :  { %v1053_v13 = vmax.f32 %v1037_v29, 0.0  ;;  %v3447_v55 = vpop.f32.mrb[16].mxu0  ;;  %v4994_v29 = vpop.permute.xlu1 %1875 }
 0x3a7   :  { %v1040_v41 = vadd.f32 %v3447_v55, %v4956_v27  ;;  %v1002_v20 = vpop.f32.mrb[17].mxu0  ;;  %6302 = vst [vmem:[#allocation164_spill] sm:$0xff] %v4994_v29  ;;  %v4996_v55 = vpop.permute.xlu0 %1536 }
 0x3a8   :  { %v1039_v63 = vadd.f32 %v4956_v27, %v1002_v20  ;;  %3498 = vmatprep.mubr.f32.mxu1 %v1053_v13  ;;  %6303 = vst [vmem:[#allocation165_spill] sm:$0xff] %v4996_v55  ;;  %v6374_v55 = vld [vmem:[#allocation14_spill] sm:$0xff] }
 0x3a9   :  { %3499 = vmatmul.mubr.f32.gmra.mrb[14].mxu1 %v1054_v58  ;;  %v1056_v44 = vmax.f32 %v1040_v41, 0.0 }
 0x3aa   :  { %v1055_v1 = vmax.f32 %v1039_v63, 0.0  ;;  %v3450_v25 = vpop.f32.mrb[18].mxu0  ;;  %v4998_v13 = vpop.permute.xlu1 %2135 }
 0x3ab   :  { %v1042_v46 = vadd.f32 %v3450_v25, %v4956_v27  ;;  %v1012_v3 = vpop.f32.mrb[19].mxu0  ;;  %6304 = vst [vmem:[#allocation166_spill] sm:$0xff] %v4998_v13  ;;  %v5000_v58 = vpop.permute.xlu0 %1808 }
 0x3ac   :  { %v1041_v49 = vadd.f32 %v4956_v27, %v1012_v3  ;;  %3501 = vmatprep.mubr.f32.mxu1 %v1055_v1  ;;  %6305 = vst [vmem:[#allocation167_spill] sm:$0xff] %v5000_v58 }
 0x3ad   :  { %3502 = vmatmul.mubr.f32.gmra.mrb[16].mxu1 %v1056_v44  ;;  %v1058_v20 = vmax.f32 %v1042_v46, 0.0 }
 0x3ae   :  { %v1057_v62 = vmax.f32 %v1041_v49, 0.0  ;;  %v5002_v41 = vpop.permute.xlu1 %1276 }
 0x3af   :  { %v5004_v63 = vpop.permute.xlu0 %2005 }
 0x3b0   :  { %3504 = vmatprep.mubr.f32.mxu1 %v1057_v62  ;;  %6306 = vst [vmem:[#allocation168_spill] sm:$0xff] %v5004_v63 }
 0x3b1   :  { %3505 = vmatmul.mubr.f32.gmra.mrb[18].mxu1 %v1058_v20 }
 0x3b2   :  { %v5006_v25 = vpop.permute.xlu1 %1473 }
 0x3b3   :  { %6307 = vst [vmem:[#allocation169_spill] sm:$0xff] %v5006_v25  ;;  %v5008_v27 = vpop.permute.xlu0 %2265 }
 0x3b6   :  { %v5010_v1 = vpop.permute.xlu1 %1733 }
 0x3b7   :  { %6308 = vst [vmem:[#allocation170_spill] sm:$0xff] %v5010_v1  ;;  %v5012_v44 = vpop.permute.xlu0 %1343 }
 0x3ba   :  { %v5014_v3 = vpop.permute.xlu1 %2072 }
 0x3bb   :  { %6309 = vst [vmem:[#allocation171_spill] sm:$0xff] %v5014_v3  ;;  %v5016_v46 = vpop.permute.xlu0 %1603 }
 0x3bc   :  { %6310 = vst [vmem:[#allocation172_spill] sm:$0xff] %v5016_v46 }
 0x3be   :  { %v5018_v49 = vpop.permute.xlu1 %1410 }
 0x3bf   :  { %v5020_v62 = vpop.permute.xlu0 %1942 }
 0x3c0   :  { %6311 = vst [vmem:[#allocation173_spill] sm:$0xff] %v5020_v62 }
 0x3c2   :  { %v5022_v20 = vpop.permute.xlu1 %1670 }
 0x3c3   :  { %6312 = vst [vmem:[#allocation174_spill] sm:$0xff] %v5022_v20  ;;  %v5024_v14 = vpop.permute.xlu0 %2202 }
 0x3c4   :  { %6313 = vst [vmem:[#allocation175_spill] sm:$0xff] %v5024_v14 }
 0x3c6   :  { %v5026_v13 = vpop.permute.xlu1 %1879 }
 0x3c7   :  { %6314 = vst [vmem:[#allocation176_spill] sm:$0xff] %v5026_v13  ;;  %v5028_v63 = vpop.permute.xlu0 %1540 }
 0x3c8   :  { %6315 = vst [vmem:[#allocation177_spill] sm:$0xff] %v5028_v63  ;;  %v6373_v63 = vld [vmem:[#allocation79_spill] sm:$0xff] }
 0x3ca   :  { %v5030_v29 = vpop.permute.xlu1 %2139 }
 0x3cb   :  { %6316 = vst [vmem:[#allocation178_spill] sm:$0xff] %v5030_v29  ;;  %v5032_v58 = vpop.permute.xlu0 %1812 }
 0x3cc   :  { %6317 = vst [vmem:[#allocation179_spill] sm:$0xff] %v5032_v58  ;;  %v2935_v58 = vld [vmem:[%s6115_s12 + $0x8] sm:$0xff] }
 0x3ce   :  { %v5034_v1 = vpop.permute.xlu1 %1280 }
 0x3cf   :  { %v5036_v3 = vpop.permute.xlu0 %2009 }
 0x3d0   :  { %6318 = vst [vmem:[#allocation180_spill] sm:$0xff] %v5036_v3  ;;  %v2934_v3 = vld [vmem:[%s6115_s12] sm:$0xff] }
 0x3d1   :  { %v3657_v17 = vpack.c.bf16 %v2935_v58, %v2934_v3  ;;  %v2938_v58 = vld [vmem:[%s6115_s12 + $0x20] sm:$0xff] }
 0x3d2   :  { %v5038_v43 = vpop.permute.xlu1 %1477 }
 0x3d3   :  { %6319 = vst [vmem:[#allocation181_spill] sm:$0xff] %v5038_v43  ;;  %v5040_v48 = vpop.permute.xlu0 %2269  ;;  %3658 = vmatprep.subr.bf16.mxu1 %v3657_v17 }
 0x3d4   :  { %3660 = vmatpush3.bf16.msra.mxu1 %v3657_v17  ;;  %v2939_v17 = vld [vmem:[%s6115_s12 + $0x28] sm:$0xff] }
 0x3d5   :  { %v3665_v3 = vpack.c.bf16 %v2939_v17, %v2938_v58  ;;  %v2942_v58 = vld [vmem:[%s6115_s12 + $0x40] sm:$0xff]  ;;  %v2943_v17 = vld [vmem:[%s6115_s12 + $0x48] sm:$0xff] }
 0x3d6   :  { %v5042_v62 = vpop.permute.xlu1 %1737 }
 0x3d7   :  { %6320 = vst [vmem:[#allocation182_spill] sm:$0xff] %v5042_v62  ;;  %v5044_v56 = vpop.permute.xlu0 %1347 }
 0x3da   :  { %v5046_v14 = vpop.permute.xlu1 %2076 }
 0x3db   :  { %6321 = vst [vmem:[#allocation183_spill] sm:$0xff] %v5046_v14  ;;  %v5048_v13 = vpop.permute.xlu0 %1607  ;;  %v2936_v14 = vld [vmem:[%s6115_s12 + $0x10] sm:$0xff] }
 0x3dc   :  { %6322 = vst [vmem:[#allocation184_spill] sm:$0xff] %v5048_v13 }
 0x3de   :  { %v5050_v19 = vpop.permute.xlu1 %1414 }
 0x3df   :  { %6323 = vst [vmem:[#allocation185_spill] sm:$0xff] %v5050_v19  ;;  %v5052_v29 = vpop.permute.xlu0 %1946 }
 0x3e0   :  { %6324 = vst [vmem:[#allocation186_spill] sm:$0xff] %v5052_v29  ;;  %v2937_v29 = vld [vmem:[%s6115_s12 + $0x18] sm:$0xff] }
 0x3e1   :  { %v3661_v10 = vpack.c.bf16 %v2937_v29, %v2936_v14  ;;  %v2940_v14 = vld [vmem:[%s6115_s12 + $0x30] sm:$0xff] }
 0x3e2   :  { %v5060_v62 = vpop.permute.xlu1 %1674 }
 0x3e3   :  { %6325 = vst [vmem:[#allocation187_spill] sm:$0xff] %v5060_v62  ;;  %v5068_v12 = vpop.permute.xlu0 %2206  ;;  %3662 = vmatprep.subr.bf16.mxu1 %v3661_v10 }
 0x3e4   :  { %6326 = vst [vmem:[#allocation188_spill] sm:$0xff] %v5068_v12  ;;  %3664 = vmatpush3.bf16.msra.mxu1 %v3661_v10  ;;  %v2941_v10 = vld [vmem:[%s6115_s12 + $0x38] sm:$0xff] }
 0x3e5   :  { %3666 = vmatprep.subr.bf16.mxu1 %v3665_v3  ;;  %v3669_v29 = vpack.c.bf16 %v2941_v10, %v2940_v14  ;;  %v2944_v14 = vld [vmem:[%s6115_s12 + $0x50] sm:$0xff]  ;;  %v2945_v10 = vld [vmem:[%s6115_s12 + $0x58] sm:$0xff] }
 0x3e6   :  { %v5070_v20 = vpop.permute.xlu1 %1883 }
 0x3e7   :  { %6327 = vst [vmem:[#allocation189_spill] sm:$0xff] %v5070_v20  ;;  %v5078_v62 = vpop.permute.xlu0 %1544  ;;  %v3673_v20 = vpack.c.bf16 %v2943_v17, %v2942_v58  ;;  %v2947_v58 = vld [vmem:[%s6115_s12 + $0x68] sm:$0xff] }
 0x3e8   :  { %6328 = vst [vmem:[#allocation190_spill] sm:$0xff] %v5078_v62  ;;  %3668 = vmatpush3.bf16.msra.mxu1 %v3665_v3 }
 0x3e9   :  { %3670 = vmatprep.subr.bf16.mxu1 %v3669_v29 }
 0x3ea   :  { %v5086_v12 = vpop.permute.xlu1 %2143 }
 0x3eb   :  { %6329 = vst [vmem:[#allocation191_spill] sm:$0xff] %v5086_v12  ;;  %v5094_v3 = vpop.permute.xlu0 %1816  ;;  %v3677_v12 = vpack.c.bf16 %v2945_v10, %v2944_v14 }
 0x3ec   :  { %3672 = vmatpush3.bf16.msra.mxu1 %v3669_v29  ;;  %6330 = vst [vmem:[#allocation192_spill] sm:$0xff] %v5094_v3  ;;  %v2946_v29 = vld [vmem:[%s6115_s12 + $0x60] sm:$0xff]  ;;  %v2949_v3 = vld [vmem:[%s6115_s12 + $0x78] sm:$0xff] }
 0x3ed   :  { %3674 = vmatprep.subr.bf16.mxu1 %v3673_v20  ;;  %v3681_v17 = vpack.c.bf16 %v2947_v58, %v2946_v29 }
 0x3ee   :  { %v5096_v8 = vpop.permute.xlu1 %1284 }
 0x3ef   :  { %v5116_v24 = vpop.permute.xlu0 %2013 }
 0x3f0   :  { %3676 = vmatpush3.bf16.msra.mxu1 %v3673_v20  ;;  %v2948_v20 = vld [vmem:[%s6115_s12 + $0x70] sm:$0xff]  ;;  %6331 = vst [vmem:[#allocation193_spill] sm:$0xff] %v5116_v24 }
 0x3f1   :  { %3678 = vmatprep.subr.bf16.mxu1 %v3677_v12  ;;  %v3685_v15 = vpack.c.bf16 %v2949_v3, %v2948_v20 }
 0x3f2   :  { %v5118_v14 = vpop.permute.xlu1 %1481 }
 0x3f3   :  { %6332 = vst [vmem:[#allocation194_spill] sm:$0xff] %v5118_v14  ;;  %v5120_v10 = vpop.permute.xlu0 %2273 }
 0x3f4   :  { %3680 = vmatpush3.bf16.msra.mxu1 %v3677_v12 }
 0x3f5   :  { %3682 = vmatprep.subr.bf16.mxu1 %v3681_v17 }
 0x3f6   :  { %v5122_v29 = vpop.permute.xlu1 %1741 }
 0x3f7   :  { %6333 = vst [vmem:[#allocation195_spill] sm:$0xff] %v5122_v29  ;;  %v5124_v58 = vpop.permute.xlu0 %1351 }
 0x3f8   :  { %3684 = vmatpush3.bf16.msra.mxu1 %v3681_v17 }
 0x3f9   :  { %3686 = vmatprep.subr.bf16.mxu1 %v3685_v15 }
 0x3fa   :  { %v5126_v54 = vpop.permute.xlu1 %2080 }
 0x3fb   :  { %6334 = vst [vmem:[#allocation196_spill] sm:$0xff] %v5126_v54  ;;  %v5128_v59 = vpop.permute.xlu0 %1611 }
 0x3fc   :  { %3688 = vmatpush3.bf16.msra.mxu1 %v3685_v15  ;;  %6335 = vst [vmem:[#allocation197_spill] sm:$0xff] %v5128_v59 }
 0x3fe   :  { %v5130_v24 = vpop.permute.xlu1 %1418 }
 0x3ff   :  { %6336 = vst [vmem:[#allocation198_spill] sm:$0xff] %v5130_v24  ;;  %v5132_v12 = vpop.permute.xlu0 %1950 }
 0x400   :  { %6337 = vst [vmem:[#allocation199_spill] sm:$0xff] %v5132_v12 }
 0x402   :  { %v5134_v3 = vpop.permute.xlu1 %1678 }
 0x403   :  { %6338 = vst [vmem:[#allocation200_spill] sm:$0xff] %v5134_v3  ;;  %v5136_v20 = vpop.permute.xlu0 %2210 }
 0x404   :  { %6339 = vst [vmem:[#allocation201_spill] sm:$0xff] %v5136_v20 }
 0x406   :  { %v5138_v17 = vpop.permute.xlu1 %1887 }
 0x407   :  { %6340 = vst [vmem:[#allocation202_spill] sm:$0xff] %v5138_v17  ;;  %v5140_v36 = vpop.permute.xlu0 %1548 }
 0x408   :  { %6341 = vst [vmem:[#allocation203_spill] sm:$0xff] %v5140_v36 }
 0x40a   :  { %v5142_v29 = vpop.permute.xlu1 %2147 }
 0x40b   :  { %6342 = vst [vmem:[#allocation204_spill] sm:$0xff] %v5142_v29  ;;  %v5144_v15 = vpop.permute.xlu0 %1820 }
 0x40c   :  { %6343 = vst [vmem:[#allocation205_spill] sm:$0xff] %v5144_v15 }
 0x40e   :  { %v5146_v34 = vpop.permute.xlu1 %1485 }
 0x40f   :  { %6344 = vst [vmem:[#allocation206_spill] sm:$0xff] %v5146_v34  ;;  %v5148_v54 = vpop.permute.xlu0 %2017  ;;  %v6376_v34 = vld [vmem:[#allocation91_spill] sm:$0xff] }
 0x410   :  { %6345 = vst [vmem:[#allocation207_spill] sm:$0xff] %v5148_v54  ;;  %v5169_v54 = vld [vmem:[%s6114_s11] ss:$0 sm:$0xff] }
 0x412   :  { %v5150_v26 = vpop.permute.xlu1 %1745 }
 0x413   :  { %6346 = vst [vmem:[#allocation208_spill] sm:$0xff] %v5150_v26  ;;  %v5152_v59 = vpop.permute.xlu0 %2277 }
 0x416   :  { %v5154_v12 = vpop.permute.xlu1 %2084 }
 0x417   :  { %6347 = vst [vmem:[#allocation209_spill] sm:$0xff] %v5154_v12  ;;  %v5156_v3 = vpop.permute.xlu0 %1615 }
 0x418   :  { %6348 = vst [vmem:[#allocation210_spill] sm:$0xff] %v5156_v3 }
 0x41a   :  { %v5158_v20 = vpop.permute.xlu1 %1552 }
 0x41b   :  { %6349 = vst [vmem:[#allocation211_spill] sm:$0xff] %v5158_v20  ;;  %v5160_v17 = vpop.permute.xlu0 %1954 }
 0x41c   :  { %6350 = vst [vmem:[#allocation212_spill] sm:$0xff] %v5160_v17 }
 0x41e   :  { %v5162_v13 = vpop.permute.xlu1 %2021 }
 0x41f   :  { %6351 = vst [vmem:[#allocation213_spill] sm:$0xff] %v5162_v13  ;;  %v5164_v29 = vpop.permute.xlu0 %2214 }
 0x420   :  { %6352 = vst [vmem:[#allocation214_spill] sm:$0xff] %v5164_v29 }
 0x422   :  { %v5171_v15 = vpop.permute.xlu1 %2281 }
 0x423   :  { %v5173_v46 = vpop.permute.xlu0 %1682 }
 0x424   :  { %6353 = vst [vmem:[#allocation215_spill] sm:$0xff] %v5173_v46 }
 0x426   :  { %v5183_v5 = vpop.permute.xlu1 %1749 }
 0x427   :  { %6354 = vst [vmem:[#allocation216_spill] sm:$0xff] %v5183_v5 }
 0x42a   :  { %v5257_v43 = vpop.permute.xlu1 %2218 }
 0x42e   :  { %v5293_v19 = vpop.permute.xlu1 %2155 }
 0x468   :  { %v3485_v26 = vpop.f32.mrb[4].mxu1 }
 0x469   :  { %v5176_v12 = vadd.f32 %v3485_v26, %v5169_v54  ;;  %v1131_v3 = vpop.f32.mrb[5].mxu1 }
 0x46a   :  { %v5179_v17 = vadd.f32 %v5169_v54, %v1131_v3 }
 0x46b   :  { %v2532_v29 = vadd.f32 %v4239_v33, %v5176_v12  ;;  %v5189_v36 = vadd.f32 %v4477_v28, %v5176_v12  ;;  %v5193_v26 = vadd.f32 %v4481_v9, %v5176_v12  ;;  %v5208_v28 = vadd.f32 %v4487_v37, %v5176_v12  ;;  %v6367_v37 = vld [vmem:[#allocation18_spill] sm:$0xff] }
 0x46c   :  { %v3488_v13 = vpop.f32.mrb[6].mxu1  ;;  %v2531_v20 = vadd.f32 %v4611_v4, %v5179_v17  ;;  %v5200_v33 = vadd.f32 %v4025_v6, %v5179_v17  ;;  %v5204_v5 = vadd.f32 %v4028_v7, %v5179_v17  ;;  %v6366_v7 = vld [vmem:[#allocation89_spill] sm:$0xff]  ;;  %6378 = vst [vmem:[#allocation18_spill] sm:$0xff] %v5257_v43  ;;  %v5265_v23 = vadd.f32 %v6381_v61, %v5179_v17  ;;  %v6387_v61 = vld [vmem:[#allocation35_spill] sm:$0xff] }
 0x46d   :  { %6355 = vst [vmem:[#allocation217_spill] sm:$0xff] %v5189_v36  ;;  %6356 = vst [vmem:[#allocation218_spill] sm:$0xff] %v5193_v26  ;;  %v5196_v3 = vadd.f32 %v3488_v13, %v5169_v54  ;;  %v1141_v46 = vpop.f32.mrb[7].mxu1  ;;  %v6361_v13 = vld [vmem:[#allocation8_spill] sm:$0xff] }
 0x46e   :  { %6358 = vst [vmem:[#allocation220_spill] sm:$0xff] %v5200_v33  ;;  %6359 = vst [vmem:[#allocation221_spill] sm:$0xff] %v5204_v5  ;;  %v5211_v4 = vadd.f32 %v5169_v54, %v1141_v46  ;;  %v2864_v9 = vmax.f32 %v2531_v20, %v2532_v29  ;;  %v5215_v26 = vadd.f32 %v6361_v13, %v5179_v17  ;;  %v6363_v36 = vld [vmem:[#allocation12_spill] sm:$0xff]  ;;  %v5221_v33 = vpop.permute.xlu0 %2151  ;;  %v6369_v29 = vld [vmem:[#allocation81_spill] sm:$0xff] }
 0x46f   :  { %6357 = vst [vmem:[#allocation219_spill] sm:$0xff] %v5196_v3  ;;  %6360 = vst [vmem:[#allocation222_spill] sm:$0xff] %v5208_v28  ;;  %v5219_v6 = vadd.f32 %v6363_v36, %v5179_v17  ;;  %v2294_v5 = vadd.f32 %v6366_v7, %v5196_v3  ;;  %v2310_v28 = vadd.f32 %v6367_v37, %v5196_v3  ;;  %v6368_v46 = vld [vmem:[#allocation96_spill] sm:$0xff] }
 0x470   :  { %6362 = vst [vmem:[#allocation8_spill] sm:$0xff] %v5215_v26  ;;  %6365 = vst [vmem:[#allocation223_spill] sm:$0xff] %v5221_v33  ;;  %v2326_v62 = vadd.f32 %v6368_v46, %v5196_v3  ;;  %v5231_v20 = vadd.f32 %v6369_v29, %v5176_v12  ;;  %v3491_v13 = vpop.f32.mrb[8].mxu1  ;;  %v6371_v26 = vld [vmem:[#allocation42_spill] sm:$0xff]  ;;  %v2309_v7 = vadd.f32 %v6373_v63, %v5211_v4 }
 0x471   :  { %6364 = vst [vmem:[#allocation12_spill] sm:$0xff] %v5219_v6  ;;  %v2533_v36 = vadd.f32 %v6371_v26, %v5211_v4  ;;  %v6372_v6 = vld [vmem:[#allocation11_spill] sm:$0xff]  ;;  %v2325_v37 = vadd.f32 %v6374_v55, %v5211_v4  ;;  %v5242_v0 = vadd.f32 %v3491_v13, %v5169_v54  ;;  %v1151_v46 = vpop.f32.mrb[9].mxu1  ;;  %v6375_v29 = vld [vmem:[#allocation50_spill] sm:$0xff]  ;;  %v5248_v14 = vadd.f32 %v6376_v34, %v5211_v4 }
 0x472   :  { %6370 = vst [vmem:[#allocation89_spill] sm:$0xff] %v5231_v20  ;;  %v2293_v33 = vadd.f32 %v6372_v6, %v5211_v4  ;;  %v2534_v20 = vadd.f32 %v6375_v29, %v5196_v3  ;;  %v6377_v26 = vld [vmem:[#allocation27_spill] sm:$0xff]  ;;  %v5255_v63 = vadd.f32 %v5169_v54, %v1151_v46  ;;  %v2571_v25 = vmax.f32 %v2310_v28, %v2309_v7  ;;  %v6380_v29 = vld [vmem:[#allocation110_spill] sm:$0xff] }
 0x473   :  { %v5252_v6 = vadd.f32 %v6377_v26, %v5196_v3  ;;  %v2865_v55 = vmax.f32 %v2864_v9, %v2533_v36  ;;  %v2536_v47 = vadd.f32 %v6379_v57, %v5242_v0  ;;  %v2296_v35 = vadd.f32 %v6380_v29, %v5242_v0  ;;  %6382 = vst [vmem:[#allocation96_spill] sm:$0xff] %v5265_v23  ;;  %v6383_v46 = vld [vmem:[#allocation58_spill] sm:$0xff]  ;;  %v5273_v57 = vpop.permute.xlu0 %1619  ;;  %v6389_v23 = vld [vmem:[#allocation92_spill] sm:$0xff] }
 0x474   :  { %v2550_v13 = vmax.f32 %v2294_v5, %v2293_v33  ;;  %v2592_v34 = vmax.f32 %v2326_v62, %v2325_v37  ;;  %v3494_v26 = vpop.f32.mrb[10].mxu1  ;;  %v2535_v3 = vadd.f32 %v6383_v46, %v5255_v63  ;;  %v6384_v9 = vld [vmem:[#allocation26_spill] sm:$0xff]  ;;  %6386 = vst [vmem:[#allocation81_spill] sm:$0xff] %v5273_v57  ;;  %v2312_v7 = vadd.f32 %v6387_v61, %v5242_v0  ;;  %v6388_v37 = vld [vmem:[#allocation31_spill] sm:$0xff] }
 0x475   :  { %v2866_v24 = vmax.f32 %v2865_v55, %v2534_v20  ;;  %v2295_v5 = vadd.f32 %v6384_v9, %v5255_v63  ;;  %v6385_v33 = vld [vmem:[#allocation102_spill] sm:$0xff]  ;;  %v5276_v36 = vadd.f32 %v3494_v26, %v5169_v54  ;;  %v1161_v62 = vpop.f32.mrb[11].mxu1  ;;  %v2327_v29 = vadd.f32 %v6388_v37, %v5255_v63 }
 0x476   :  { %v2311_v28 = vadd.f32 %v6385_v33, %v5255_v63  ;;  %v5285_v55 = vadd.f32 %v5169_v54, %v1161_v62  ;;  %v2328_v61 = vadd.f32 %v4656_v50, %v5242_v0  ;;  %v6390_v20 = vld [vmem:[#allocation74_spill] sm:$0xff] }
 0x477   :  { %v2867_v46 = vmax.f32 %v2866_v24, %v2535_v3  ;;  %v2551_v9 = vmax.f32 %v2550_v13, %v2295_v5  ;;  %v2538_v26 = vadd.f32 %v6389_v23, %v5276_v36  ;;  %v2298_v43 = vadd.f32 %v4769_v30, %v5276_v36  ;;  %v6391_v13 = vld [vmem:[#allocation43_spill] sm:$0xff] }
 0x478   :  { %v2572_v33 = vmax.f32 %v2571_v25, %v2311_v28  ;;  %v2593_v57 = vmax.f32 %v2592_v34, %v2327_v29  ;;  %v3497_v37 = vpop.f32.mrb[12].mxu1  ;;  %v2537_v62 = vadd.f32 %v6390_v20, %v5285_v55  ;;  %v2297_v25 = vadd.f32 %v4681_v16, %v5285_v55 }
 0x479   :  { %v2868_v18 = vmax.f32 %v2867_v46, %v2536_v47  ;;  %v2552_v24 = vmax.f32 %v2551_v9, %v2296_v35  ;;  %v5300_v23 = vadd.f32 %v3497_v37, %v5169_v54  ;;  %v1171_v3 = vpop.f32.mrb[13].mxu1  ;;  %v2313_v34 = vadd.f32 %v6391_v13, %v5285_v55  ;;  %v5309_v47 = vpop.permute.xlu0 %2088  ;;  %v6392_v46 = vld [vmem:[#allocation51_spill] sm:$0xff] }
 0x47a   :  { %v2573_v30 = vmax.f32 %v2572_v33, %v2312_v7  ;;  %v2594_v50 = vmax.f32 %v2593_v57, %v2328_v61  ;;  %v5305_v5 = vadd.f32 %v5169_v54, %v1171_v3  ;;  %v2329_v35 = vadd.f32 %v4725_v52, %v5285_v55 }
 0x47b   :  { %v2869_v28 = vmax.f32 %v2868_v18, %v2537_v62  ;;  %v2553_v29 = vmax.f32 %v2552_v24, %v2297_v25  ;;  %v2540_v16 = vadd.f32 %v5008_v27, %v5300_v23  ;;  %v2300_v7 = vadd.f32 %v4864_v45, %v5300_v23  ;;  %v6393_v45 = vld [vmem:[#allocation59_spill] sm:$0xff] }
 0x47c   :  { %v2574_v20 = vmax.f32 %v2573_v30, %v2313_v34  ;;  %v2314_v57 = vadd.f32 %v6392_v46, %v5276_v36  ;;  %v3500_v9 = vpop.f32.mrb[14].mxu1  ;;  %v2539_v18 = vadd.f32 %v4962_v21, %v5305_v5  ;;  %v2299_v52 = vadd.f32 %v4840_v40, %v5305_v5  ;;  %v5329_v30 = vpop.permute.xlu1 %1753 }
 0x47d   :  { %v2870_v33 = vmax.f32 %v2869_v28, %v2538_v26  ;;  %v2554_v61 = vmax.f32 %v2553_v29, %v2298_v43  ;;  %v5322_v37 = vadd.f32 %v3500_v9, %v5169_v54  ;;  %v1181_v27 = vpop.f32.mrb[15].mxu1  ;;  %v2315_v24 = vadd.f32 %v6393_v45, %v5305_v5  ;;  %v6394_v43 = vld [vmem:[#allocation67_spill] sm:$0xff]  ;;  %v5343_v9 = vpop.permute.xlu0 %1686 }
 0x47e   :  { %v2575_v62 = vmax.f32 %v2574_v20, %v2314_v57  ;;  %v2595_v25 = vmax.f32 %v2594_v50, %v2329_v35  ;;  %v5327_v3 = vadd.f32 %v5169_v54, %v1181_v27  ;;  %v2316_v13 = vadd.f32 %v6394_v43, %v5300_v23 }
 0x47f   :  { %v2871_v21 = vmax.f32 %v2870_v33, %v2539_v18  ;;  %v2555_v26 = vmax.f32 %v2554_v61, %v2299_v52  ;;  %v2542_v40 = vadd.f32 %v5120_v10, %v5322_v37  ;;  %v2302_v34 = vadd.f32 %v4923_v51, %v5322_v37  ;;  %v6395_v33 = vld [vmem:[#allocation75_spill] sm:$0xff] }
 0x480   :  { %v2576_v28 = vmax.f32 %v2575_v62, %v2315_v24  ;;  %v2330_v50 = vadd.f32 %v4813_v42, %v5276_v36  ;;  %v3503_v29 = vpop.f32.mrb[16].mxu1  ;;  %v2541_v35 = vadd.f32 %v5040_v48, %v5327_v3  ;;  %v2301_v57 = vadd.f32 %v4895_v2, %v5327_v3  ;;  %v6396_v62 = vld [vmem:[#allocation95_spill] sm:$0xff] }
 0x481   :  { %v2872_v20 = vmax.f32 %v2871_v21, %v2540_v16  ;;  %v2556_v46 = vmax.f32 %v2555_v26, %v2300_v7  ;;  %v5346_v10 = vadd.f32 %v3503_v29, %v5169_v54  ;;  %v1191_v18 = vpop.f32.mrb[17].mxu1  ;;  %v2317_v61 = vadd.f32 %v6395_v33, %v5327_v3  ;;  %v6397_v24 = vld [vmem:[#allocation15_spill] sm:$0xff]  ;;  %v2290_v26 = vpop.permute.xlu1 %2289 }
 0x482   :  { %v2577_v51 = vmax.f32 %v2576_v28, %v2316_v13  ;;  %v2596_v42 = vmax.f32 %v2595_v25, %v2330_v50  ;;  %v5351_v52 = vadd.f32 %v5169_v54, %v1191_v18  ;;  %v2331_v7 = vadd.f32 %v4852_v11, %v5305_v5 }
 0x483   :  { %v2873_v48 = vmax.f32 %v2872_v20, %v2541_v35  ;;  %v2557_v16 = vmax.f32 %v2556_v46, %v2301_v57  ;;  %v2544_v2 = vadd.f32 %v5171_v15, %v5346_v10  ;;  %v2318_v45 = vadd.f32 %v6396_v62, %v5322_v37 }
 0x484   :  { %v2578_v27 = vmax.f32 %v2577_v51, %v2317_v61  ;;  %v5361_v21 = vadd.f32 %v6397_v24, %v5176_v12  ;;  %v3506_v25 = vpop.f32.mrb[18].mxu1  ;;  %v2543_v43 = vadd.f32 %v5152_v59, %v5351_v52  ;;  %v2303_v11 = vadd.f32 %v4949_v31, %v5351_v52 }
 0x485   :  { %v2874_v13 = vmax.f32 %v2873_v48, %v2542_v40  ;;  %v2558_v28 = vmax.f32 %v2557_v16, %v2302_v34  ;;  %v5368_v15 = vadd.f32 %v3506_v25, %v5169_v54  ;;  %v1201_v50 = vpop.f32.mrb[19].mxu1  ;;  %v2319_v35 = vadd.f32 %v4968_v60, %v5351_v52  ;;  %v2286_v40 = vpop.permute.xlu0 %2285 }
 0x486   :  { %6398 = vst [vmem:[#allocation42_spill] sm:$0xff] %v5361_v21  ;;  %v2579_v29 = vmax.f32 %v2578_v27, %v2318_v45  ;;  %v2597_v20 = vmax.f32 %v2596_v42, %v2331_v7  ;;  %v5373_v46 = vadd.f32 %v5169_v54, %v1201_v50  ;;  %v2304_v59 = vadd.f32 %v5002_v41, %v5346_v10 }
 0x487   :  { %v2875_v57 = vmax.f32 %v2874_v13, %v2543_v43  ;;  %v2559_v18 = vmax.f32 %v2558_v28, %v2303_v11  ;;  %v2546_v31 = vadd.f32 %v2290_v26, %v5368_v15  ;;  %v2320_v51 = vadd.f32 %v5012_v44, %v5346_v10  ;;  %v6400_v26 = vld [vmem:[#allocation19_spill] sm:$0xff] }
 0x488   :  { %v2580_v34 = vmax.f32 %v2579_v29, %v2319_v35  ;;  %v2332_v33 = vadd.f32 %v4876_v53, %v5300_v23  ;;  %v2545_v60 = vadd.f32 %v2286_v40, %v5373_v46  ;;  %v2305_v42 = vadd.f32 %v5034_v1, %v5373_v46 }
 0x489   :  { %v2876_v61 = vmax.f32 %v2875_v57, %v2544_v2  ;;  %v2560_v54 = vmax.f32 %v2559_v18, %v2304_v59  ;;  %v2321_v41 = vadd.f32 %v5044_v56, %v5373_v46  ;;  %v2333_v7 = vadd.f32 %v4909_v39, %v5327_v3  ;;  %v6405_v59 = vld [vmem:[#allocation185_spill] sm:$0xff] }
 0x48a   :  { %v2581_v48 = vmax.f32 %v2580_v34, %v2320_v51  ;;  %v2598_v16 = vmax.f32 %v2597_v20, %v2332_v33  ;;  %v5393_v53 = vadd.f32 %v5096_v8, %v5368_v15  ;;  %v5397_v2 = vadd.f32 %v5124_v58, %v5368_v15  ;;  %v6399_v8 = vld [vmem:[#allocation111_spill] sm:$0xff]  ;;  %v6404_v20 = vld [vmem:[#allocation122_spill] sm:$0xff]  ;;  %v6408_v34 = vld [vmem:[#allocation128_spill] sm:$0xff] }
 0x48b   :  { %v2877_v27 = vmax.f32 %v2876_v61, %v2545_v60  ;;  %v5389_v44 = vmax.f32 %v2560_v54, %v2305_v42  ;;  %v2334_v56 = vadd.f32 %v4933_v32, %v5322_v37  ;;  %v2335_v39 = vadd.f32 %v4980_v38, %v5351_v52  ;;  %v6402_v38 = vld [vmem:[#allocation22_spill] sm:$0xff]  ;;  %v6411_v60 = vld [vmem:[#allocation140_spill] sm:$0xff] }
 0x48c   :  { %v5399_v1 = vmax.f32 %v2581_v48, %v2321_v41  ;;  %v2599_v62 = vmax.f32 %v2598_v16, %v2333_v7  ;;  %v2343_v25 = vadd.f32 %v6399_v8, %v5255_v63  ;;  %v5411_v58 = vadd.f32 %v6400_v26, %v5179_v17  ;;  %v6412_v42 = vld [vmem:[#allocation146_spill] sm:$0xff]  ;;  %v6413_v41 = vld [vmem:[#allocation157_spill] sm:$0xff]  ;;  %v6414_v7 = vld [vmem:[#allocation219_spill] sm:$0xff] }
 0x48d   :  { %v2878_v45 = vmax.f32 %v2877_v27, %v2546_v31  ;;  %v2336_v32 = vadd.f32 %v5018_v49, %v5346_v10  ;;  %v2357_v28 = vadd.f32 %v6402_v38, %v5211_v4  ;;  %v6403_v50 = vmax.f32 %v5252_v6, %v5248_v14  ;;  %v6406_v49 = vld [vmem:[#allocation198_spill] sm:$0xff]  ;;  %v6415_v27 = vld [vmem:[#allocation107_spill] sm:$0xff]  ;;  %v6417_v8 = vld [vmem:[#allocation181_spill] sm:$0xff] }
 0x48e   :  { %6401 = vst [vmem:[#allocation11_spill] sm:$0xff] %v5411_v58  ;;  %v2600_v13 = vmax.f32 %v2599_v62, %v2334_v56  ;;  %v2344_v35 = vadd.f32 %v4692_v22, %v5242_v0  ;;  %v2345_v57 = vadd.f32 %v6404_v20, %v5285_v55  ;;  %v2337_v40 = vadd.f32 %v6405_v59, %v5373_v46  ;;  %v6410_v6 = vld [vmem:[#allocation134_spill] sm:$0xff]  ;;  %v6418_v26 = vld [vmem:[#allocation39_spill] sm:$0xff]  ;;  %v6439_v20 = vld [vmem:[#allocation60_spill] sm:$0xff] }
 0x48f   :  { %v2879_v11 = vrot.slane %v2878_v45, 4  ;;  %v2614_v29 = vmax.f32 %v6403_v50, %v2343_v25  ;;  %v5430_v31 = vadd.f32 %v6406_v49, %v5368_v15  ;;  %v2346_v51 = vadd.f32 %v6408_v34, %v5276_v36  ;;  %v6420_v38 = vld [vmem:[#allocation194_spill] sm:$0xff]  ;;  %v6423_v49 = vld [vmem:[#allocation55_spill] sm:$0xff] }
 0x490   :  { %v2601_v18 = vmax.f32 %v2600_v13, %v2335_v39  ;;  %v2347_v22 = vadd.f32 %v6410_v6, %v5305_v5  ;;  %v2348_v61 = vadd.f32 %v6411_v60, %v5300_v23  ;;  %v2349_v48 = vadd.f32 %v6412_v42, %v5327_v3  ;;  %v6416_v39 = vld [vmem:[#allocation169_spill] sm:$0xff]  ;;  %v6421_v50 = vld [vmem:[#allocation206_spill] sm:$0xff]  ;;  %v6424_v6 = vld [vmem:[#allocation63_spill] sm:$0xff] }
 0x491   :  { %6407 = vst [vmem:[#allocation79_spill] sm:$0xff] %v5430_v31  ;;  %v5434_v33 = vmax.f32 %v2878_v45, %v2879_v11  ;;  %v2615_v14 = vmax.f32 %v2614_v29, %v2344_v35  ;;  %v2350_v16 = vadd.f32 %v6413_v41, %v5322_v37  ;;  %v2358_v62 = vadd.f32 %v6415_v27, %v6414_v7  ;;  %v6426_v41 = vld [vmem:[#allocation85_spill] sm:$0xff] }
 0x492   :  { %v2602_v54 = vmax.f32 %v2601_v18, %v2336_v32  ;;  %v2351_v45 = vadd.f32 %v6416_v39, %v5351_v52  ;;  %v5450_v25 = vadd.f32 %v6417_v8, %v5346_v10  ;;  %v2359_v13 = vadd.f32 %v6418_v26, %v5255_v63  ;;  %v6422_v18 = vld [vmem:[#allocation47_spill] sm:$0xff]  ;;  %v6427_v27 = vld [vmem:[#allocation153_spill] sm:$0xff] }
 0x493   :  { %6409 = vst [vmem:[#allocation14_spill] sm:$0xff] %v5434_v33  ;;  %v2616_v56 = vmax.f32 %v2615_v14, %v2345_v57  ;;  %v2353_v11 = vadd.f32 %v6420_v38, %v5373_v46  ;;  %v5460_v29 = vadd.f32 %v6421_v50, %v5368_v15  ;;  %v2634_v35 = vmax.f32 %v2358_v62, %v2357_v28  ;;  %v6429_v26 = vld [vmem:[#allocation177_spill] sm:$0xff]  ;;  %v6430_v38 = vld [vmem:[#allocation190_spill] sm:$0xff] }
 0x494   :  { %v5454_v32 = vmax.f32 %v2602_v54, %v2337_v40  ;;  %v2360_v59 = vadd.f32 %v6422_v18, %v5242_v0  ;;  %v2361_v34 = vadd.f32 %v6423_v49, %v5285_v55  ;;  %v2362_v60 = vadd.f32 %v6424_v6, %v5276_v36  ;;  %v6425_v54 = vld [vmem:[#allocation71_spill] sm:$0xff] }
 0x495   :  { %v2617_v57 = vmax.f32 %v2616_v56, %v2346_v51  ;;  %v2635_v14 = vmax.f32 %v2634_v35, %v2359_v13  ;;  %v2363_v42 = vadd.f32 %v6425_v54, %v5305_v5  ;;  %v2364_v51 = vadd.f32 %v6426_v41, %v5300_v23  ;;  %v6428_v56 = vld [vmem:[#allocation165_spill] sm:$0xff]  ;;  %v6431_v35 = vld [vmem:[#allocation203_spill] sm:$0xff] }
 0x496   :  { %6419 = vst [vmem:[#allocation50_spill] sm:$0xff] %v5454_v32  ;;  %v2365_v62 = vadd.f32 %v6427_v27, %v5327_v3  ;;  %v2366_v39 = vadd.f32 %v6428_v56, %v5322_v37  ;;  %v2367_v13 = vadd.f32 %v6429_v26, %v5351_v52  ;;  %v5483_v50 = vadd.f32 %v6430_v38, %v5346_v10  ;;  %v6432_v18 = vld [vmem:[#allocation211_spill] sm:$0xff]  ;;  %v6435_v27 = vld [vmem:[#allocation93_spill] sm:$0xff]  ;;  %v6437_v26 = vld [vmem:[#allocation44_spill] sm:$0xff] }
 0x497   :  { %v2618_v28 = vmax.f32 %v2617_v57, %v2347_v22  ;;  %v2636_v8 = vmax.f32 %v2635_v14, %v2360_v59  ;;  %v5487_v22 = vadd.f32 %v6431_v35, %v5373_v46  ;;  %v5491_v49 = vadd.f32 %v6432_v18, %v5368_v15  ;;  %v6433_v6 = vld [vmem:[#allocation103_spill] sm:$0xff]  ;;  %v6434_v59 = vld [vmem:[#allocation36_spill] sm:$0xff] }
 0x498   :  { %v2373_v54 = vadd.f32 %v6433_v6, %v5211_v4  ;;  %v2374_v14 = vadd.f32 %v6434_v59, %v6414_v7  ;;  %v5499_v56 = vadd.f32 %v6435_v27, %v5176_v12  ;;  %v2375_v38 = vadd.f32 %v6437_v26, %v5255_v63  ;;  %v6440_v6 = vld [vmem:[#allocation68_spill] sm:$0xff]  ;;  %v6442_v27 = vld [vmem:[#allocation97_spill] sm:$0xff] }
 0x499   :  { %v2619_v57 = vmax.f32 %v2618_v28, %v2348_v61  ;;  %v2637_v41 = vmax.f32 %v2636_v8, %v2361_v34  ;;  %v6438_v61 = vld [vmem:[#allocation52_spill] sm:$0xff]  ;;  %v2377_v40 = vadd.f32 %v6439_v20, %v5285_v55  ;;  %v2378_v43 = vadd.f32 %v6440_v6, %v5276_v36  ;;  %v6441_v34 = vld [vmem:[#allocation77_spill] sm:$0xff]  ;;  %v6447_v6 = vld [vmem:[#allocation210_spill] sm:$0xff] }
 0x49a   :  { %6436 = vst [vmem:[#allocation91_spill] sm:$0xff] %v5499_v56  ;;  %v2376_v28 = vadd.f32 %v6438_v61, %v5242_v0  ;;  %v2655_v18 = vmax.f32 %v2374_v14, %v2373_v54  ;;  %v2379_v8 = vadd.f32 %v6441_v34, %v5305_v5  ;;  %v2380_v24 = vadd.f32 %v6442_v27, %v5300_v23  ;;  %v6443_v26 = vld [vmem:[#allocation160_spill] sm:$0xff]  ;;  %v6448_v27 = vld [vmem:[#allocation81_spill] sm:$0xff] }
 0x49b   :  { %v2620_v35 = vmax.f32 %v2619_v57, %v2349_v48  ;;  %v2638_v59 = vmax.f32 %v2637_v41, %v2362_v60  ;;  %v2381_v33 = vadd.f32 %v6443_v26, %v5327_v3  ;;  %v6444_v48 = vld [vmem:[#allocation172_spill] sm:$0xff]  ;;  %v6446_v60 = vld [vmem:[#allocation197_spill] sm:$0xff]  ;;  %v5527_v34 = vadd.f32 %v6447_v6, %v5373_v46  ;;  %v6455_v6 = vld [vmem:[#allocation114_spill] sm:$0xff] }
 0x49c   :  { %v2656_v61 = vmax.f32 %v2655_v18, %v2375_v38  ;;  %v5517_v57 = vadd.f32 %v6444_v48, %v5322_v37  ;;  %v6445_v20 = vld [vmem:[#allocation184_spill] sm:$0xff]  ;;  %v5523_v41 = vadd.f32 %v6446_v60, %v5346_v10  ;;  %v6450_v18 = vld [vmem:[#allocation98_spill] sm:$0xff]  ;;  %v2390_v56 = vadd.f32 %v6455_v6, %v6414_v7 }
 0x49d   :  { %v2621_v58 = vmax.f32 %v2620_v35, %v2350_v16  ;;  %v2383_v54 = vadd.f32 %v6445_v20, %v5351_v52  ;;  %v2639_v14 = vmax.f32 %v2638_v59, %v2363_v42  ;;  %v5531_v16 = vadd.f32 %v6448_v27, %v5368_v15  ;;  %v6452_v42 = vld [vmem:[#allocation32_spill] sm:$0xff]  ;;  %v6453_v20 = vld [vmem:[#allocation23_spill] sm:$0xff] }
 0x49e   :  { %v2657_v35 = vmax.f32 %v2656_v61, %v2376_v28  ;;  %v5535_v26 = vadd.f32 %v6450_v18, %v5179_v17  ;;  %v2389_v59 = vadd.f32 %v6452_v42, %v5211_v4  ;;  %v5541_v60 = vadd.f32 %v6453_v20, %v5176_v12  ;;  %v6456_v27 = vld [vmem:[#allocation119_spill] sm:$0xff]  ;;  %v6457_v28 = vld [vmem:[#allocation125_spill] sm:$0xff] }
 0x49f   :  { %6449 = vst [vmem:[#allocation27_spill] sm:$0xff] %v5531_v16  ;;  %v2622_v38 = vmax.f32 %v2621_v58, %v2351_v45  ;;  %v2640_v48 = vmax.f32 %v2639_v14, %v2364_v51  ;;  %v2391_v31 = vadd.f32 %v6456_v27, %v5255_v63  ;;  %v2392_v61 = vadd.f32 %v6457_v28, %v5242_v0  ;;  %v6458_v18 = vld [vmem:[#allocation131_spill] sm:$0xff]  ;;  %v6459_v20 = vld [vmem:[#allocation137_spill] sm:$0xff] }
 0x4a0   :  { %6451 = vst [vmem:[#allocation66_spill] sm:$0xff] %v5535_v26  ;;  %6454 = vst [vmem:[#allocation110_spill] sm:$0xff] %v5541_v60  ;;  %v2658_v45 = vmax.f32 %v2657_v35, %v2377_v40  ;;  %v2393_v42 = vadd.f32 %v6458_v18, %v5285_v55  ;;  %v2676_v14 = vmax.f32 %v2390_v56, %v2389_v59  ;;  %v6460_v60 = vld [vmem:[#allocation143_spill] sm:$0xff] }
 0x4a1   :  { %v2623_v58 = vmax.f32 %v2622_v38, %v5450_v25  ;;  %v2641_v51 = vmax.f32 %v2640_v48, %v2365_v62  ;;  %v2394_v26 = vadd.f32 %v6459_v20, %v5276_v36  ;;  %v2395_v6 = vadd.f32 %v6460_v60, %v5305_v5  ;;  %v6461_v25 = vld [vmem:[#allocation150_spill] sm:$0xff]  ;;  %v6464_v59 = vld [vmem:[#allocation187_spill] sm:$0xff] }
 0x4a2   :  { %v2659_v27 = vmax.f32 %v2658_v45, %v2378_v43  ;;  %v2396_v40 = vadd.f32 %v6461_v25, %v5300_v23  ;;  %v6462_v38 = vld [vmem:[#allocation162_spill] sm:$0xff]  ;;  %v2677_v21 = vmax.f32 %v2676_v14, %v2391_v31  ;;  %v2399_v48 = vadd.f32 %v6464_v59, %v5351_v52  ;;  %v6465_v43 = vld [vmem:[#allocation200_spill] sm:$0xff]  ;;  %v6466_v45 = vld [vmem:[#allocation215_spill] sm:$0xff] }
 0x4a3   :  { %v5556_v32 = vmax.f32 %v2623_v58, %v2353_v11  ;;  %v2397_v35 = vadd.f32 %v6462_v38, %v5327_v3  ;;  %v2642_v28 = vmax.f32 %v2641_v51, %v2366_v39  ;;  %v6463_v62 = vld [vmem:[#allocation174_spill] sm:$0xff]  ;;  %v5572_v58 = vadd.f32 %v6465_v43, %v5346_v10  ;;  %v6468_v14 = vld [vmem:[#allocation28_spill] sm:$0xff]  ;;  %v6471_v38 = vld [vmem:[#allocation117_spill] sm:$0xff] }
 0x4a4   :  { %v5564_v56 = vadd.f32 %v6463_v62, %v5322_v37  ;;  %v2660_v60 = vmax.f32 %v2659_v27, %v2379_v8  ;;  %v5576_v18 = vadd.f32 %v6466_v45, %v5373_v46  ;;  %v2678_v39 = vmax.f32 %v2677_v21, %v2392_v61  ;;  %v6470_v8 = vld [vmem:[#allocation112_spill] sm:$0xff]  ;;  %v6472_v59 = vld [vmem:[#allocation123_spill] sm:$0xff] }
 0x4a5   :  { %v2643_v31 = vmax.f32 %v2642_v28, %v2367_v13  ;;  %v5580_v51 = vadd.f32 %v5343_v9, %v5368_v15  ;;  %v5584_v20 = vadd.f32 %v6468_v14, %v5179_v17  ;;  %v2405_v27 = vadd.f32 %v6470_v8, %v5211_v4  ;;  %v6473_v9 = vld [vmem:[#allocation104_spill] sm:$0xff]  ;;  %v6475_v28 = vld [vmem:[#allocation129_spill] sm:$0xff]  ;;  %v6476_v14 = vld [vmem:[#allocation135_spill] sm:$0xff] }
 0x4a6   :  { %v2661_v25 = vmax.f32 %v2660_v60, %v2380_v24  ;;  %v2406_v62 = vadd.f32 %v6471_v38, %v6414_v7  ;;  %v2407_v43 = vadd.f32 %v6472_v59, %v5255_v63  ;;  %v2679_v13 = vmax.f32 %v2678_v39, %v2393_v42  ;;  %v6477_v38 = vld [vmem:[#allocation141_spill] sm:$0xff]  ;;  %v6478_v42 = vld [vmem:[#allocation147_spill] sm:$0xff]  ;;  %v6479_v39 = vld [vmem:[#allocation158_spill] sm:$0xff] }
 0x4a7   :  { %6467 = vst [vmem:[#allocation84_spill] sm:$0xff] %v5580_v51  ;;  %6469 = vst [vmem:[#allocation58_spill] sm:$0xff] %v5584_v20  ;;  %v2644_v21 = vmax.f32 %v2643_v31, %v5483_v50  ;;  %v5595_v61 = vadd.f32 %v6473_v9, %v5176_v12  ;;  %v2408_v45 = vadd.f32 %v6475_v28, %v5242_v0 }
 0x4a8   :  { %v2662_v24 = vmax.f32 %v2661_v25, %v2381_v33  ;;  %v2697_v60 = vmax.f32 %v2406_v62, %v2405_v27  ;;  %v2409_v8 = vadd.f32 %v6476_v14, %v5285_v55  ;;  %v2410_v11 = vadd.f32 %v6477_v38, %v5276_v36  ;;  %v6480_v25 = vld [vmem:[#allocation170_spill] sm:$0xff]  ;;  %v6483_v38 = vld [vmem:[#allocation208_spill] sm:$0xff] }
 0x4a9   :  { %6474 = vst [vmem:[#allocation26_spill] sm:$0xff] %v5595_v61  ;;  %v5604_v59 = vmax.f32 %v2644_v21, %v5487_v22  ;;  %v2680_v50 = vmax.f32 %v2679_v13, %v2394_v26  ;;  %v2411_v31 = vadd.f32 %v6478_v42, %v5305_v5  ;;  %v2412_v9 = vadd.f32 %v6479_v39, %v5300_v23  ;;  %v6481_v62 = vld [vmem:[#allocation182_spill] sm:$0xff]  ;;  %v6482_v26 = vld [vmem:[#allocation195_spill] sm:$0xff]  ;;  %v6514_v61 = vld [vmem:[#allocation120_spill] sm:$0xff] }
 0x4aa   :  { %v2663_v28 = vmax.f32 %v2662_v24, %v5517_v57  ;;  %v2698_v33 = vmax.f32 %v2697_v60, %v2407_v43  ;;  %v2413_v27 = vadd.f32 %v6480_v25, %v5327_v3  ;;  %v2414_v14 = vadd.f32 %v6481_v62, %v5322_v37  ;;  %v6484_v43 = vld [vmem:[#allocation216_spill] sm:$0xff]  ;;  %v6488_v62 = vld [vmem:[#allocation86_spill] sm:$0xff] }
 0x4ab   :  { %v2681_v21 = vmax.f32 %v2680_v50, %v2395_v6  ;;  %v2415_v13 = vadd.f32 %v6482_v26, %v5351_v52  ;;  %v5621_v42 = vadd.f32 %v6483_v38, %v5346_v10  ;;  %v5625_v24 = vadd.f32 %v6484_v43, %v5373_v46  ;;  %v6486_v6 = vld [vmem:[#allocation9_spill] sm:$0xff]  ;;  %v6489_v38 = vld [vmem:[#allocation99_spill] sm:$0xff] }
 0x4ac   :  { %v2664_v39 = vmax.f32 %v2663_v28, %v2383_v54  ;;  %v2699_v57 = vmax.f32 %v2698_v33, %v2408_v45  ;;  %v5629_v60 = vadd.f32 %v5329_v30, %v5368_v15  ;;  %v5633_v50 = vadd.f32 %v6486_v6, %v5179_v17  ;;  %v6490_v33 = vld [vmem:[#allocation76_spill] sm:$0xff] }
 0x4ad   :  { %v2682_v25 = vmax.f32 %v2681_v21, %v2396_v40  ;;  %v2421_v26 = vadd.f32 %v6488_v62, %v5211_v4  ;;  %v2422_v54 = vadd.f32 %v6489_v38, %v6414_v7  ;;  %v5642_v43 = vadd.f32 %v6490_v33, %v5176_v12  ;;  %v6492_v30 = vld [vmem:[#allocation108_spill] sm:$0xff] }
 0x4ae   :  { %6485 = vst [vmem:[#allocation102_spill] sm:$0xff] %v5629_v60  ;;  %6487 = vst [vmem:[#allocation35_spill] sm:$0xff] %v5633_v50  ;;  %v2665_v45 = vmax.f32 %v2664_v39, %v5523_v41  ;;  %v2700_v28 = vmax.f32 %v2699_v57, %v2409_v8  ;;  %v2423_v40 = vadd.f32 %v6492_v30, %v5255_v63  ;;  %v6493_v6 = vld [vmem:[#allocation40_spill] sm:$0xff] }
 0x4af   :  { %6491 = vst [vmem:[#allocation31_spill] sm:$0xff] %v5642_v43  ;;  %v2683_v21 = vmax.f32 %v2682_v25, %v2397_v35  ;;  %v2718_v22 = vmax.f32 %v2422_v54, %v2421_v26  ;;  %v2424_v50 = vadd.f32 %v6493_v6, %v5242_v0  ;;  %v6494_v62 = vld [vmem:[#allocation48_spill] sm:$0xff]  ;;  %v6499_v54 = vld [vmem:[#allocation87_spill] sm:$0xff] }
 0x4b0   :  { %v2425_v20 = vadd.f32 %v6494_v62, %v5285_v55  ;;  %v5651_v38 = vmax.f32 %v2665_v45, %v5527_v34  ;;  %v2701_v41 = vmax.f32 %v2700_v28, %v2410_v11  ;;  %v6496_v8 = vld [vmem:[#allocation56_spill] sm:$0xff]  ;;  %v2429_v6 = vadd.f32 %v6499_v54, %v5327_v3  ;;  %v6500_v11 = vld [vmem:[#allocation155_spill] sm:$0xff]  ;;  %v6504_v54 = vld [vmem:[#allocation205_spill] sm:$0xff] }
 0x4b1   :  { %v2426_v39 = vadd.f32 %v6496_v8, %v5276_v36  ;;  %v6497_v57 = vld [vmem:[#allocation64_spill] sm:$0xff]  ;;  %v2684_v30 = vmax.f32 %v2683_v21, %v5564_v56  ;;  %v2719_v35 = vmax.f32 %v2718_v22, %v2423_v40  ;;  %v2430_v28 = vadd.f32 %v6500_v11, %v5322_v37  ;;  %v6501_v62 = vld [vmem:[#allocation167_spill] sm:$0xff] }
 0x4b2   :  { %6495 = vst [vmem:[#allocation92_spill] sm:$0xff] %v5651_v38  ;;  %v2427_v33 = vadd.f32 %v6497_v57, %v5305_v5  ;;  %v6498_v25 = vld [vmem:[#allocation72_spill] sm:$0xff]  ;;  %v2702_v45 = vmax.f32 %v2701_v41, %v2411_v31  ;;  %v2431_v8 = vadd.f32 %v6501_v62, %v5351_v52  ;;  %v6502_v56 = vld [vmem:[#allocation179_spill] sm:$0xff]  ;;  %v5678_v31 = vadd.f32 %v6504_v54, %v5368_v15  ;;  %v6506_v41 = vld [vmem:[#allocation10_spill] sm:$0xff] }
 0x4b3   :  { %v2428_v26 = vadd.f32 %v6498_v25, %v5300_v23  ;;  %v2685_v57 = vmax.f32 %v2684_v30, %v2399_v48  ;;  %v2720_v43 = vmax.f32 %v2719_v35, %v2424_v50  ;;  %v5670_v22 = vadd.f32 %v6502_v56, %v5346_v10  ;;  %v6503_v40 = vld [vmem:[#allocation192_spill] sm:$0xff]  ;;  %v6511_v54 = vld [vmem:[#allocation78_spill] sm:$0xff] }
 0x4b4   :  { %v5674_v21 = vadd.f32 %v6503_v40, %v5373_v46  ;;  %v2703_v25 = vmax.f32 %v2702_v45, %v2412_v9  ;;  %6505 = vst [vmem:[#allocation74_spill] sm:$0xff] %v5678_v31  ;;  %v5682_v11 = vadd.f32 %v6506_v41, %v5179_v17  ;;  %v6508_v48 = vld [vmem:[#allocation16_spill] sm:$0xff]  ;;  %v6510_v40 = vld [vmem:[#allocation33_spill] sm:$0xff]  ;;  %v5693_v34 = vadd.f32 %v6511_v54, %v5176_v12  ;;  %v6513_v41 = vld [vmem:[#allocation115_spill] sm:$0xff] }
 0x4b5   :  { %v2437_v50 = vadd.f32 %v6508_v48, %v5211_v4  ;;  %v2686_v30 = vmax.f32 %v2685_v57, %v5572_v58  ;;  %v2721_v35 = vmax.f32 %v2720_v43, %v2425_v20  ;;  %v6509_v62 = vld [vmem:[#allocation24_spill] sm:$0xff]  ;;  %v2439_v9 = vadd.f32 %v6510_v40, %v5255_v63  ;;  %v6516_v57 = vld [vmem:[#allocation126_spill] sm:$0xff] }
 0x4b6   :  { %6507 = vst [vmem:[#allocation43_spill] sm:$0xff] %v5682_v11  ;;  %v2438_v56 = vadd.f32 %v6509_v62, %v6414_v7  ;;  %v2704_v45 = vmax.f32 %v2703_v25, %v2413_v27  ;;  %6512 = vst [vmem:[#allocation51_spill] sm:$0xff] %v5693_v34  ;;  %v2440_v11 = vadd.f32 %v6513_v41, %v5242_v0  ;;  %v6517_v27 = vld [vmem:[#allocation132_spill] sm:$0xff]  ;;  %v6518_v54 = vld [vmem:[#allocation138_spill] sm:$0xff] }
 0x4b7   :  { %v2441_v48 = vadd.f32 %v6514_v61, %v5285_v55  ;;  %v5700_v58 = vmax.f32 %v2686_v30, %v5576_v18  ;;  %v2722_v20 = vmax.f32 %v2721_v35, %v2426_v39  ;;  %v2442_v62 = vadd.f32 %v6516_v57, %v5276_v36  ;;  %v6519_v41 = vld [vmem:[#allocation144_spill] sm:$0xff] }
 0x4b8   :  { %v2739_v43 = vmax.f32 %v2438_v56, %v2437_v50  ;;  %v2705_v40 = vmax.f32 %v2704_v45, %v2414_v14  ;;  %v2443_v25 = vadd.f32 %v6517_v27, %v5305_v5  ;;  %v2444_v34 = vadd.f32 %v6518_v54, %v5300_v23  ;;  %v6520_v39 = vld [vmem:[#allocation152_spill] sm:$0xff]  ;;  %v6523_v27 = vld [vmem:[#allocation189_spill] sm:$0xff] }
 0x4b9   :  { %6515 = vst [vmem:[#allocation59_spill] sm:$0xff] %v5700_v58  ;;  %v2445_v16 = vadd.f32 %v6519_v41, %v5327_v3  ;;  %v2723_v18 = vmax.f32 %v2722_v20, %v2427_v33  ;;  %v2446_v50 = vadd.f32 %v6520_v39, %v5322_v37  ;;  %v6521_v14 = vld [vmem:[#allocation164_spill] sm:$0xff]  ;;  %v5722_v54 = vadd.f32 %v6523_v27, %v5373_v46  ;;  %v6524_v33 = vld [vmem:[#allocation202_spill] sm:$0xff]  ;;  %v6526_v20 = vld [vmem:[#allocation13_spill] sm:$0xff] }
 0x4ba   :  { %v2740_v30 = vmax.f32 %v2739_v43, %v2439_v9  ;;  %v2706_v35 = vmax.f32 %v2705_v40, %v2415_v13  ;;  %v2447_v56 = vadd.f32 %v6521_v14, %v5351_v52  ;;  %v6522_v45 = vld [vmem:[#allocation176_spill] sm:$0xff]  ;;  %v5726_v9 = vadd.f32 %v6524_v33, %v5368_v15  ;;  %v6529_v14 = vld [vmem:[#allocation29_spill] sm:$0xff] }
 0x4bb   :  { %v5718_v57 = vadd.f32 %v6522_v45, %v5346_v10  ;;  %v2724_v41 = vmax.f32 %v2723_v18, %v2428_v26  ;;  %v5730_v13 = vadd.f32 %v6526_v20, %v5179_v17  ;;  %v6528_v40 = vld [vmem:[#allocation20_spill] sm:$0xff]  ;;  %v2454_v45 = vadd.f32 %v6529_v14, %v6414_v7  ;;  %v6530_v27 = vld [vmem:[#allocation37_spill] sm:$0xff] }
 0x4bc   :  { %v2741_v38 = vmax.f32 %v2740_v30, %v2440_v11  ;;  %6525 = vst [vmem:[#allocation67_spill] sm:$0xff] %v5726_v9  ;;  %v2707_v43 = vmax.f32 %v2706_v35, %v5621_v42  ;;  %v2453_v39 = vadd.f32 %v6528_v40, %v5211_v4  ;;  %v2455_v26 = vadd.f32 %v6530_v27, %v5255_v63  ;;  %v6531_v30 = vld [vmem:[#allocation83_spill] sm:$0xff]  ;;  %v6533_v20 = vld [vmem:[#allocation45_spill] sm:$0xff] }
 0x4bd   :  { %6527 = vst [vmem:[#allocation75_spill] sm:$0xff] %v5730_v13  ;;  %v2725_v11 = vmax.f32 %v2724_v41, %v2429_v6  ;;  %v5741_v33 = vadd.f32 %v6531_v30, %v5176_v12  ;;  %v2456_v61 = vadd.f32 %v6533_v20, %v5242_v0  ;;  %v6535_v40 = vld [vmem:[#allocation53_spill] sm:$0xff]  ;;  %v6538_v41 = vld [vmem:[#allocation80_spill] sm:$0xff] }
 0x4be   :  { %v2742_v18 = vmax.f32 %v2741_v38, %v2441_v48  ;;  %v5746_v42 = vmax.f32 %v2707_v43, %v5625_v24  ;;  %v2760_v35 = vmax.f32 %v2454_v45, %v2453_v39  ;;  %v2457_v13 = vadd.f32 %v6535_v40, %v5285_v55  ;;  %v6536_v14 = vld [vmem:[#allocation61_spill] sm:$0xff] }
 0x4bf   :  { %6532 = vst [vmem:[#allocation95_spill] sm:$0xff] %v5741_v33  ;;  %v2458_v51 = vadd.f32 %v6536_v14, %v5276_v36  ;;  %v2726_v27 = vmax.f32 %v2725_v11, %v2430_v28  ;;  %v6537_v38 = vld [vmem:[#allocation69_spill] sm:$0xff]  ;;  %v2460_v30 = vadd.f32 %v6538_v41, %v5300_v23  ;;  %v6542_v11 = vld [vmem:[#allocation186_spill] sm:$0xff]  ;;  %v6543_v41 = vld [vmem:[#allocation199_spill] sm:$0xff] }
 0x4c0   :  { %6534 = vst [vmem:[#allocation15_spill] sm:$0xff] %v5746_v42  ;;  %v2743_v6 = vmax.f32 %v2742_v18, %v2442_v62  ;;  %v2459_v48 = vadd.f32 %v6537_v38, %v5305_v5  ;;  %v2761_v24 = vmax.f32 %v2760_v35, %v2455_v26  ;;  %v6539_v43 = vld [vmem:[#allocation149_spill] sm:$0xff]  ;;  %v5766_v18 = vadd.f32 %v6542_v11, %v5346_v10  ;;  %v6544_v26 = vld [vmem:[#allocation212_spill] sm:$0xff] }
 0x4c1   :  { %v2461_v39 = vadd.f32 %v6539_v43, %v5327_v3  ;;  %v6540_v45 = vld [vmem:[#allocation161_spill] sm:$0xff]  ;;  %v2727_v33 = vmax.f32 %v2726_v27, %v2431_v8  ;;  %v5770_v20 = vadd.f32 %v6543_v41, %v5373_v46  ;;  %v5774_v35 = vadd.f32 %v6544_v26, %v5368_v15  ;;  %v6545_v43 = vld [vmem:[#allocation88_spill] sm:$0xff] }
 0x4c2   :  { %v2462_v40 = vadd.f32 %v6540_v45, %v5322_v37  ;;  %v2744_v14 = vmax.f32 %v2743_v6, %v2443_v25  ;;  %v6541_v28 = vld [vmem:[#allocation173_spill] sm:$0xff]  ;;  %v2762_v38 = vmax.f32 %v2761_v24, %v2456_v61  ;;  %v5778_v8 = vadd.f32 %v6545_v43, %v5179_v17  ;;  %v6547_v6 = vld [vmem:[#allocation100_spill] sm:$0xff] }
 0x4c3   :  { %v2463_v62 = vadd.f32 %v6541_v28, %v5351_v52  ;;  %v2728_v25 = vmax.f32 %v2727_v33, %v5670_v22  ;;  %v2469_v45 = vadd.f32 %v6547_v6, %v5211_v4  ;;  %v6548_v61 = vld [vmem:[#allocation109_spill] sm:$0xff] }
 0x4c4   :  { %6546 = vst [vmem:[#allocation111_spill] sm:$0xff] %v5778_v8  ;;  %v2745_v27 = vmax.f32 %v2744_v14, %v2444_v34  ;;  %v2470_v24 = vadd.f32 %v6548_v61, %v6414_v7  ;;  %v2763_v28 = vmax.f32 %v2762_v38, %v2457_v13  ;;  %v6549_v11 = vld [vmem:[#allocation17_spill] sm:$0xff] }
 0x4c5   :  { %v5787_v41 = vadd.f32 %v6549_v11, %v5176_v12  ;;  %v6551_v26 = vld [vmem:[#allocation41_spill] sm:$0xff]  ;;  %v5794_v22 = vmax.f32 %v2728_v25, %v5674_v21 }
 0x4c6   :  { %v2471_v60 = vadd.f32 %v6551_v26, %v5255_v63  ;;  %v6552_v43 = vld [vmem:[#allocation49_spill] sm:$0xff]  ;;  %v2746_v34 = vmax.f32 %v2745_v27, %v2445_v16  ;;  %v2781_v33 = vmax.f32 %v2470_v24, %v2469_v45  ;;  %v2764_v61 = vmax.f32 %v2763_v28, %v2458_v51  ;;  %v6556_v26 = vld [vmem:[#allocation90_spill] sm:$0xff]  ;;  %v6557_v16 = vld [vmem:[#allocation156_spill] sm:$0xff] }
 0x4c7   :  { %6550 = vst [vmem:[#allocation19_spill] sm:$0xff] %v5787_v41  ;;  %v2472_v8 = vadd.f32 %v6552_v43, %v5242_v0  ;;  %v6553_v14 = vld [vmem:[#allocation57_spill] sm:$0xff]  ;;  %v2476_v42 = vadd.f32 %v6556_v26, %v5300_v23  ;;  %v2477_v27 = vadd.f32 %v6557_v16, %v5327_v3  ;;  %v6558_v51 = vld [vmem:[#allocation168_spill] sm:$0xff]  ;;  %v6561_v43 = vld [vmem:[#allocation207_spill] sm:$0xff] }
 0x4c8   :  { %v2473_v6 = vadd.f32 %v6553_v14, %v5285_v55  ;;  %v6554_v13 = vld [vmem:[#allocation65_spill] sm:$0xff]  ;;  %v2747_v21 = vmax.f32 %v2746_v34, %v2446_v50  ;;  %v2782_v25 = vmax.f32 %v2781_v33, %v2471_v60  ;;  %v2765_v45 = vmax.f32 %v2764_v61, %v2459_v48  ;;  %v6559_v28 = vld [vmem:[#allocation180_spill] sm:$0xff]  ;;  %v6563_v33 = vld [vmem:[#allocation94_spill] sm:$0xff] }
 0x4c9   :  { %v2474_v38 = vadd.f32 %v6554_v13, %v5276_v36  ;;  %v6555_v11 = vld [vmem:[#allocation73_spill] sm:$0xff]  ;;  %v2478_v24 = vadd.f32 %v6558_v51, %v5322_v37  ;;  %v2479_v14 = vadd.f32 %v6559_v28, %v5351_v52  ;;  %v5818_v50 = vadd.f32 %v6561_v43, %v5373_v46 }
 0x4ca   :  { %v2475_v41 = vadd.f32 %v6555_v11, %v5305_v5  ;;  %v6560_v13 = vld [vmem:[#allocation193_spill] sm:$0xff]  ;;  %v2748_v26 = vmax.f32 %v2747_v21, %v2447_v56  ;;  %v2783_v58 = vmax.f32 %v2782_v25, %v2472_v8  ;;  %v2766_v48 = vmax.f32 %v2765_v45, %v2460_v30 }
 0x4cb   :  { %v5814_v11 = vadd.f32 %v6560_v13, %v5346_v10  ;;  %v6562_v60 = vld [vmem:[#allocation213_spill] sm:$0xff]  ;;  %v5826_v61 = vadd.f32 %v6563_v33, %v5179_v17  ;;  %v6569_v13 = vld [vmem:[#allocation118_spill] sm:$0xff]  ;;  %v6570_v33 = vld [vmem:[#allocation124_spill] sm:$0xff] }
 0x4cc   :  { %v5822_v34 = vadd.f32 %v6562_v60, %v5368_v15  ;;  %v6565_v16 = vld [vmem:[#allocation105_spill] sm:$0xff]  ;;  %v2749_v8 = vmax.f32 %v2748_v26, %v5718_v57  ;;  %v2784_v21 = vmax.f32 %v2783_v58, %v2473_v6  ;;  %v2487_v30 = vadd.f32 %v6569_v13, %v5255_v63  ;;  %v6573_v58 = vld [vmem:[#allocation136_spill] sm:$0xff]  ;;  %v6574_v26 = vld [vmem:[#allocation142_spill] sm:$0xff] }
 0x4cd   :  { %6564 = vst [vmem:[#allocation22_spill] sm:$0xff] %v5826_v61  ;;  %v2485_v51 = vadd.f32 %v6565_v16, %v5211_v4  ;;  %v6566_v28 = vld [vmem:[#allocation113_spill] sm:$0xff]  ;;  %v2767_v45 = vmax.f32 %v2766_v48, %v2461_v39  ;;  %v2488_v61 = vadd.f32 %v6570_v33, %v5242_v0  ;;  %v6571_v16 = vld [vmem:[#allocation130_spill] sm:$0xff]  ;;  %v2490_v6 = vadd.f32 %v6573_v58, %v5276_v36  ;;  %v6575_v39 = vld [vmem:[#allocation148_spill] sm:$0xff] }
 0x4ce   :  { %v2486_v56 = vadd.f32 %v6566_v28, %v6414_v7  ;;  %v6567_v43 = vld [vmem:[#allocation21_spill] sm:$0xff]  ;;  %v2489_v31 = vadd.f32 %v6571_v16, %v5285_v55  ;;  %v5844_v28 = vmax.f32 %v2749_v8, %v5722_v54  ;;  %v2785_v57 = vmax.f32 %v2784_v21, %v2474_v38  ;;  %v6577_v38 = vld [vmem:[#allocation171_spill] sm:$0xff] }
 0x4cf   :  { %v5835_v25 = vadd.f32 %v6567_v43, %v5176_v12  ;;  %v2491_v43 = vadd.f32 %v6574_v26, %v5305_v5  ;;  %v2492_v48 = vadd.f32 %v6575_v39, %v5300_v23  ;;  %v2494_v8 = vadd.f32 %v6577_v38, %v5322_v37  ;;  %v6578_v21 = vld [vmem:[#allocation183_spill] sm:$0xff]  ;;  %v6584_v38 = vld [vmem:[#allocation116_spill] sm:$0xff] }
 0x4d0   :  { %v2802_v60 = vmax.f32 %v2486_v56, %v2485_v51  ;;  %6572 = vst [vmem:[#allocation185_spill] sm:$0xff] %v5844_v28  ;;  %v6576_v51 = vld [vmem:[#allocation159_spill] sm:$0xff]  ;;  %v2786_v54 = vmax.f32 %v2785_v57, %v2475_v41  ;;  %v2495_v16 = vadd.f32 %v6578_v21, %v5351_v52  ;;  %v5870_v41 = vadd.f32 %v5309_v47, %v5368_v15  ;;  %v6581_v57 = vld [vmem:[#allocation25_spill] sm:$0xff] }
 0x4d1   :  { %6568 = vst [vmem:[#allocation122_spill] sm:$0xff] %v5835_v25  ;;  %v2768_v25 = vmax.f32 %v2767_v45, %v2462_v40  ;;  %v2493_v56 = vadd.f32 %v6576_v51, %v5327_v3  ;;  %v6579_v40 = vld [vmem:[#allocation196_spill] sm:$0xff]  ;;  %v6580_v45 = vld [vmem:[#allocation209_spill] sm:$0xff]  ;;  %v5874_v51 = vadd.f32 %v6581_v57, %v5179_v17  ;;  %v2502_v21 = vadd.f32 %v6584_v38, %v6414_v7  ;;  %v6588_v57 = vld [vmem:[#allocation127_spill] sm:$0xff] }
 0x4d2   :  { %v2803_v13 = vmax.f32 %v2802_v60, %v2487_v30  ;;  %v5862_v30 = vadd.f32 %v6579_v40, %v5346_v10  ;;  %v5866_v60 = vadd.f32 %v6580_v45, %v5373_v46  ;;  %v2787_v39 = vmax.f32 %v2786_v54, %v2476_v42  ;;  %v6585_v40 = vld [vmem:[#allocation121_spill] sm:$0xff] }
 0x4d3   :  { %v2769_v58 = vmax.f32 %v2768_v25, %v2463_v62  ;;  %6582 = vst [vmem:[#allocation198_spill] sm:$0xff] %v5874_v51  ;;  %v6583_v62 = vld [vmem:[#allocation34_spill] sm:$0xff]  ;;  %v2503_v42 = vadd.f32 %v6585_v40, %v5255_v63  ;;  %v6586_v47 = vld [vmem:[#allocation101_spill] sm:$0xff]  ;;  %v2504_v33 = vadd.f32 %v6588_v57, %v5242_v0 }
 0x4d4   :  { %v2804_v26 = vmax.f32 %v2803_v13, %v2488_v61  ;;  %v2501_v61 = vadd.f32 %v6583_v62, %v5211_v4  ;;  %v2788_v54 = vmax.f32 %v2787_v39, %v2477_v27  ;;  %v5885_v45 = vadd.f32 %v6586_v47, %v5176_v12  ;;  %v6589_v51 = vld [vmem:[#allocation133_spill] sm:$0xff]  ;;  %v6592_v47 = vld [vmem:[#allocation154_spill] sm:$0xff] }
 0x4d5   :  { %v2770_v25 = vmax.f32 %v2769_v58, %v5766_v18  ;;  %v2505_v62 = vadd.f32 %v6589_v51, %v5285_v55  ;;  %v6591_v27 = vld [vmem:[#allocation145_spill] sm:$0xff]  ;;  %v6593_v57 = vld [vmem:[#allocation166_spill] sm:$0xff] }
 0x4d6   :  { %v2805_v13 = vmax.f32 %v2804_v26, %v2489_v31  ;;  %6587 = vst [vmem:[#allocation128_spill] sm:$0xff] %v5885_v45  ;;  %v2823_v58 = vmax.f32 %v2502_v21, %v2501_v61  ;;  %v6590_v26 = vld [vmem:[#allocation139_spill] sm:$0xff]  ;;  %v2789_v40 = vmax.f32 %v2788_v54, %v2478_v24  ;;  %v2507_v39 = vadd.f32 %v6591_v27, %v5305_v5  ;;  %v6596_v54 = vld [vmem:[#allocation204_spill] sm:$0xff] }
 0x4d7   :  { %v5892_v18 = vmax.f32 %v2770_v25, %v5770_v20  ;;  %v2506_v38 = vadd.f32 %v6590_v26, %v5276_v36  ;;  %v2508_v45 = vadd.f32 %v6592_v47, %v5300_v23  ;;  %v2509_v9 = vadd.f32 %v6593_v57, %v5327_v3  ;;  %v6595_v24 = vld [vmem:[#allocation191_spill] sm:$0xff] }
 0x4d8   :  { %v2806_v31 = vmax.f32 %v2805_v13, %v2490_v6  ;;  %v2824_v25 = vmax.f32 %v2823_v58, %v2503_v42  ;;  %v6594_v6 = vld [vmem:[#allocation178_spill] sm:$0xff]  ;;  %v2790_v13 = vmax.f32 %v2789_v40, %v2479_v14  ;;  %v2511_v21 = vadd.f32 %v6595_v24, %v5351_v52  ;;  %v6597_v27 = vld [vmem:[#allocation223_spill] sm:$0xff] }
 0x4d9   :  { %v2772_v51 = vmax.f32 %v5892_v18, %v5774_v35  ;;  %v2510_v61 = vadd.f32 %v6594_v6, %v5322_v37  ;;  %v5910_v26 = vadd.f32 %v6596_v54, %v5346_v10  ;;  %v5914_v47 = vadd.f32 %v6597_v27, %v5373_v46  ;;  %v6598_v42 = vld [vmem:[#allocation30_spill] sm:$0xff] }
 0x4da   :  { %v2807_v20 = vmax.f32 %v2806_v31, %v2491_v43  ;;  %v2825_v28 = vmax.f32 %v2824_v25, %v2504_v33  ;;  %v5918_v43 = vadd.f32 %v5293_v19, %v5368_v15  ;;  %v5922_v14 = vadd.f32 %v6598_v42, %v5179_v17  ;;  %v6599_v58 = vld [vmem:[#allocation38_spill] sm:$0xff] }
 0x4db   :  { %v2791_v31 = vmax.f32 %v2790_v13, %v5814_v11  ;;  %v2517_v40 = vadd.f32 %v6599_v58, %v5211_v4  ;;  %v6600_v6 = vld [vmem:[#allocation46_spill] sm:$0xff] }
 0x4dc   :  { %v2808_v57 = vmax.f32 %v2807_v20, %v2492_v48  ;;  %v2518_v24 = vadd.f32 %v6600_v6, %v6414_v7  ;;  %v6601_v54 = vld [vmem:[#allocation54_spill] sm:$0xff]  ;;  %v2826_v20 = vmax.f32 %v2825_v28, %v2505_v62  ;;  %v6606_v28 = vld [vmem:[#allocation151_spill] sm:$0xff] }
 0x4dd   :  { %v2519_v48 = vadd.f32 %v6601_v54, %v5255_v63  ;;  %v6602_v19 = vld [vmem:[#allocation106_spill] sm:$0xff]  ;;  %v5938_v11 = vmax.f32 %v2791_v31, %v5818_v50  ;;  %v2523_v62 = vadd.f32 %v6606_v28, %v5305_v5  ;;  %v6608_v31 = vld [vmem:[#allocation175_spill] sm:$0xff] }
 0x4de   :  { %v2809_v33 = vmax.f32 %v2808_v57, %v2493_v56  ;;  %v5933_v25 = vadd.f32 %v6602_v19, %v5176_v12  ;;  %v6603_v17 = vld [vmem:[#allocation62_spill] sm:$0xff]  ;;  %v2844_v13 = vmax.f32 %v2518_v24, %v2517_v40  ;;  %v2827_v56 = vmax.f32 %v2826_v20, %v2506_v38  ;;  %v6607_v12 = vld [vmem:[#allocation163_spill] sm:$0xff]  ;;  %v6610_v38 = vld [vmem:[#allocation201_spill] sm:$0xff] }
 0x4df   :  { %v2520_v27 = vadd.f32 %v6603_v17, %v5242_v0  ;;  %v6604_v4 = vld [vmem:[#allocation70_spill] sm:$0xff]  ;;  %v2524_v57 = vadd.f32 %v6607_v12, %v5300_v23  ;;  %v2793_v0 = vmax.f32 %v5938_v11, %v5822_v34  ;;  %v2525_v40 = vadd.f32 %v6608_v31, %v5327_v3  ;;  %v6613_v20 = vld [vmem:[#allocation217_spill] sm:$0xff]  ;;  %v6614_v3 = vld [vmem:[#allocation220_spill] sm:$0xff] }
 0x4e0   :  { %v2521_v42 = vadd.f32 %v6604_v4, %v5285_v55  ;;  %v6605_v7 = vld [vmem:[#allocation82_spill] sm:$0xff]  ;;  %v2810_v63 = vmax.f32 %v2809_v33, %v2494_v8  ;;  %v2845_v50 = vmax.f32 %v2844_v13, %v2519_v48  ;;  %v6609_v55 = vld [vmem:[#allocation188_spill] sm:$0xff]  ;;  %v2828_v8 = vmax.f32 %v2827_v56, %v2507_v39 }
 0x4e1   :  { %v2522_v58 = vadd.f32 %v6605_v7, %v5276_v36  ;;  %v5954_v6 = vadd.f32 %v6609_v55, %v5322_v37  ;;  %v2527_v24 = vadd.f32 %v6610_v38, %v5351_v52  ;;  %v6611_v5 = vld [vmem:[#allocation214_spill] sm:$0xff]  ;;  %v2549_v19 = vmax.f32 %v6614_v3, %v6613_v20  ;;  %v6616_v37 = vld [vmem:[#allocation221_spill] sm:$0xff]  ;;  %v6618_v52 = vld [vmem:[#allocation8_spill] sm:$0xff] }
 0x4e2   :  { %v2811_v36 = vmax.f32 %v2810_v63, %v2495_v16  ;;  %v5960_v54 = vadd.f32 %v6611_v5, %v5346_v10  ;;  %v2846_v23 = vmax.f32 %v2845_v50, %v2520_v27  ;;  %v6612_v33 = vld [vmem:[#allocation18_spill] sm:$0xff]  ;;  %v2829_v39 = vmax.f32 %v2828_v8, %v2508_v45  ;;  %v6619_v63 = vld [vmem:[#allocation89_spill] sm:$0xff]  ;;  %v6620_v10 = vld [vmem:[#allocation12_spill] sm:$0xff] }
 0x4e3   :  { %v5964_v48 = vadd.f32 %v6612_v33, %v5373_v46  ;;  %v6615_v17 = vld [vmem:[#allocation218_spill] sm:$0xff]  ;;  %v2612_v56 = vmax.f32 %v6620_v10, %v6619_v63  ;;  %v6621_v46 = vmax.f32 %v5389_v44, %v5393_v53  ;;  %v6622_v12 = vmax.f32 %v5399_v1, %v5397_v2  ;;  %v6624_v55 = vld [vmem:[#allocation96_spill] sm:$0xff]  ;;  %v6626_v8 = vld [vmem:[#allocation79_spill] sm:$0xff] }
 0x4e4   :  { %v2570_v13 = vmax.f32 %v6616_v37, %v6615_v17  ;;  %v2812_v16 = vmax.f32 %v2811_v36, %v5862_v30  ;;  %v6617_v4 = vld [vmem:[#allocation222_spill] sm:$0xff]  ;;  %v2847_v27 = vmax.f32 %v2846_v23, %v2521_v42  ;;  %v2830_v45 = vmax.f32 %v2829_v39, %v2509_v9 }
 0x4e5   :  { %v2591_v7 = vmax.f32 %v6618_v52, %v6617_v4  ;;  %v2563_v28 = vmax.f32 %v6621_v46, %v2549_v19  ;;  %v6623_v31 = vld [vmem:[#allocation42_spill] sm:$0xff]  ;;  %v6628_v42 = vmax.f32 %v5556_v32, %v5460_v29  ;;  %v6629_v2 = vmax.f32 %v5604_v59, %v5491_v49  ;;  %v6631_v4 = vld [vmem:[#allocation11_spill] sm:$0xff] }
 0x4e6   :  { %v2584_v50 = vmax.f32 %v6622_v12, %v2570_v13  ;;  %v2633_v38 = vmax.f32 %v6624_v55, %v6623_v31  ;;  %v5984_v30 = vmax.f32 %v2812_v16, %v5866_v60  ;;  %v6625_v36 = vld [vmem:[#allocation50_spill] sm:$0xff]  ;;  %v2848_v53 = vmax.f32 %v2847_v27, %v2522_v58  ;;  %v6630_v58 = vld [vmem:[#allocation91_spill] sm:$0xff]  ;;  %v6632_v27 = vld [vmem:[#allocation92_spill] sm:$0xff] }
 0x4e7   :  { %v6627_v5 = vmax.f32 %v6625_v36, %v6626_v8  ;;  %v2626_v44 = vmax.f32 %v6628_v42, %v2612_v56  ;;  %v2564_v23 = vrot.slane %v2563_v28, 4  ;;  %v2831_v3 = vmax.f32 %v2830_v45, %v2510_v61  ;;  %v6633_v46 = vld [vmem:[#allocation27_spill] sm:$0xff] }
 0x4e8   :  { %v2585_v20 = vrot.slane %v2584_v50, 4  ;;  %v2647_v1 = vmax.f32 %v6629_v2, %v2633_v38  ;;  %v2814_v60 = vmax.f32 %v5984_v30, %v5870_v41  ;;  %v2849_v17 = vmax.f32 %v2848_v53, %v2523_v62 }
 0x4e9   :  { %v2605_v33 = vmax.f32 %v6627_v5, %v2591_v7  ;;  %v2627_v19 = vrot.slane %v2626_v44, 4  ;;  %v2565_v37 = vmax.f32 %v2563_v28, %v2564_v23  ;;  %v2832_v39 = vmax.f32 %v2831_v3, %v2511_v21 }
 0x4ea   :  { %v2586_v13 = vmax.f32 %v2584_v50, %v2585_v20  ;;  %v2648_v16 = vrot.slane %v2647_v1, 4  ;;  %v2654_v52 = vmax.f32 %v6631_v4, %v6630_v58  ;;  %v2850_v7 = vmax.f32 %v2849_v17, %v2524_v57  ;;  %v6641_v58 = vld [vmem:[#allocation59_spill] sm:$0xff]  ;;  %v6642_v4 = vld [vmem:[#allocation84_spill] sm:$0xff] }
 0x4eb   :  { %v2606_v9 = vrot.slane %v2605_v33, 4  ;;  %v2628_v29 = vmax.f32 %v2626_v44, %v2627_v19  ;;  %v2566_v63 = vrot.slane %v2565_v37, 2  ;;  %v2833_v10 = vmax.f32 %v2832_v39, %v5910_v26  ;;  %v6636_v19 = vld [vmem:[#allocation66_spill] sm:$0xff]  ;;  %v6640_v39 = vld [vmem:[#allocation35_spill] sm:$0xff] }
 0x4ec   :  { %v2587_v49 = vrot.slane %v2586_v13, 2  ;;  %v2649_v59 = vmax.f32 %v2647_v1, %v2648_v16  ;;  %v6634_v62 = vmax.f32 %v6632_v27, %v6633_v46  ;;  %v2851_v12 = vmax.f32 %v2850_v7, %v2525_v40  ;;  %v6648_v27 = vld [vmem:[#allocation15_spill] sm:$0xff]  ;;  %v6649_v46 = vld [vmem:[#allocation102_spill] sm:$0xff] }
 0x4ed   :  { %v2607_v32 = vmax.f32 %v2605_v33, %v2606_v9  ;;  %v2629_v61 = vrot.slane %v2628_v29, 2  ;;  %v2567_v50 = vmax.f32 %v2565_v37, %v2566_v63  ;;  %v2834_v55 = vmax.f32 %v2833_v10, %v5914_v47  ;;  %v2223_v33 = vpop.permute.xlu0 %2222  ;;  %v6635_v9 = vld [vmem:[#allocation110_spill] sm:$0xff]  ;;  %v6644_v63 = vld [vmem:[#allocation51_spill] sm:$0xff] }
 0x4ee   :  { %v2668_v28 = vmax.f32 %v6634_v62, %v2654_v52  ;;  %v2588_v21 = vmax.f32 %v2586_v13, %v2587_v49  ;;  %v2650_v31 = vrot.slane %v2649_v59, 2  ;;  %v2852_v36 = vmax.f32 %v2851_v12, %v5954_v6  ;;  %v6637_v13 = vld [vmem:[#allocation26_spill] sm:$0xff]  ;;  %v6645_v49 = vld [vmem:[#allocation43_spill] sm:$0xff] }
 0x4ef   :  { %v2608_v56 = vrot.slane %v2607_v32, 2  ;;  %v2630_v45 = vmax.f32 %v2628_v29, %v2629_v61  ;;  %v2568_v8 = vrot.slane %v2567_v50, 1  ;;  %v2835_v42 = vmax.f32 %v2834_v55, %v5918_v43  ;;  %v6646_v10 = vld [vmem:[#allocation95_spill] sm:$0xff]  ;;  %v6651_v12 = vld [vmem:[#allocation74_spill] sm:$0xff] }
 0x4f0   :  { %v2669_v57 = vrot.slane %v2668_v28, 4  ;;  %v2589_v5 = vrot.slane %v2588_v21, 1  ;;  %v2651_v26 = vmax.f32 %v2649_v59, %v2650_v31  ;;  %v2853_v40 = vmax.f32 %v2852_v36, %v2527_v24  ;;  %v6638_v24 = vld [vmem:[#allocation58_spill] sm:$0xff]  ;;  %v6653_v31 = vld [vmem:[#allocation19_spill] sm:$0xff]  ;;  %v6655_v36 = vld [vmem:[#allocation185_spill] sm:$0xff] }
 0x4f1   :  { %v2609_v38 = vmax.f32 %v2607_v32, %v2608_v56  ;;  %v2631_v53 = vrot.slane %v2630_v45, 1  ;;  %v6007_v20 = vadd.f32 %v2223_v33, %v5368_v15  ;;  %v6009_v2 = vmax.f32 %v2567_v50, %v2568_v8  ;;  %v6639_v15 = vld [vmem:[#allocation31_spill] sm:$0xff] }
 0x4f2   :  { %v2670_v23 = vmax.f32 %v2668_v28, %v2669_v57  ;;  %v6011_v47 = vmax.f32 %v2588_v21, %v2589_v5  ;;  %v2652_v6 = vrot.slane %v2651_v26, 1  ;;  %v2675_v17 = vmax.f32 %v6636_v19, %v6635_v9  ;;  %v6647_v56 = vld [vmem:[#allocation75_spill] sm:$0xff] }
 0x4f3   :  { %v2610_v44 = vrot.slane %v2609_v38, 1  ;;  %v2854_v43 = vmax.f32 %v2853_v40, %v5960_v54  ;;  %v6018_v37 = vmax.f32 %v2630_v45, %v2631_v53  ;;  %v2696_v16 = vmax.f32 %v6638_v24, %v6637_v13  ;;  %v6654_v55 = vld [vmem:[#allocation111_spill] sm:$0xff]  ;;  %v6659_v13 = vld [vmem:[#allocation22_spill] sm:$0xff] }
 0x4f4   :  { %v2671_v3 = vrot.slane %v2670_v23, 2  ;;  %v2717_v32 = vmax.f32 %v6640_v39, %v6639_v15  ;;  %v6643_v52 = vmax.f32 %v6641_v58, %v6642_v4  ;;  %v2738_v59 = vmax.f32 %v6645_v49, %v6644_v63  ;;  %v6656_v8 = vld [vmem:[#allocation67_spill] sm:$0xff] }
 0x4f5   :  { %v6013_v1 = vmax.f32 %v2609_v38, %v2610_v44  ;;  %v2759_v61 = vmax.f32 %v6647_v56, %v6646_v10  ;;  %v2855_v54 = vmax.f32 %v2854_v43, %v5964_v48  ;;  %v6650_v62 = vmax.f32 %v6648_v27, %v6649_v46  ;;  %v6658_v43 = vld [vmem:[#allocation122_spill] sm:$0xff] }
 0x4f6   :  { %v2672_v29 = vmax.f32 %v2670_v23, %v2671_v3  ;;  %v2689_v7 = vmax.f32 %v6643_v52, %v2675_v17  ;;  %v6652_v50 = vmax.f32 %v5794_v22, %v6651_v12  ;;  %v2780_v38 = vmax.f32 %v6654_v55, %v6653_v31 }
 0x4f7   :  { %v2710_v28 = vmax.f32 %v6650_v62, %v2696_v16  ;;  %v6040_v45 = vmax.f32 %v2651_v26, %v2652_v6  ;;  %v6657_v5 = vmax.f32 %v6655_v36, %v6656_v8  ;;  %v2773_v48 = vmax.f32 %v2772_v51, %v2759_v61  ;;  %v6661_v16 = vld [vmem:[#allocation198_spill] sm:$0xff] }
 0x4f8   :  { %v2731_v21 = vmax.f32 %v6652_v50, %v2717_v32  ;;  %v2690_v57 = vrot.slane %v2689_v7, 4  ;;  %v2856_v44 = vmax.f32 %v2855_v54, %v6007_v20  ;;  %v2794_v22 = vmax.f32 %v2793_v0, %v2780_v38  ;;  %v6660_v20 = vld [vmem:[#allocation128_spill] sm:$0xff] }
 0x4f9   :  { %v2752_v33 = vmax.f32 %v6657_v5, %v2738_v59  ;;  %v2711_v53 = vrot.slane %v2710_v28, 4  ;;  %v2673_v40 = vrot.slane %v2672_v29, 1  ;;  %v2774_v3 = vrot.slane %v2773_v48, 4 }
 0x4fa   :  { %v2732_v23 = vrot.slane %v2731_v21, 4  ;;  %v2691_v26 = vmax.f32 %v2689_v7, %v2690_v57  ;;  %v2795_v17 = vrot.slane %v2794_v22, 4  ;;  %v2801_v24 = vmax.f32 %v6659_v13, %v6658_v43 }
 0x4fb   :  { %v2753_v6 = vrot.slane %v2752_v33, 4  ;;  %v2712_v9 = vmax.f32 %v2710_v28, %v2711_v53  ;;  %v2775_v51 = vmax.f32 %v2773_v48, %v2774_v3  ;;  %v2822_v15 = vmax.f32 %v6661_v16, %v6660_v20  ;;  %v6662_v3 = vld [vmem:[#allocation14_spill] sm:$0xff] }
 0x4fc   :  { %v2733_v19 = vmax.f32 %v2731_v21, %v2732_v23  ;;  %v2692_v35 = vrot.slane %v2691_v26, 2  ;;  %v2796_v34 = vmax.f32 %v2794_v22, %v2795_v17  ;;  %v2815_v11 = vmax.f32 %v2814_v60, %v2801_v24 }
 0x4fd   :  { %v2754_v18 = vmax.f32 %v2752_v33, %v2753_v6  ;;  %v2713_v39 = vrot.slane %v2712_v9, 2  ;;  %v2776_v4 = vrot.slane %v2775_v51, 2  ;;  %v2836_v52 = vmax.f32 %v2835_v42, %v2822_v15 }
 0x4fe   :  { %v2734_v32 = vrot.slane %v2733_v19, 2  ;;  %v2693_v0 = vmax.f32 %v2691_v26, %v2692_v35  ;;  %v2797_v49 = vrot.slane %v2796_v34, 2  ;;  %v2816_v59 = vrot.slane %v2815_v11, 4 }
 0x4ff   :  { %v2755_v58 = vrot.slane %v2754_v18, 2  ;;  %v2714_v7 = vmax.f32 %v2712_v9, %v2713_v39  ;;  %v2777_v61 = vmax.f32 %v2775_v51, %v2776_v4  ;;  %v2837_v54 = vrot.slane %v2836_v52, 4  ;;  %v3177_v4 = vld [vmem:[%s6116_s13] ss:$0 sm:$0xff]  ;;  %s3749_s13 = smov [#allocation4]  }
 0x500   :  { %v2735_v63 = vmax.f32 %v2733_v19, %v2734_v32  ;;  %v2694_v10 = vrot.slane %v2693_v0, 1  ;;  %v2798_v62 = vmax.f32 %v2796_v34, %v2797_v49  ;;  %v2817_v28 = vmax.f32 %v2815_v11, %v2816_v59  ;;  %s3129_s4 = sshll.u32 %s3749_s13, 4  ;;  %s3130_s4 = int_to_ptr.vmem [resolvable:$true] %s3129_s4 }
 0x501   :  { %v2756_v56 = vmax.f32 %v2754_v18, %v2755_v58  ;;  %v2715_v27 = vrot.slane %v2714_v7, 1  ;;  %v2674_v12 = vmax.f32 %v2672_v29, %v2673_v40  ;;  %v2778_v41 = vrot.slane %v2777_v61, 1  ;;  %s3720_s26 = scalar_lea.vmem %s3130_s4, 16  ;;  %p3725_p1 = scmp.lt.s32.totalorder %s3130_s4, %s3130_s4 }
 0x502   :  { %v2736_v46 = vrot.slane %v2735_v63, 1  ;;  %v2838_v30 = vmax.f32 %v2836_v52, %v2837_v54  ;;  %v2695_v60 = vmax.f32 %v2693_v0, %v2694_v10  ;;  %v2818_v42 = vrot.slane %v2817_v28, 2  ;;  %v3039_v54 = vpop.permute.xlu0 %3038  ;;  %p3721_p0 = scmp.ne.s32.totalorder %s3130_s4, %s3720_s26 }
 0x503   :  { %v2757_v50 = vrot.slane %v2756_v56, 1  ;;  %v2716_v21 = vmax.f32 %v2714_v7, %v2715_v27  ;;  %v2799_v38 = vrot.slane %v2798_v62, 1  ;;  %v2843_v36 = vmax.f32 %v5922_v14, %v5933_v25  ;;  %v6665_v27 = vld [vmem:[#allocation7_spill] sm:$0xff] }
 0x504   :  { %v2737_v31 = vmax.f32 %v2735_v63, %v2736_v46  ;;  %v2839_v57 = vrot.slane %v2838_v30, 2  ;;  %v2779_v8 = vmax.f32 %v2777_v61, %v2778_v41  ;;  %v2819_v5 = vmax.f32 %v2817_v28, %v2818_v42  ;;  %v3034_v61 = vld [vmem:[%s6117_s14] sm:$0x1]  ;;  %s3724_s14 = scalar_lea.vmem %s3130_s4, 32 }
 0x505   :  { %v2758_v55 = vmax.f32 %v2756_v56, %v2757_v50  ;;  %v2857_v48 = vmax.f32 %v2856_v44, %v2843_v36  ;;  %v2902_v29 = vsel %vm2901_vm3, %v6011_v47, %v6009_v2  ;;  %v2800_v25 = vmax.f32 %v2798_v62, %v2799_v38  ;;  %p3726_p2 = scmp.lt.s32.totalorder %s3724_s14, %s3720_s26 }
 0x506   :  { %v2840_v33 = vmax.f32 %v2838_v30, %v2839_v57  ;;  %v2820_v53 = vrot.slane %v2819_v5, 1  ;;  %v2904_v23 = vsel %vm2903_vm6, %v6013_v1, %v2902_v29  ;;  %v6663_v9 = vrot.slane %v6662_v3, 2 }
 0x507   :  { %v2858_v40 = vrot.slane %v2857_v48, 4  ;;  %v2906_v14 = vsel %vm2905_vm7, %v6018_v37, %v2904_v23  ;;  %v2915_v2 = vsel %vm2901_vm3, %v2758_v55, %v2737_v31  ;;  %v3747_v0 = vmov 0.0|0.0   ;;  %p3727_p3 = por %p3726_p2, %p3725_p1 }
 0x508   :  { %v2841_v22 = vrot.slane %v2840_v33, 1  ;;  %v2908_v44 = vsel %vm2907_vm8, %v6040_v45, %v2906_v14  ;;  %v2821_v47 = vmax.f32 %v2819_v5, %v2820_v53  ;;  %v2916_v1 = vsel %vm2903_vm6, %v2779_v8, %v2915_v2  ;;  %3689 = vmatprep.subr.bf16.mxu0 %v3747_v0 }
 0x509   :  { %v2859_v26 = vmax.f32 %v2857_v48, %v2858_v40  ;;  %v2910_v6 = vsel %vm2909_vm9, %v2674_v12, %v2908_v44  ;;  %v2882_v19 = vmax.f32 %v6662_v3, %v6663_v9  ;;  %v2917_v43 = vsel %vm2905_vm7, %v2800_v25, %v2916_v1  ;;  %p3728_p4 = pnand %p3727_p3, %p3721_p0 }
 0x50a   :  { %v2842_v17 = vmax.f32 %v2840_v33, %v2841_v22  ;;  %v2912_v37 = vsel %vm2911_vm10, %v2695_v60, %v2910_v6  ;;  %v2918_v24 = vsel %vm2907_vm8, %v2821_v47, %v2917_v43  ;;  %v6664_v58 = vmov 0.0  }
 0x50b   :  { %v2860_v13 = vrot.slane %v2859_v26, 2  ;;  %v2914_v45 = vsel %vm2913_vm11, %v2716_v21, %v2912_v37  ;;  %v2883_v20 = vrot.slane %v2882_v19, 1  ;;  %3546 = vmatprep.mubr.msk.f32.mxu0 %vm3748_vm14, %v6664_v58  ;;  %v3044_v46 = vrot.slane %v3039_v54, %v6665_v27 }
 0x50c   :  { %v2919_v35 = vsel %vm2909_vm9, %v2842_v17, %v2918_v24  ;;  %v2924_v18 = vmax.f32 %v2914_v45, -1e+30 }
 0x50d   :  { %v2861_v51 = vmax.f32 %v2859_v26, %v2860_v13  ;;  %v2884_v39 = vmax.f32 %v2882_v19, %v2883_v20 }
 0x50e   :  { %vm2930_vm12 = vcmp.gt.f32.partialorder %v2924_v18, -1e+29 }
 0x50f   :  { %v2862_v16 = vrot.slane %v2861_v51, 1  ;;  %3539 = vmatprep.mubr.msk.f32.mxu1 %vm2930_vm12, %v2924_v18 }
 0x511   :  { %v2863_v15 = vmax.f32 %v2861_v51, %v2862_v16 }
 0x513   :  { %v2920_v32 = vsel %vm2911_vm10, %v2863_v15, %v2919_v35 }
 0x514   :  { %v2921_v34 = vsel %vm2913_vm11, %v2884_v39, %v2920_v32 }
 0x515   :  { %v2925_v11 = vmax.f32 %v2921_v34, -1e+30 }
 0x517   :  { %vm2931_vm13 = vcmp.gt.f32.partialorder %v2925_v11, -1e+29 }
 0x518   :  { %3540 = vmatmul.mubr.msk.f32.vlgmr.msra.gmra.mrb[20].mxu1 %vm2931_vm13, %v2925_v11 }
 0x5eb   :  { %v3541_v52 = vpop.f32.mrb[20].mxu1 }
 0x5ec   :  { %v3029_v7 = vadd.f32 %v3541_v52, %v3177_v4  ;;  %v3023_v63 = vpop.f32.mrb[21].mxu1 }
 0x5ed   :  { %v3024_v49 = vadd.f32 %v3177_v4, %v3023_v63 }
 0x5ee   :  { %v3033_v59 = vmax.f32 %v3029_v7, 0.0 }
 0x5ef   :  { %v3032_v10 = vmax.f32 %v3024_v49, 0.0 }
 0x5f1   :  { %v3690_v56 = vpack.c.bf16 %v3033_v59, %v3032_v10 }
 0x5f3   :  { %3691 = vmatpush3.bf16.xpose.msra.mxu0 %v3690_v56 }
 0x5fa   :  { %3547 = vmatmul.mubr.f32.vlgmr.msra.gmra.mrb[20].mxu0 %v3034_v61 }
 0x6cd   :  { %v3111_v62 = vpop.f32.mrb[20].mxu0 }
 0x6ce   :  { %v3112_v28 = vadd.f32 %v3111_v62, %v3044_v46  ;;  %v3548_v12 = vpop.f32.mrb[21].mxu0 }
 0x6d0   :  { %v3180_v50 = vmul.f32 -1.442695, %v3112_v28 }
 0x6d2   :  { %3716 = vpow2.f32 %v3180_v50 }
 0x6dc   :  { %v3717_v41 = vpop.eup %3716 }
 0x6dd   :  { %v3118_v30 = vadd.f32 1.0, %v3717_v41 }
 0x6df   :  { %3718 = vrcp.f32 %v3118_v30 }
 0x6e9   :  { %v3719_v60 = vpop.eup %3718 }
 0x6ea   :  { %3122 = vst.msk [vmem:[#allocation4] sm:$0x1] %vm3121_vm15, %v3719_v60 }
 0x6eb   :  { %3731 = shalt.err (!%p3728_p4)
}
 0x6ec   :  { %s3732_s5 = scalar_lea.hbm %s6119_s16, 16 }
 0x6ed   :  { %p3733_p5 = scmp.ne.s32.totalorder %s6119_s16, %s3732_s5  ;;  %p3736_p6 = scmp.lt.u32.totalorder %s3732_s5, %s6119_s16 }
 0x6ef   :  { %p3738_p7 = pnand %p3736_p6, %p3733_p5 }
 0x6f1   :  { %3741 = shalt.err (!%p3738_p7)
}
 0x6f2   :  { %3132 = dma.vmem_to_hbm [thread:$0]  %s3130_s4, 16, %s6119_s16, [#allocation5]  }
 0x6f3   :  { %3742 = dma.done.wait [#allocation5], 16  }
 0x6f4   :  { %3743 = vsyncadd [#allocation5], 4294967280 }
 0x6f5   :  { %3136 = vsyncpa [#allocation5], 1 }

</bundles_post_ra>
